<compile_context>
chip_gen: v5e
topology: v5e:2x2
jax: 0.10.0
libtpu: 0.0.40
codegen_flags: <defaults>
</compile_context>

<pallas_src>
import functools

import jax
import jax.numpy as jnp
from jax.experimental import pallas as pl
from jax.experimental.pallas import tpu as pltpu


def _round_up(x, m):
    return (x + m - 1) // m * m


def _ceil_div(a, b):
    return -(-a // b)


def _conv_block_kernel(x_ref, w_ref, scale_ref, shift_ref, alpha_ref, o_ref, *,
                       kernel_size, stride, chunk_rows, n_chunks, w_out_p,
                       activation):
    """One (batch, row-tile) grid step: conv + folded bias/BN + activation.

    x_ref:     (hp_total, wp_total, c_in)   bf16  whole padded image (resident)
    w_ref:     (k, k, c_in, c_out_p)        bf16  HWIO weights (c_out padded)
    scale_ref: (1, c_out_p)                 f32   folded BN scale
    shift_ref: (1, c_out_p)                 f32   folded bias/BN shift
    alpha_ref: (1,)                         f32   shared PReLU alpha (SMEM)
    o_ref:     (tile_h, w_out_p, c_out_p)   bf16  output row tile
    """
    c_in = x_ref.shape[-1]
    c_out_p = w_ref.shape[-1]
    tile_h = chunk_rows * n_chunks
    m = chunk_rows * w_out_p
    row0 = pl.program_id(1) * tile_h * stride    # first input row of this tile

    def chunk_body(c, carry):
        r_out0 = c * chunk_rows                  # output-row offset inside tile
        r_in0 = row0 + r_out0 * stride           # input-row offset into x_ref
        acc = jnp.zeros((m, c_out_p), jnp.float32)
        # Static tap loop; the chained adds keep a single running accumulator
        # so Mosaic can fold them into the MXU result buffer (MRB on v7x).
        for kh in range(kernel_size):
            for kw in range(kernel_size):
                if stride == 1:
                    patch = x_ref[pl.ds(r_in0 + kh, chunk_rows),
                                  kw:kw + w_out_p, :]
                else:
                    # TODO(synk): replace with wrapper-side space-to-depth.
                    patch = x_ref[pl.ds(r_in0 + kh, chunk_rows, stride=stride),
                                  pl.ds(kw, w_out_p, stride=stride), :]
                # (chunk_rows, w_out_p, c_in) -> (m, c_in) is a sublane-aligned
                # merge because w_out_p % 8 == 0.
                lhs = patch.reshape(m, c_in)
                acc = acc + jnp.dot(lhs, w_ref[kh, kw],
                                    preferred_element_type=jnp.float32)

        # Folded bias / eval-mode batch norm:  y = conv * scale + shift.
        y = acc * scale_ref[...] + shift_ref[...]
        if activation == "prelu":
            y = jnp.where(y >= 0, y, alpha_ref[0] * y)   # single shared alpha
        elif activation == "leakyrelu":
            y = jnp.where(y >= 0, y, 0.2 * y)
        elif activation == "tanh":
            y = jnp.tanh(y)
        # activation is None -> identity

        o_ref[pl.ds(r_out0, chunk_rows), :, :] = (
            y.reshape(chunk_rows, w_out_p, c_out_p).astype(o_ref.dtype))
        return carry

    if n_chunks == 1:
        chunk_body(0, 0)
    else:
        jax.lax.fori_loop(0, n_chunks, chunk_body, 0)


def conv_block_forward(x_nchw, params, *, kernel_size, stride=1,
                       batch_norm=False, activation=None,
                       m_target=2048, acc_budget_bytes=128 * 1024):
    """Equivalent of ConvolutionalBlock.forward.  x_nchw: (N, C_in, H, W)."""
    if activation is not None:
        activation = activation.lower()
        assert activation in {"prelu", "leakyrelu", "tanh"}

    n, c_in, h, w = x_nchw.shape
    weight = params["weight"]                     # (C_out, C_in, k, k)
    bias = params["bias"]                         # (C_out,)
    c_out = weight.shape[0]
    k = kernel_size
    pad = k // 2

    h_out = (h + 2 * pad - k) // stride + 1
    w_out = (w + 2 * pad - k) // stride + 1

    # ---- tiling ----------------------------------------------------------
    c_out_p = _round_up(c_out, 128)    # lane-dense MXU N dim / output stores
    w_out_p = _round_up(w_out, 8)      # sublane-aligned output row width

    # Output rows per in-kernel chunk: keep the live f32 accumulator within
    # ~32 vregs so it never spills to VMEM.
    chunk_rows = max(1, min(h_out, acc_budget_bytes // (w_out_p * c_out_p * 4)))
    max_chunks = _ceil_div(h_out, chunk_rows)
    # Chunks per grid step: target ~m_target output pixels per step so the
    # ~0.35 us per-step pipeline overhead is amortised.
    chunks_per_step = max(1, min(_ceil_div(m_target, chunk_rows * w_out_p),
                                 max_chunks))
    # v7x has 2 TensorCores: keep at least two grid steps for batch-1 inputs.
    if n == 1 and chunks_per_step == max_chunks and max_chunks >= 2:
        chunks_per_step = _ceil_div(max_chunks, 2)
    tile_h = chunk_rows * chunks_per_step
    n_t = _ceil_div(h_out, tile_h)
    h_out_pad = n_t * tile_h

    hp_total = max((h_out_pad - 1) * stride + k, pad + h)
    wp_total = _round_up(max((w_out_p - 1) * stride + k, pad + w), 8)

    # ---- layout glue (XLA): NCHW -> NHWC, spatial zero pad, bf16 ----------
    # NOTE: no channel padding in HBM -- the input block covers the full
    # channel dim, so c_in stays unpadded; the MXU pads K internally at zero
    # HBM cost.
    x_nhwc = jnp.transpose(x_nchw, (0, 2, 3, 1)).astype(jnp.bfloat16)
    x_padded = jnp.pad(
        x_nhwc,
        ((0, 0),
         (pad, hp_total - pad - h),
         (pad, wp_total - pad - w),
         (0, 0)))

    # Weight (C_out, C_in, k, k) -> (k, k, C_in, C_out_p), bf16.
    w_hwio = jnp.transpose(weight, (2, 3, 1, 0))
    w_hwio = jnp.pad(w_hwio, ((0, 0), (0, 0), (0, 0), (0, c_out_p - c_out)))
    w_hwio = w_hwio.astype(jnp.bfloat16)

    # Fold bias + (eval-mode) batch norm into per-channel scale / shift.
    if batch_norm:
        eps = 1e-5
        s = params["gamma"] / jnp.sqrt(params["running_var"] + eps)
        scale = s
        shift = (bias - params["running_mean"]) * s + params["beta"]
    else:
        scale = jnp.ones((c_out,), jnp.float32)
        shift = bias
    scale_2d = jnp.pad(scale.astype(jnp.float32),
                       (0, c_out_p - c_out)).reshape(1, c_out_p)
    shift_2d = jnp.pad(shift.astype(jnp.float32),
                       (0, c_out_p - c_out)).reshape(1, c_out_p)
    alpha = jnp.asarray(params.get("prelu_alpha", 0.25),
                        jnp.float32).reshape(1)

    kernel = functools.partial(
        _conv_block_kernel,
        kernel_size=k, stride=stride, chunk_rows=chunk_rows,
        n_chunks=chunks_per_step, w_out_p=w_out_p, activation=activation)

    # VMEM budget: double-buffered resident image + output tile + weights,
    # capped so it also fits v7x's 64 MiB physical VMEM.
    in_bytes = hp_total * wp_total * c_in * 2
    out_blk_bytes = tile_h * w_out_p * c_out_p * 2
    w_bytes = k * k * c_in * c_out_p * 2
    needed = 2 * in_bytes + 2 * out_blk_bytes + 2 * w_bytes + (4 << 20)
    vmem_limit = int(min(max(needed, 32 << 20), 48 << 20))

    out_padded = pl.pallas_call(
        kernel,
        # bf16 output halves the HBM write of the channel-padded result.
        out_shape=jax.ShapeDtypeStruct((n, h_out_pad, w_out_p, c_out_p),
                                       jnp.bfloat16),
        grid=(n, n_t),
        in_specs=[
            # Whole padded image per batch element.  The block index depends
            # only on `b`, so Pallas DMAs it once per image and keeps it
            # resident in VMEM across all row tiles: no halo duplication.
            pl.BlockSpec((None, hp_total, wp_total, c_in),
                         lambda b, t: (b, 0, 0, 0)),
            pl.BlockSpec((k, k, c_in, c_out_p), lambda b, t: (0, 0, 0, 0)),
            pl.BlockSpec((1, c_out_p), lambda b, t: (0, 0)),
            pl.BlockSpec((1, c_out_p), lambda b, t: (0, 0)),
            pl.BlockSpec(memory_space=pltpu.MemorySpace.SMEM),
        ],
        out_specs=pl.BlockSpec((None, tile_h, w_out_p, c_out_p),
                               lambda b, t: (b, t, 0, 0)),
        compiler_params=pltpu.CompilerParams(
            dimension_semantics=("parallel", "parallel"),
            vmem_limit_bytes=vmem_limit),
    )(x_padded, w_hwio, scale_2d, shift_2d, alpha)

    # Drop spatial / channel padding, NHWC -> NCHW, caller dtype.
    # TODO(synk): a full SRGAN network should chain blocks in NHWC bf16 and
    #             skip this per-block slice / transpose / cast.
    out_nhwc = out_padded[:, :h_out, :w_out, :c_out]
    return jnp.transpose(out_nhwc, (0, 3, 1, 2)).astype(x_nchw.dtype)


def _reference_forward(x_nchw, params, *, kernel_size, stride=1,
                       batch_norm=False, activation=None):
    """Pure-JAX reference with the same bf16-operand / f32-accum precision."""
    k = kernel_size
    pad = k // 2
    x_nhwc = jnp.transpose(x_nchw, (0, 2, 3, 1)).astype(jnp.bfloat16)
    w_hwio = jnp.transpose(params["weight"], (2, 3, 1, 0)).astype(jnp.bfloat16)
    y = jax.lax.conv_general_dilated(
        x_nhwc, w_hwio, window_strides=(stride, stride),
        padding=((pad, pad), (pad, pad)),
        dimension_numbers=("NHWC", "HWIO", "NHWC"),
        preferred_element_type=jnp.float32)
    y = y + params["bias"]
    if batch_norm:
        eps = 1e-5
        s = params["gamma"] / jnp.sqrt(params["running_var"] + eps)
        y = (y - params["running_mean"]) * s + params["beta"]
    if activation == "prelu":
        a = params.get("prelu_alpha", 0.25)
        y = jnp.where(y >= 0, y, a * y)
    elif activation == "leakyrelu":
        y = jnp.where(y >= 0, y, 0.2 * y)
    elif activation == "tanh":
        y = jnp.tanh(y)
    return jnp.transpose(y, (0, 3, 1, 2))


def _init_params(key, c_in, c_out, k):
    k0, k1, k2, k3, k4, k5 = jax.random.split(key, 6)
    return {
        "weight": 0.1 * jax.random.normal(k0, (c_out, c_in, k, k), jnp.float32),
        "bias": 0.1 * jax.random.normal(k1, (c_out,), jnp.float32),
        "gamma": 1.0 + 0.1 * jax.random.normal(k2, (c_out,), jnp.float32),
        "beta": 0.1 * jax.random.normal(k3, (c_out,), jnp.float32),
        "running_mean": 0.1 * jax.random.normal(k4, (c_out,), jnp.float32),
        "running_var": 0.5 + jnp.abs(jax.random.normal(k5, (c_out,), jnp.float32)),
        "prelu_alpha": 0.25,   # nn.PReLU() default init (single shared alpha)
    }


if __name__ == "__main__":
    key = jax.random.PRNGKey(0)
    kx, kp = jax.random.split(key)

    C_IN, C_OUT, K = 4, 8, 3
    params = _init_params(kp, C_IN, C_OUT, K)

    cases = [
        # (x_shape, config)
        ((2, C_IN, 16, 16),
         dict(kernel_size=K, stride=1, batch_norm=True, activation="prelu")),
        ((2, C_IN, 16, 16),
         dict(kernel_size=K, stride=1, batch_norm=False, activation="tanh")),
        # 20x20 exercises the row/col tile-padding paths.
        ((2, C_IN, 20, 20),
         dict(kernel_size=K, stride=1, batch_norm=True, activation="leakyrelu")),
        # 40x40 exercises the multi-chunk fori_loop path inside one grid step.
        ((2, C_IN, 40, 40),
         dict(kernel_size=K, stride=1, batch_norm=True, activation="prelu")),
        # batch=1 exercises the v7x two-row-tile split + resident-input reuse.
        ((1, C_IN, 32, 32),
         dict(kernel_size=K, stride=1, batch_norm=False, activation=None)),
    ]

    for i, (x_shape, cfg) in enumerate(cases):
        x = jax.random.normal(jax.random.fold_in(kx, i), x_shape, jnp.float32)
        out = conv_block_forward(x, params, **cfg)
        out = jax.block_until_ready(out)

        n, _, h, w = x_shape
        kk, ss = cfg["kernel_size"], cfg["stride"]
        pd = kk // 2
        eh = (h + 2 * pd - kk) // ss + 1
        ew = (w + 2 * pd - kk) // ss + 1
        assert out.shape == (n, C_OUT, eh, ew), out.shape

        # Kernel output is bf16-rounded; round the f32 reference the same way
        # so the comparison only has to absorb <= 1-ulp disagreements.
        ref = _reference_forward(x, params, **cfg)
        ref_q = ref.astype(jnp.bfloat16).astype(jnp.float32)
        max_err = jnp.max(jnp.abs(out - ref_q))
        assert jnp.allclose(out, ref_q, atol=1e-2, rtol=1.5e-2), (
            f"mismatch for case {i} cfg {cfg}: max abs err {max_err}")

    print("KERNEL_OK")
</pallas_src>

<mosaic_0001>
module attributes {stable_mosaic.version = 11 : i64} {
  func.func @_conv_block_kernel(%arg0: i32, %arg1: i32, %arg2: memref<1x18x24x4xbf16, #tpu.memory_space<vmem>>, %arg3: memref<3x3x4x128xbf16, #tpu.memory_space<vmem>>, %arg4: memref<1x128xf32, #tpu.memory_space<vmem>>, %arg5: memref<1x128xf32, #tpu.memory_space<vmem>>, %arg6: memref<1xf32, #tpu.memory_space<smem>>, %arg7: memref<1x16x16x128xbf16, #tpu.memory_space<vmem>>) attributes {dimension_semantics = [#tpu.dimension_semantics<parallel>, #tpu.dimension_semantics<parallel>], iteration_bounds = array<i64: 2, 1>, scalar_prefetch = 0 : i64, scratch_operands = 0 : i64, tpu.core_type = #tpu.core_type<tc>, window_params = [{transform_indices = @transform_0, window_bounds = array<i64: 1, 18, 24, 4>}, {pipeline_mode = #tpu.pipeline_mode<synchronous>, transform_indices = @transform_1, window_bounds = array<i64: 3, 3, 4, 128>}, {pipeline_mode = #tpu.pipeline_mode<synchronous>, transform_indices = @transform_2, window_bounds = array<i64: 1, 128>}, {pipeline_mode = #tpu.pipeline_mode<synchronous>, transform_indices = @transform_3, window_bounds = array<i64: 1, 128>}, {transform_indices = @transform_4, window_bounds = array<i64: 1>}, {transform_indices = @transform_5, window_bounds = array<i64: 1, 16, 16, 128>}]} {
    %c16_i32 = arith.constant 16 : i32
    %0 = arith.muli %arg1, %c16_i32 : i32
    %c1_i32 = arith.constant 1 : i32
    %1 = arith.muli %0, %c1_i32 : i32
    %c0_i32 = arith.constant 0 : i32
    %2 = arith.addi %1, %c0_i32 : i32
    %cst = arith.constant 0.000000e+00 : f32
    %3 = vector.broadcast %cst : f32 to vector<256x128xf32>
    %c0_i32_0 = arith.constant 0 : i32
    %4 = arith.addi %2, %c0_i32_0 : i32
    %c0 = arith.constant 0 : index
    %5 = arith.index_cast %4 : i32 to index
    %c0_1 = arith.constant 0 : index
    %c0_2 = arith.constant 0 : index
    %6 = vector.load %arg2[%c0, %5, %c0_1, %c0_2] : memref<1x18x24x4xbf16, #tpu.memory_space<vmem>>, vector<1x16x16x4xbf16>
    %7 = vector.shape_cast %6 : vector<1x16x16x4xbf16> to vector<16x16x4xbf16>
    %8 = vector.shape_cast %7 : vector<16x16x4xbf16> to vector<256x4xbf16>
    %c0_3 = arith.constant 0 : index
    %c0_4 = arith.constant 0 : index
    %c0_5 = arith.constant 0 : index
    %c0_6 = arith.constant 0 : index
    %9 = vector.load %arg3[%c0_3, %c0_4, %c0_5, %c0_6] : memref<3x3x4x128xbf16, #tpu.memory_space<vmem>>, vector<1x1x4x128xbf16>
    %10 = vector.shape_cast %9 : vector<1x1x4x128xbf16> to vector<4x128xbf16>
    %cst_7 = arith.constant dense<0.000000e+00> : vector<256x128xf32>
    %11 = tpu.matmul %8, %10, %cst_7 {dimension_numbers = #tpu.dot_dimension_numbers<[1], [0], [0], [1], [0, 0, 1, 1], [], []>} : vector<256x4xbf16>, vector<4x128xbf16>, vector<256x128xf32> -> vector<256x128xf32>
    %12 = arith.addf %3, %11 : vector<256x128xf32>
    %c0_i32_8 = arith.constant 0 : i32
    %13 = arith.addi %2, %c0_i32_8 : i32
    %c0_9 = arith.constant 0 : index
    %14 = arith.index_cast %13 : i32 to index
    %c1 = arith.constant 1 : index
    %c0_10 = arith.constant 0 : index
    %15 = vector.load %arg2[%c0_9, %14, %c1, %c0_10] : memref<1x18x24x4xbf16, #tpu.memory_space<vmem>>, vector<1x16x16x4xbf16>
    %16 = vector.shape_cast %15 : vector<1x16x16x4xbf16> to vector<16x16x4xbf16>
    %17 = vector.shape_cast %16 : vector<16x16x4xbf16> to vector<256x4xbf16>
    %c0_11 = arith.constant 0 : index
    %c1_12 = arith.constant 1 : index
    %c0_13 = arith.constant 0 : index
    %c0_14 = arith.constant 0 : index
    %18 = vector.load %arg3[%c0_11, %c1_12, %c0_13, %c0_14] : memref<3x3x4x128xbf16, #tpu.memory_space<vmem>>, vector<1x1x4x128xbf16>
    %19 = vector.shape_cast %18 : vector<1x1x4x128xbf16> to vector<4x128xbf16>
    %cst_15 = arith.constant dense<0.000000e+00> : vector<256x128xf32>
    %20 = tpu.matmul %17, %19, %cst_15 {dimension_numbers = #tpu.dot_dimension_numbers<[1], [0], [0], [1], [0, 0, 1, 1], [], []>} : vector<256x4xbf16>, vector<4x128xbf16>, vector<256x128xf32> -> vector<256x128xf32>
    %21 = arith.addf %12, %20 : vector<256x128xf32>
    %c0_i32_16 = arith.constant 0 : i32
    %22 = arith.addi %2, %c0_i32_16 : i32
    %c0_17 = arith.constant 0 : index
    %23 = arith.index_cast %22 : i32 to index
    %c2 = arith.constant 2 : index
    %c0_18 = arith.constant 0 : index
    %24 = vector.load %arg2[%c0_17, %23, %c2, %c0_18] : memref<1x18x24x4xbf16, #tpu.memory_space<vmem>>, vector<1x16x16x4xbf16>
    %25 = vector.shape_cast %24 : vector<1x16x16x4xbf16> to vector<16x16x4xbf16>
    %26 = vector.shape_cast %25 : vector<16x16x4xbf16> to vector<256x4xbf16>
    %c0_19 = arith.constant 0 : index
    %c2_20 = arith.constant 2 : index
    %c0_21 = arith.constant 0 : index
    %c0_22 = arith.constant 0 : index
    %27 = vector.load %arg3[%c0_19, %c2_20, %c0_21, %c0_22] : memref<3x3x4x128xbf16, #tpu.memory_space<vmem>>, vector<1x1x4x128xbf16>
    %28 = vector.shape_cast %27 : vector<1x1x4x128xbf16> to vector<4x128xbf16>
    %cst_23 = arith.constant dense<0.000000e+00> : vector<256x128xf32>
    %29 = tpu.matmul %26, %28, %cst_23 {dimension_numbers = #tpu.dot_dimension_numbers<[1], [0], [0], [1], [0, 0, 1, 1], [], []>} : vector<256x4xbf16>, vector<4x128xbf16>, vector<256x128xf32> -> vector<256x128xf32>
    %30 = arith.addf %21, %29 : vector<256x128xf32>
    %c1_i32_24 = arith.constant 1 : i32
    %31 = arith.addi %2, %c1_i32_24 : i32
    %c0_25 = arith.constant 0 : index
    %32 = arith.index_cast %31 : i32 to index
    %c0_26 = arith.constant 0 : index
    %c0_27 = arith.constant 0 : index
    %33 = vector.load %arg2[%c0_25, %32, %c0_26, %c0_27] : memref<1x18x24x4xbf16, #tpu.memory_space<vmem>>, vector<1x16x16x4xbf16>
    %34 = vector.shape_cast %33 : vector<1x16x16x4xbf16> to vector<16x16x4xbf16>
    %35 = vector.shape_cast %34 : vector<16x16x4xbf16> to vector<256x4xbf16>
    %c1_28 = arith.constant 1 : index
    %c0_29 = arith.constant 0 : index
    %c0_30 = arith.constant 0 : index
    %c0_31 = arith.constant 0 : index
    %36 = vector.load %arg3[%c1_28, %c0_29, %c0_30, %c0_31] : memref<3x3x4x128xbf16, #tpu.memory_space<vmem>>, vector<1x1x4x128xbf16>
    %37 = vector.shape_cast %36 : vector<1x1x4x128xbf16> to vector<4x128xbf16>
    %cst_32 = arith.constant dense<0.000000e+00> : vector<256x128xf32>
    %38 = tpu.matmul %35, %37, %cst_32 {dimension_numbers = #tpu.dot_dimension_numbers<[1], [0], [0], [1], [0, 0, 1, 1], [], []>} : vector<256x4xbf16>, vector<4x128xbf16>, vector<256x128xf32> -> vector<256x128xf32>
    %39 = arith.addf %30, %38 : vector<256x128xf32>
    %c1_i32_33 = arith.constant 1 : i32
    %40 = arith.addi %2, %c1_i32_33 : i32
    %c0_34 = arith.constant 0 : index
    %41 = arith.index_cast %40 : i32 to index
    %c1_35 = arith.constant 1 : index
    %c0_36 = arith.constant 0 : index
    %42 = vector.load %arg2[%c0_34, %41, %c1_35, %c0_36] : memref<1x18x24x4xbf16, #tpu.memory_space<vmem>>, vector<1x16x16x4xbf16>
    %43 = vector.shape_cast %42 : vector<1x16x16x4xbf16> to vector<16x16x4xbf16>
    %44 = vector.shape_cast %43 : vector<16x16x4xbf16> to vector<256x4xbf16>
    %c1_37 = arith.constant 1 : index
    %c1_38 = arith.constant 1 : index
    %c0_39 = arith.constant 0 : index
    %c0_40 = arith.constant 0 : index
    %45 = vector.load %arg3[%c1_37, %c1_38, %c0_39, %c0_40] : memref<3x3x4x128xbf16, #tpu.memory_space<vmem>>, vector<1x1x4x128xbf16>
    %46 = vector.shape_cast %45 : vector<1x1x4x128xbf16> to vector<4x128xbf16>
    %cst_41 = arith.constant dense<0.000000e+00> : vector<256x128xf32>
    %47 = tpu.matmul %44, %46, %cst_41 {dimension_numbers = #tpu.dot_dimension_numbers<[1], [0], [0], [1], [0, 0, 1, 1], [], []>} : vector<256x4xbf16>, vector<4x128xbf16>, vector<256x128xf32> -> vector<256x128xf32>
    %48 = arith.addf %39, %47 : vector<256x128xf32>
    %c1_i32_42 = arith.constant 1 : i32
    %49 = arith.addi %2, %c1_i32_42 : i32
    %c0_43 = arith.constant 0 : index
    %50 = arith.index_cast %49 : i32 to index
    %c2_44 = arith.constant 2 : index
    %c0_45 = arith.constant 0 : index
    %51 = vector.load %arg2[%c0_43, %50, %c2_44, %c0_45] : memref<1x18x24x4xbf16, #tpu.memory_space<vmem>>, vector<1x16x16x4xbf16>
    %52 = vector.shape_cast %51 : vector<1x16x16x4xbf16> to vector<16x16x4xbf16>
    %53 = vector.shape_cast %52 : vector<16x16x4xbf16> to vector<256x4xbf16>
    %c1_46 = arith.constant 1 : index
    %c2_47 = arith.constant 2 : index
    %c0_48 = arith.constant 0 : index
    %c0_49 = arith.constant 0 : index
    %54 = vector.load %arg3[%c1_46, %c2_47, %c0_48, %c0_49] : memref<3x3x4x128xbf16, #tpu.memory_space<vmem>>, vector<1x1x4x128xbf16>
    %55 = vector.shape_cast %54 : vector<1x1x4x128xbf16> to vector<4x128xbf16>
    %cst_50 = arith.constant dense<0.000000e+00> : vector<256x128xf32>
    %56 = tpu.matmul %53, %55, %cst_50 {dimension_numbers = #tpu.dot_dimension_numbers<[1], [0], [0], [1], [0, 0, 1, 1], [], []>} : vector<256x4xbf16>, vector<4x128xbf16>, vector<256x128xf32> -> vector<256x128xf32>
    %57 = arith.addf %48, %56 : vector<256x128xf32>
    %c2_i32 = arith.constant 2 : i32
    %58 = arith.addi %2, %c2_i32 : i32
    %c0_51 = arith.constant 0 : index
    %59 = arith.index_cast %58 : i32 to index
    %c0_52 = arith.constant 0 : index
    %c0_53 = arith.constant 0 : index
    %60 = vector.load %arg2[%c0_51, %59, %c0_52, %c0_53] : memref<1x18x24x4xbf16, #tpu.memory_space<vmem>>, vector<1x16x16x4xbf16>
    %61 = vector.shape_cast %60 : vector<1x16x16x4xbf16> to vector<16x16x4xbf16>
    %62 = vector.shape_cast %61 : vector<16x16x4xbf16> to vector<256x4xbf16>
    %c2_54 = arith.constant 2 : index
    %c0_55 = arith.constant 0 : index
    %c0_56 = arith.constant 0 : index
    %c0_57 = arith.constant 0 : index
    %63 = vector.load %arg3[%c2_54, %c0_55, %c0_56, %c0_57] : memref<3x3x4x128xbf16, #tpu.memory_space<vmem>>, vector<1x1x4x128xbf16>
    %64 = vector.shape_cast %63 : vector<1x1x4x128xbf16> to vector<4x128xbf16>
    %cst_58 = arith.constant dense<0.000000e+00> : vector<256x128xf32>
    %65 = tpu.matmul %62, %64, %cst_58 {dimension_numbers = #tpu.dot_dimension_numbers<[1], [0], [0], [1], [0, 0, 1, 1], [], []>} : vector<256x4xbf16>, vector<4x128xbf16>, vector<256x128xf32> -> vector<256x128xf32>
    %66 = arith.addf %57, %65 : vector<256x128xf32>
    %c2_i32_59 = arith.constant 2 : i32
    %67 = arith.addi %2, %c2_i32_59 : i32
    %c0_60 = arith.constant 0 : index
    %68 = arith.index_cast %67 : i32 to index
    %c1_61 = arith.constant 1 : index
    %c0_62 = arith.constant 0 : index
    %69 = vector.load %arg2[%c0_60, %68, %c1_61, %c0_62] : memref<1x18x24x4xbf16, #tpu.memory_space<vmem>>, vector<1x16x16x4xbf16>
    %70 = vector.shape_cast %69 : vector<1x16x16x4xbf16> to vector<16x16x4xbf16>
    %71 = vector.shape_cast %70 : vector<16x16x4xbf16> to vector<256x4xbf16>
    %c2_63 = arith.constant 2 : index
    %c1_64 = arith.constant 1 : index
    %c0_65 = arith.constant 0 : index
    %c0_66 = arith.constant 0 : index
    %72 = vector.load %arg3[%c2_63, %c1_64, %c0_65, %c0_66] : memref<3x3x4x128xbf16, #tpu.memory_space<vmem>>, vector<1x1x4x128xbf16>
    %73 = vector.shape_cast %72 : vector<1x1x4x128xbf16> to vector<4x128xbf16>
    %cst_67 = arith.constant dense<0.000000e+00> : vector<256x128xf32>
    %74 = tpu.matmul %71, %73, %cst_67 {dimension_numbers = #tpu.dot_dimension_numbers<[1], [0], [0], [1], [0, 0, 1, 1], [], []>} : vector<256x4xbf16>, vector<4x128xbf16>, vector<256x128xf32> -> vector<256x128xf32>
    %75 = arith.addf %66, %74 : vector<256x128xf32>
    %c2_i32_68 = arith.constant 2 : i32
    %76 = arith.addi %2, %c2_i32_68 : i32
    %c0_69 = arith.constant 0 : index
    %77 = arith.index_cast %76 : i32 to index
    %c2_70 = arith.constant 2 : index
    %c0_71 = arith.constant 0 : index
    %78 = vector.load %arg2[%c0_69, %77, %c2_70, %c0_71] : memref<1x18x24x4xbf16, #tpu.memory_space<vmem>>, vector<1x16x16x4xbf16>
    %79 = vector.shape_cast %78 : vector<1x16x16x4xbf16> to vector<16x16x4xbf16>
    %80 = vector.shape_cast %79 : vector<16x16x4xbf16> to vector<256x4xbf16>
    %c2_72 = arith.constant 2 : index
    %c2_73 = arith.constant 2 : index
    %c0_74 = arith.constant 0 : index
    %c0_75 = arith.constant 0 : index
    %81 = vector.load %arg3[%c2_72, %c2_73, %c0_74, %c0_75] : memref<3x3x4x128xbf16, #tpu.memory_space<vmem>>, vector<1x1x4x128xbf16>
    %82 = vector.shape_cast %81 : vector<1x1x4x128xbf16> to vector<4x128xbf16>
    %cst_76 = arith.constant dense<0.000000e+00> : vector<256x128xf32>
    %83 = tpu.matmul %80, %82, %cst_76 {dimension_numbers = #tpu.dot_dimension_numbers<[1], [0], [0], [1], [0, 0, 1, 1], [], []>} : vector<256x4xbf16>, vector<4x128xbf16>, vector<256x128xf32> -> vector<256x128xf32>
    %84 = arith.addf %75, %83 : vector<256x128xf32>
    %c0_77 = arith.constant 0 : index
    %c0_78 = arith.constant 0 : index
    %85 = vector.load %arg4[%c0_77, %c0_78] : memref<1x128xf32, #tpu.memory_space<vmem>>, vector<1x128xf32>
    %86 = vector.broadcast %85 : vector<1x128xf32> to vector<256x128xf32>
    %87 = arith.mulf %84, %86 : vector<256x128xf32>
    %c0_79 = arith.constant 0 : index
    %c0_80 = arith.constant 0 : index
    %88 = vector.load %arg5[%c0_79, %c0_80] : memref<1x128xf32, #tpu.memory_space<vmem>>, vector<1x128xf32>
    %89 = vector.broadcast %88 : vector<1x128xf32> to vector<256x128xf32>
    %90 = arith.addf %87, %89 : vector<256x128xf32>
    %cst_81 = arith.constant 0.000000e+00 : f32
    %91 = vector.broadcast %cst_81 : f32 to vector<256x128xf32>
    %92 = arith.cmpf oge, %90, %91 : vector<256x128xf32>
    %c0_82 = arith.constant 0 : index
    %93 = memref.load %arg6[%c0_82] : memref<1xf32, #tpu.memory_space<smem>>
    %94 = vector.broadcast %93 : f32 to vector<256x128xf32>
    %95 = arith.mulf %94, %90 : vector<256x128xf32>
    %96 = arith.select %92, %90, %95 : vector<256x128xi1>, vector<256x128xf32>
    %97 = vector.shape_cast %96 : vector<256x128xf32> to vector<16x16x128xf32>
    %98 = arith.truncf %97 : vector<16x16x128xf32> to vector<16x16x128xbf16>
    %c0_83 = arith.constant 0 : index
    %c0_84 = arith.constant 0 : index
    %c0_85 = arith.constant 0 : index
    %c0_86 = arith.constant 0 : index
    %99 = vector.load %arg7[%c0_83, %c0_84, %c0_85, %c0_86] : memref<1x16x16x128xbf16, #tpu.memory_space<vmem>>, vector<1x16x16x128xbf16>
    %100 = vector.shape_cast %99 : vector<1x16x16x128xbf16> to vector<16x16x128xbf16>
    %101 = vector.shape_cast %98 : vector<16x16x128xbf16> to vector<1x16x16x128xbf16>
    tpu.vector_store %arg7[%c0_83, %c0_84, %c0_85, %c0_86], %101 {strides = array<i32>} : memref<1x16x16x128xbf16, #tpu.memory_space<vmem>>, vector<1x16x16x128xbf16>,
    return
  }
  func.func @transform_0(%arg0: i32, %arg1: i32) -> (i32, i32, i32, i32) {
    %c0_i32 = arith.constant 0 : i32
    %c0_i32_0 = arith.constant 0 : i32
    %c0_i32_1 = arith.constant 0 : i32
    %c0_i32_2 = arith.constant 0 : i32
    return %arg0, %c0_i32, %c0_i32_0, %c0_i32_1 : i32, i32, i32, i32
  }
  func.func @transform_1(%arg0: i32, %arg1: i32) -> (i32, i32, i32, i32) {
    %c0_i32 = arith.constant 0 : i32
    %c0_i32_0 = arith.constant 0 : i32
    %c0_i32_1 = arith.constant 0 : i32
    %c0_i32_2 = arith.constant 0 : i32
    %c0_i32_3 = arith.constant 0 : i32
    return %c0_i32, %c0_i32_0, %c0_i32_1, %c0_i32_2 : i32, i32, i32, i32
  }
  func.func @transform_2(%arg0: i32, %arg1: i32) -> (i32, i32) {
    %c0_i32 = arith.constant 0 : i32
    %c0_i32_0 = arith.constant 0 : i32
    %c0_i32_1 = arith.constant 0 : i32
    return %c0_i32, %c0_i32_0 : i32, i32
  }
  func.func @transform_3(%arg0: i32, %arg1: i32) -> (i32, i32) {
    %c0_i32 = arith.constant 0 : i32
    %c0_i32_0 = arith.constant 0 : i32
    %c0_i32_1 = arith.constant 0 : i32
    return %c0_i32, %c0_i32_0 : i32, i32
  }
  func.func @transform_4(%arg0: i32, %arg1: i32) -> i32 {
    %c0_i32 = arith.constant 0 : i32
    %c0_i32_0 = arith.constant 0 : i32
    return %c0_i32 : i32
  }
  func.func @transform_5(%arg0: i32, %arg1: i32) -> (i32, i32, i32, i32) {
    %c0_i32 = arith.constant 0 : i32
    %c0_i32_0 = arith.constant 0 : i32
    %c0_i32_1 = arith.constant 0 : i32
    return %arg0, %arg1, %c0_i32, %c0_i32_0 : i32, i32, i32, i32
  }
}

</mosaic_0001>

<bundles_post_ra>
// kernel: tpu_custom_call.1
= control target key start
LH: loop header
LB: loop body
LE: loop exit
PB: predicated region body
PF: predicated region fallthrough
CT: control target
= control target key end

     0   :  { %s7034_s0 = inlined_call_operand.vmem [shape: bf16[2,18,24,4], index: 0, kind: input, shape index: {}]   ;;  %s7035_s1 = inlined_call_operand.vmem [shape: bf16[3,3,4,128], index: 1, kind: input, shape index: {}]   ;;  %s7036_s2 = inlined_call_operand.vmem [shape: f32[1,128], index: 2, kind: input, shape index: {}]   ;;  %s7037_s3 = inlined_call_operand.vmem [shape: f32[1,128], index: 3, kind: input, shape index: {}]   ;;  %s7038_s4 = inlined_call_operand.<no memory space> [shape: f32[1], index: 4, kind: input, shape index: {}]   ;;  %s7039_s5 = inlined_call_operand.hbm [shape: bf16[2,16,16,128], index: 5, kind: output, shape index: {}]  }
   0x1   :  { %10 = sst [smem:[#allocation2]] %s7038_s4 }
   0x2   :  { %11 = vsyncpa [#allocation4], 0 }
   0x3   :  { %13 = vsyncpa [#allocation4 + $0x1], 0  ;;  %s5467_s20 = smov 0   ;;  %s5469_s21 = smov 0  }
   0x4   :  { %s5471_s22 = smov 0   ;;  %s5473_s23 = smov 0  }
   0x5   :  { %s5475_s24 = smov 0   ;;  %s5477_s25 = smov 0  }
   0x6 LB: > { %s4497_s4 = sadd.s32 4294967295, %s5430_s25   ;;  %s4498_s26 = sadd.s32 4294967294, %s5430_s25   ;;  %s5430_s25 = sphi %s5477_s25, %s19_s25   ;;  %s5426_s24 = sphi %s5475_s24, %s7060_s24   ;;  %s5422_s23 = sphi %s5473_s23, %s7059_s23   ;;  %s5418_s22 = sphi %s5471_s22, %s7058_s22   ;;  %s5414_s21 = sphi %s5469_s21, %s7057_s21   ;;  %s5410_s20 = sphi %s5467_s20, %s7056_s20  }
   0x7   : > { %s31_s27 = sadd.s32 1, %s5426_s24  ;;  %s150_s28 = sadd.s32 1, %s5418_s22 }
   0x8   : > { %p33_p0 = scmp.ge.s32.totalorder %s31_s27, 2  ;;  %p160_p1 = scmp.ne.s32.totalorder %s5418_s22, %s5414_s21 }
   0x9   : > { %p161_p2 = scmp.eq.s32.totalorder %s4497_s4, 1  ;;  %p166_p3 = scmp.ne.s32.totalorder %s5414_s21, %s5410_s20 }
   0xa   : > { %s7062_s27 = smov (%p33_p0, %s31_s27), 0  ;;  %p167_p5 = scmp.eq.s32.totalorder %s4498_s26, 1 }
   0xb   : > { %p5507_p4 = por %p161_p2, %p160_p1  ;;  %s145_s30 = ssub.s32 %s5426_s24, %s7062_s27 }
   0xc   : > { %p4501_p6 = scmp.ge.s32.totalorder %s5430_s25, 1  ;;  %p148_p7 = scmp.eq.s32.totalorder %s145_s30, 0 }
   0xd   : > { %p5514_p8 = por %p167_p5, %p166_p3  ;;  %p205_p9 = scmp.lt.s32.totalorder %s5430_s25, 3 }
   0xe   : > { %s5520_s7 = scalar_select %p148_p7, %s5418_s22, %s150_s28  }
   0xf   : > { %p206_p10 = pnand %p4501_p6, %p205_p9 }
  0x11   : > { %209 = sbr.rel (%p206_p10) target bundleno = 778 (0x30a), region = 40 }
  0x16   : > { %v4504_v0 = vld [vmem:[%s7035_s1 + $0x2] sm:$0x3]  ;;  %vm779_vm0 = vcmask 1041408   ;;  %p233_p11 = scmp.lt.s32.totalorder %s5422_s23, 1  ;;  %v4617_v2 = vld [vmem:[%s7035_s1 + $0x4] sm:$0x3] }
  0x17   : > { %v781_v1 = vsel %vm779_vm0, %v4504_v0, 0  ;;  %v1354_v3 = vsel %vm779_vm0, %v4617_v2, 0  ;;  %v4666_v4 = vld [vmem:[%s7035_s1 + $0x6] sm:$0x3]  ;;  %v276_v5 = vld [vmem:[%s7035_s1] sm:$0x3] }
  0x18   : > { %5237 = vmatpush.bf16.msra.mxu1 %v781_v1  ;;  %5238 = vmatpush.bf16.msra.mxu2 %v781_v1  ;;  %s234_s12 = scalar_select %p233_p11, %s5422_s23, 1  ;;  %v4795_v6 = vld [vmem:[%s7035_s1 + $0x8] sm:$0x3]  ;;  %v1644_v7 = vsel %vm779_vm0, %v4666_v4, 0  ;;  %v1001_v8 = vsel %vm779_vm0, %v276_v5, 0  ;;  %vm730_vm4 = vcmask 31744  }
  0x19   : > { %5239 = vmatpush.bf16.msra.mxu3 %v781_v1  ;;  %790 = vmatpush.bf16.msra.mxu0 %v781_v1  ;;  %v2298_v9 = vsel %vm779_vm0, %v4795_v6, 0  ;;  %vm293_vm1 = vsmask.f32 3328  ;;  %vm294_vm2 = vsmask.f32 7440  ;;  %vm1140_vm5 = vcmask 1042432  }
  0x1a   : > { %s5240_s19 = smul.u32 216, %s234_s12  ;;  %vm5559_vm3 = vmor %vm293_vm1, %vm294_vm2  ;;  %vm1141_vm6 = vcmask 1046532   ;;  %s6614_s17 = sld [smem:[#allocation2]] }
  0x1b   : > { %vm5733_vm7 = vmor %vm1140_vm5, %vm1141_vm6  ;;  %s230_s4 = sand.u32 1, %s5414_s21   ;;  %s5141_s11 = sshll.u32 %s5422_s23, 7 }
  0x1c   : > { %1363 = vmatpush.bf16.msrb.mxu2 %v1354_v3  ;;  %1010 = vmatpush.bf16.msrb.mxu1 %v1001_v8  ;;  %s5547_s28 = scalar_lea.vmem %s7034_s0, %s5240_s19  ;;  %s6658_s26 = sshll.u32 %s230_s4, 7 }
  0x1d   : > { %1653 = vmatpush.bf16.msrb.mxu3 %v1644_v7  ;;  %2307 = vmatpush.bf16.msrb.mxu0 %v2298_v9  ;;  %v252_v10 = vld [vmem:[%s5547_s28 + $0x30] sm:$0xf]  ;;  %v253_v11 = vld [vmem:[%s5547_s28 + $0x34] sm:$0xf]  ;;  %v281_v12 = vld [vmem:[%s5547_s28 + $0x38] sm:$0x1]  ;;  %s4410_s14 = scalar_lea.hbm %s7039_s5, %s5141_s11 }
  0x1e   : > { %v393_v13 = vshrl.u32 %v252_v10, 16  ;;  %v396_v14 = vshll.u32 %v252_v10, 16  ;;  %v402_v15 = vshll.u32 %v253_v11, 16  ;;  %v406_v16 = vshrl.u32 %v253_v11, 16  ;;  %v260_v17 = vld [vmem:[%s5547_s28 + $0x60] sm:$0xf] }
  0x1f   : > { %v412_v18 = vshll.u32 %v281_v12, 16  ;;  %v261_v19 = vld [vmem:[%s5547_s28 + $0x64] sm:$0xf]  ;;  %v285_v20 = vld [vmem:[%s5547_s28 + $0x68] sm:$0x1]  ;;  %v489_v21 = vshrl.u32 %v260_v17, 16 }
  0x20   : > { %v395_v22 = vrot.slane %v393_v13, 4  ;;  %v398_v23 = vrot.slane %v396_v14, 5  ;;  %v404_v24 = vrot.slane %v402_v15, 5  ;;  %v408_v25 = vrot.slane %v406_v16, 4  ;;  %v268_v26 = vld [vmem:[%s5547_s28 + $0x90] sm:$0xf] }
  0x21   : > { %v414_v27 = vrot.slane %v412_v18, 5  ;;  %v491_v28 = vrot.slane %v489_v21, 4  ;;  %v492_v29 = vshll.u32 %v260_v17, 16  ;;  %v498_v30 = vshll.u32 %v261_v19, 16  ;;  %v269_v35 = vld [vmem:[%s5547_s28 + $0x94] sm:$0xf] }
  0x22   : > { %v399_v31 = vor.u32 %v398_v23, %v395_v22  ;;  %v409_v32 = vor.u32 %v408_v25, %v404_v24  ;;  %v502_v33 = vshrl.u32 %v261_v19, 16  ;;  %v508_v34 = vshll.u32 %v285_v20, 16  ;;  %v289_v45 = vld [vmem:[%s5547_s28 + $0x98] sm:$0x1]  ;;  %v244_v61 = vld [vmem:[%s5547_s28] sm:$0xf] }
  0x23   : > { %v494_v37 = vrot.slane %v492_v29, 5  ;;  %v500_v38 = vrot.slane %v498_v30, 5  ;;  %v585_v39 = vshrl.u32 %v268_v26, 16  ;;  %v588_v47 = vshll.u32 %v268_v26, 16  ;;  %v5572_v1 = vld [vmem:[%s5547_s28 + $0x4] sm:$0xf] }
  0x24   : > { %v400_v40 = vrot.slane %v399_v31, 4  ;;  %v410_v41 = vrot.slane %v409_v32, 4  ;;  %v504_v42 = vrot.slane %v502_v33, 4  ;;  %v510_v43 = vrot.slane %v508_v34, 5  ;;  %v5575_v2 = vld [vmem:[%s5547_s28 + $0x8] sm:$0x1] }
  0x25   : > { %v495_v44 = vor.u32 %v494_v37, %v491_v28  ;;  %v587_v46 = vrot.slane %v585_v39, 4  ;;  %v594_v48 = vshll.u32 %v269_v35, 16  ;;  %v598_v52 = vshrl.u32 %v269_v35, 16  ;;  %v254_v19 = vld [vmem:[%s5547_s28 + $0x3c] sm:$0xf]  ;;  %s6680_s30 = scalar_lea.vmem [#allocation3], %s6658_s26 }
  0x26   : > { %v405_v49 = vsel %vm5559_vm3, %v400_v40, %v404_v24  ;;  %v415_v50 = vsel %vm5559_vm3, %v410_v41, %v414_v27  ;;  %v505_v51 = vor.u32 %v504_v42, %v500_v38  ;;  %v590_v56 = vrot.slane %v588_v47, 5  ;;  %v5587_v20 = vld [vmem:[%s5547_s28 + $0x40] sm:$0xf]  ;;  %v5592_v25 = vld [vmem:[%s5547_s28 + $0x44] sm:$0x1]  ;;  %s4411_s15 = sshll.u32 %s6680_s30, 4  ;;  %s4412_s15 = int_to_ptr.vmem [resolvable:$true] %s4411_s15 }
  0x27   : > { %v690_v53 = vunpack.c.l.b16 %v405_v49  ;;  %v691_v54 = vunpack.c.l.b16 %v415_v50  ;;  %v496_v55 = vrot.slane %v495_v44, 4  ;;  %v596_v58 = vrot.slane %v594_v48, 5  ;;  %v262_v33 = vld [vmem:[%s5547_s28 + $0x6c] sm:$0xf]  ;;  %v286_v47 = vld [vmem:[%s5547_s28 + $0x74] sm:$0x1] }
  0x28   : > { %v506_v57 = vrot.slane %v505_v51, 4  ;;  %v600_v59 = vrot.slane %v598_v52, 4  ;;  %v604_v60 = vshll.u32 %v289_v45, 16  ;;  %v591_v0 = vor.u32 %v590_v56, %v587_v46  ;;  %s4413_s16 = sshll.u32 %s4410_s14, 4  ;;  %s4396_s23 = scalar_lea.sflag [#allocation4], %s230_s4  ;;  %s4414_s16 = int_to_ptr.hbm [resolvable:$true] %s4413_s16 }
  0x29   : > { %v718_v62 = vpack.c.b16 %v691_v54, %v690_v53  ;;  %v501_v63 = vsel %vm5559_vm3, %v496_v55, %v500_v38  ;;  %v297_v9 = vshrl.u32 %v244_v61, 16  ;;  %v300_v10 = vshll.u32 %v244_v61, 16  ;;  %v270_v61 = vld [vmem:[%s5547_s28 + $0x9c] sm:$0xf] }
  0x2a   : > { %v511_v3 = vsel %vm5559_vm3, %v506_v57, %v510_v43  ;;  %v698_v4 = vunpack.c.l.b16 %v501_v63  ;;  %v601_v5 = vor.u32 %v600_v59, %v596_v58  ;;  %v606_v6 = vrot.slane %v604_v60, 5  ;;  %v263_v43 = vld [vmem:[%s5547_s28 + $0x70] sm:$0xf] }
  0x2b   : > { %4509 = vmatmul.msk.bf16.vlgmr.msra.gmra.mxu1 %vm730_vm4, %v718_v62  ;;  %v699_v7 = vunpack.c.l.b16 %v511_v3  ;;  %v592_v8 = vrot.slane %v591_v0, 4  ;;  %v306_v12 = vshll.u32 %v5572_v1, 16  ;;  %v310_v13 = vshrl.u32 %v5572_v1, 16  ;;  %v271_v3 = vld [vmem:[%s5547_s28 + $0xa0] sm:$0xf] }
  0x2c   : > { %v602_v11 = vrot.slane %v601_v5, 4  ;;  %v316_v14 = vshll.u32 %v5575_v2, 16  ;;  %v299_v17 = vrot.slane %v297_v9, 4  ;;  %v302_v18 = vrot.slane %v300_v10, 5 }
  0x2d   : > { %v722_v15 = vpack.c.b16 %v699_v7, %v698_v4  ;;  %v597_v16 = vsel %vm5559_vm3, %v592_v8, %v596_v58  ;;  %v308_v23 = vrot.slane %v306_v12, 5  ;;  %v312_v24 = vrot.slane %v310_v13, 4  ;;  %v290_v8 = vld [vmem:[%s5547_s28 + $0xa4] sm:$0x1] }
  0x2e   : > { %v607_v21 = vsel %vm5559_vm3, %v602_v11, %v606_v6  ;;  %v706_v22 = vunpack.c.l.b16 %v597_v16  ;;  %v303_v27 = vor.u32 %v302_v18, %v299_v17  ;;  %v318_v28 = vrot.slane %v316_v14, 5 }
  0x2f   : > { %4513 = vmatmul.msk.bf16.vlgmr.msra.gmra.mxu2 %vm730_vm4, %v722_v15  ;;  %v707_v26 = vunpack.c.l.b16 %v607_v21  ;;  %v313_v29 = vor.u32 %v312_v24, %v308_v23  ;;  %v417_v30 = vshrl.u32 %v254_v19, 16  ;;  %v420_v31 = vshll.u32 %v254_v19, 16 }
  0x30   : > { %v426_v32 = vshll.u32 %v5587_v20, 16  ;;  %v304_v35 = vrot.slane %v303_v27, 4  ;;  %v430_v37 = vshrl.u32 %v5587_v20, 16  ;;  %v436_v38 = vshll.u32 %v5592_v25, 16 }
  0x31   : > { %v726_v34 = vpack.c.b16 %v707_v26, %v706_v22  ;;  %v314_v39 = vrot.slane %v313_v29, 4  ;;  %v419_v40 = vrot.slane %v417_v30, 4  ;;  %v422_v41 = vrot.slane %v420_v31, 5  ;;  %v246_v22 = vld [vmem:[%s5547_s28 + $0xc] sm:$0xf] }
  0x32   : > { %v428_v42 = vrot.slane %v426_v32, 5  ;;  %v309_v44 = vsel %vm5559_vm3, %v304_v35, %v308_v23  ;;  %v432_v45 = vrot.slane %v430_v37, 4  ;;  %v438_v46 = vrot.slane %v436_v38, 5  ;;  %v5621_v32 = vld [vmem:[%s5547_s28 + $0x14] sm:$0x1] }
  0x33   : > { %4517 = vmatmul.msk.bf16.vlgmr.msra.gmra.mxu3 %vm730_vm4, %v726_v34  ;;  %v513_v48 = vshrl.u32 %v262_v33, 16  ;;  %v319_v49 = vsel %vm5559_vm3, %v314_v39, %v318_v28  ;;  %v682_v50 = vunpack.c.l.b16 %v309_v44  ;;  %v423_v51 = vor.u32 %v422_v41, %v419_v40  ;;  %v5618_v28 = vld [vmem:[%s5547_s28 + $0x10] sm:$0xf] }
  0x34   : > { %v516_v52 = vshll.u32 %v262_v33, 16  ;;  %v683_v53 = vunpack.c.l.b16 %v319_v49  ;;  %v433_v54 = vor.u32 %v432_v45, %v428_v42  ;;  %v522_v56 = vshll.u32 %v263_v43, 16 }
  0x35   : > { %v515_v55 = vrot.slane %v513_v48, 4  ;;  %v424_v57 = vrot.slane %v423_v51, 4  ;;  %v526_v59 = vshrl.u32 %v263_v43, 16  ;;  %v532_v60 = vshll.u32 %v286_v47, 16  ;;  %v5631_v47 = vld [vmem:[%s5547_s28 + $0x4c] sm:$0xf] }
  0x36   : > { %v518_v58 = vrot.slane %v516_v52, 5  ;;  %v714_v62 = vpack.c.b16 %v683_v53, %v682_v50  ;;  %v434_v63 = vrot.slane %v433_v54, 4  ;;  %v524_v0 = vrot.slane %v522_v56, 5  ;;  %v5636_v56 = vld [vmem:[%s5547_s28 + $0x50] sm:$0x1] }
  0x37   : > { %v429_v4 = vsel %vm5559_vm3, %v424_v57, %v428_v42  ;;  %v528_v6 = vrot.slane %v526_v59, 4  ;;  %v534_v7 = vrot.slane %v532_v60, 5  ;;  %v609_v11 = vshrl.u32 %v270_v61, 16  ;;  %v256_v42 = vld [vmem:[%s5547_s28 + $0x48] sm:$0xf] }
  0x38   : > { %v519_v5 = vor.u32 %v518_v58, %v515_v55  ;;  %4505 = vmatmul.msk.bf16.vlgmr.msra.gmra.mxu0 %vm730_vm4, %v714_v62  ;;  %v439_v9 = vsel %vm5559_vm3, %v434_v63, %v438_v46  ;;  %v692_v10 = vunpack.c.l.b16 %v429_v4  ;;  %v612_v12 = vshll.u32 %v270_v61, 16 }
  0x39   : > { %v693_v13 = vunpack.c.l.b16 %v439_v9  ;;  %v529_v15 = vor.u32 %v528_v6, %v524_v0  ;;  %v618_v16 = vshll.u32 %v271_v3, 16  ;;  %v611_v17 = vrot.slane %v609_v11, 4 }
  0x3a   : > { %v520_v14 = vrot.slane %v519_v5, 4  ;;  %v614_v18 = vrot.slane %v612_v12, 5  ;;  %v622_v19 = vshrl.u32 %v271_v3, 16  ;;  %v628_v21 = vshll.u32 %v290_v8, 16  ;;  %v264_v3 = vld [vmem:[%s5547_s28 + $0x78] sm:$0xf] }
  0x3b   : > { %v719_v23 = vpack.c.b16 %v693_v13, %v692_v10  ;;  %v530_v26 = vrot.slane %v529_v15, 4  ;;  %v620_v27 = vrot.slane %v618_v16, 5  ;;  %v321_v35 = vshrl.u32 %v246_v22, 16  ;;  %v265_v8 = vld [vmem:[%s5547_s28 + $0x7c] sm:$0xf] }
  0x3c   : > { %v525_v24 = vsel %vm5559_vm3, %v520_v14, %v524_v0  ;;  %v615_v30 = vor.u32 %v614_v18, %v611_v17  ;;  %v624_v31 = vrot.slane %v622_v19, 4  ;;  %v630_v34 = vrot.slane %v628_v21, 5  ;;  %v287_v16 = vld [vmem:[%s5547_s28 + $0x80] sm:$0x1] }
  0x3d   : > { %v700_v29 = vunpack.c.l.b16 %v525_v24  ;;  %4510 = vmatmul.msk.bf16.gmra.mxu1 %vm730_vm4, %v719_v23  ;;  %v535_v33 = vsel %vm5559_vm3, %v530_v26, %v534_v7  ;;  %v324_v37 = vshll.u32 %v246_v22, 16  ;;  %v330_v41 = vshll.u32 %v5618_v28, 16 }
  0x3e   : > { %v701_v38 = vunpack.c.l.b16 %v535_v33  ;;  %v616_v39 = vrot.slane %v615_v30, 4  ;;  %v625_v40 = vor.u32 %v624_v31, %v620_v27  ;;  %v323_v43 = vrot.slane %v321_v35, 4 }
  0x3f   : > { %v326_v44 = vrot.slane %v324_v37, 5  ;;  %v334_v45 = vshrl.u32 %v5618_v28, 16  ;;  %v340_v46 = vshll.u32 %v5621_v32, 16  ;;  %v332_v51 = vrot.slane %v330_v41, 5 }
  0x40   : > { %v723_v48 = vpack.c.b16 %v701_v38, %v700_v29  ;;  %v621_v49 = vsel %vm5559_vm3, %v616_v39, %v620_v27  ;;  %v626_v50 = vrot.slane %v625_v40, 4  ;;  %v441_v58 = vshrl.u32 %v256_v42, 16  ;;  %v273_v39 = vld [vmem:[%s5547_s28 + $0xac] sm:$0xf]  ;;  %v291_v40 = vld [vmem:[%s5547_s28 + $0xb0] sm:$0x1] }
  0x41   : > { %v708_v52 = vunpack.c.l.b16 %v621_v49  ;;  %v327_v53 = vor.u32 %v326_v44, %v323_v43  ;;  %v336_v54 = vrot.slane %v334_v45, 4  ;;  %v342_v55 = vrot.slane %v340_v46, 5 }
  0x42   : > { %4514 = vmatmul.msk.bf16.gmra.mxu2 %vm730_vm4, %v723_v48  ;;  %v631_v57 = vsel %vm5559_vm3, %v626_v50, %v630_v34  ;;  %v444_v59 = vshll.u32 %v256_v42, 16  ;;  %v450_v60 = vshll.u32 %v5631_v47, 16  ;;  %v454_v0 = vshrl.u32 %v5631_v47, 16  ;;  %v272_v34 = vld [vmem:[%s5547_s28 + $0xa8] sm:$0xf] }
  0x43   : > { %v709_v61 = vunpack.c.l.b16 %v631_v57  ;;  %v328_v62 = vrot.slane %v327_v53, 4  ;;  %v337_v63 = vor.u32 %v336_v54, %v332_v51  ;;  %v443_v4 = vrot.slane %v441_v58, 4 }
  0x44   : > { %v446_v5 = vrot.slane %v444_v59, 5  ;;  %v452_v6 = vrot.slane %v450_v60, 5  ;;  %v460_v7 = vshll.u32 %v5636_v56, 16  ;;  %v456_v12 = vrot.slane %v454_v0, 4  ;;  %v248_v59 = vld [vmem:[%s5547_s28 + $0x18] sm:$0xf] }
  0x45   : > { %v727_v9 = vpack.c.b16 %v709_v61, %v708_v52  ;;  %v333_v10 = vsel %vm5559_vm3, %v328_v62, %v332_v51  ;;  %v338_v11 = vrot.slane %v337_v63, 4  ;;  %v537_v17 = vshrl.u32 %v264_v3, 16  ;;  %v5664_v63 = vld [vmem:[%s5547_s28 + $0x1c] sm:$0xf]  ;;  %v5667_v0 = vld [vmem:[%s5547_s28 + $0x20] sm:$0x1] }
  0x46   : > { %v684_v13 = vunpack.c.l.b16 %v333_v10  ;;  %v447_v14 = vor.u32 %v446_v5, %v443_v4  ;;  %v462_v15 = vrot.slane %v460_v7, 5  ;;  %v457_v19 = vor.u32 %v456_v12, %v452_v6 }
  0x47   : > { %4518 = vmatmul.msk.bf16.gmra.mxu3 %vm730_vm4, %v727_v9  ;;  %v343_v18 = vsel %vm5559_vm3, %v338_v11, %v342_v55  ;;  %v540_v21 = vshll.u32 %v264_v3, 16  ;;  %v546_v22 = vshll.u32 %v265_v8, 16  ;;  %v539_v26 = vrot.slane %v537_v17, 4 }
  0x48   : > { %v685_v23 = vunpack.c.l.b16 %v343_v18  ;;  %v448_v24 = vrot.slane %v447_v14, 4  ;;  %v550_v27 = vshrl.u32 %v265_v8, 16  ;;  %v458_v29 = vrot.slane %v457_v19, 4 }
  0x49   : > { %v542_v30 = vrot.slane %v540_v21, 5  ;;  %v548_v31 = vrot.slane %v546_v22, 5  ;;  %v556_v33 = vshll.u32 %v287_v16, 16  ;;  %v633_v48 = vshrl.u32 %v272_v34, 16  ;;  %v5677_v21 = vld [vmem:[%s5547_s28 + $0x58] sm:$0xf] }
  0x4a   : > { %v715_v35 = vpack.c.b16 %v685_v23, %v684_v13  ;;  %v453_v37 = vsel %vm5559_vm3, %v448_v24, %v452_v6  ;;  %v552_v38 = vrot.slane %v550_v27, 4  ;;  %v463_v41 = vsel %vm5559_vm3, %v458_v29, %v462_v15  ;;  %v258_v15 = vld [vmem:[%s5547_s28 + $0x54] sm:$0xf]  ;;  %v5682_v27 = vld [vmem:[%s5547_s28 + $0x5c] sm:$0x1] }
  0x4b   : > { %v694_v42 = vunpack.c.l.b16 %v453_v37  ;;  %v543_v43 = vor.u32 %v542_v30, %v539_v26  ;;  %v558_v44 = vrot.slane %v556_v33, 5  ;;  %v695_v45 = vunpack.c.l.b16 %v463_v41 }
  0x4c   : > { %4506 = vmatmul.msk.bf16.gmra.mxu0 %vm730_vm4, %v715_v35  ;;  %v553_v46 = vor.u32 %v552_v38, %v548_v31  ;;  %v636_v49 = vshll.u32 %v272_v34, 16  ;;  %v642_v51 = vshll.u32 %v273_v39, 16  ;;  %v646_v52 = vshrl.u32 %v273_v39, 16  ;;  %v266_v39 = vld [vmem:[%s5547_s28 + $0x84] sm:$0xf] }
  0x4d   : > { %v544_v50 = vrot.slane %v543_v43, 4  ;;  %v652_v53 = vshll.u32 %v291_v40, 16  ;;  %v720_v54 = vpack.c.b16 %v695_v45, %v694_v42  ;;  %v635_v57 = vrot.slane %v633_v48, 4 }
  0x4e   : > { %v554_v55 = vrot.slane %v553_v46, 4  ;;  %v638_v58 = vrot.slane %v636_v49, 5  ;;  %v644_v61 = vrot.slane %v642_v51, 5  ;;  %v648_v62 = vrot.slane %v646_v52, 4  ;;  %v267_v49 = vld [vmem:[%s5547_s28 + $0x88] sm:$0xf] }
  0x4f   : > { %v549_v60 = vsel %vm5559_vm3, %v544_v50, %v548_v31  ;;  %4511 = vmatmul.msk.bf16.gmra.mxu1 %vm730_vm4, %v720_v54  ;;  %v654_v6 = vrot.slane %v652_v53, 5  ;;  %v345_v9 = vshrl.u32 %v248_v59, 16  ;;  %v348_v10 = vshll.u32 %v248_v59, 16  ;;  %v288_v53 = vld [vmem:[%s5547_s28 + $0x8c] sm:$0x1] }
  0x50   : > { %v559_v3 = vsel %vm5559_vm3, %v554_v55, %v558_v44  ;;  %v702_v4 = vunpack.c.l.b16 %v549_v60  ;;  %v639_v5 = vor.u32 %v638_v58, %v635_v57  ;;  %v649_v8 = vor.u32 %v648_v62, %v644_v61 }
  0x51   : > { %v703_v7 = vunpack.c.l.b16 %v559_v3  ;;  %v354_v12 = vshll.u32 %v5664_v63, 16  ;;  %v358_v13 = vshrl.u32 %v5664_v63, 16  ;;  %v364_v14 = vshll.u32 %v5667_v0, 16 }
  0x52   : > { %v640_v11 = vrot.slane %v639_v5, 4  ;;  %v650_v17 = vrot.slane %v649_v8, 4  ;;  %v347_v18 = vrot.slane %v345_v9, 4  ;;  %v350_v19 = vrot.slane %v348_v10, 5  ;;  %v274_v8 = vld [vmem:[%s5547_s28 + $0xb4] sm:$0xf] }
  0x53   : > { %v724_v16 = vpack.c.b16 %v703_v7, %v702_v4  ;;  %v356_v23 = vrot.slane %v354_v12, 5  ;;  %v360_v24 = vrot.slane %v358_v13, 4  ;;  %v366_v26 = vrot.slane %v364_v14, 5  ;;  %v275_v12 = vld [vmem:[%s5547_s28 + $0xb8] sm:$0xf] }
  0x54   : > { %v645_v22 = vsel %vm5559_vm3, %v640_v11, %v644_v61  ;;  %v655_v29 = vsel %vm5559_vm3, %v650_v17, %v654_v6  ;;  %v351_v31 = vor.u32 %v350_v19, %v347_v18  ;;  %v465_v33 = vshrl.u32 %v258_v15, 16  ;;  %v292_v17 = vld [vmem:[%s5547_s28 + $0xbc] sm:$0x1] }
  0x55   : > { %4515 = vmatmul.msk.bf16.gmra.mxu2 %vm730_vm4, %v724_v16  ;;  %v710_v30 = vunpack.c.l.b16 %v645_v22  ;;  %v711_v34 = vunpack.c.l.b16 %v655_v29  ;;  %v361_v35 = vor.u32 %v360_v24, %v356_v23  ;;  %v468_v37 = vshll.u32 %v258_v15, 16 }
  0x56   : > { %v474_v38 = vshll.u32 %v5677_v21, 16  ;;  %v352_v40 = vrot.slane %v351_v31, 4  ;;  %v467_v41 = vrot.slane %v465_v33, 4  ;;  %v478_v42 = vshrl.u32 %v5677_v21, 16 }
  0x57   : > { %v484_v43 = vshll.u32 %v5682_v27, 16  ;;  %v728_v44 = vpack.c.b16 %v711_v34, %v710_v30  ;;  %v362_v45 = vrot.slane %v361_v35, 4  ;;  %v470_v46 = vrot.slane %v468_v37, 5  ;;  %v250_v37 = vld [vmem:[%s5547_s28 + $0x24] sm:$0xf] }
  0x58   : > { %v476_v48 = vrot.slane %v474_v38, 5  ;;  %v357_v50 = vsel %vm5559_vm3, %v352_v40, %v356_v23  ;;  %v480_v51 = vrot.slane %v478_v42, 4  ;;  %v561_v54 = vshrl.u32 %v266_v39, 16  ;;  %v5710_v42 = vld [vmem:[%s5547_s28 + $0x28] sm:$0xf] }
  0x59   : > { %v486_v52 = vrot.slane %v484_v43, 5  ;;  %4519 = vmatmul.msk.bf16.gmra.mxu3 %vm730_vm4, %v728_v44  ;;  %v367_v55 = vsel %vm5559_vm3, %v362_v45, %v366_v26  ;;  %v686_v57 = vunpack.c.l.b16 %v357_v50  ;;  %v471_v58 = vor.u32 %v470_v46, %v467_v41 }
  0x5a   : > { %v564_v59 = vshll.u32 %v266_v39, 16  ;;  %v687_v60 = vunpack.c.l.b16 %v367_v55  ;;  %v481_v61 = vor.u32 %v480_v51, %v476_v48  ;;  %v563_v62 = vrot.slane %v561_v54, 4 }
  0x5b   : > { %v570_v3 = vshll.u32 %v267_v49, 16  ;;  %v472_v4 = vrot.slane %v471_v58, 4  ;;  %v574_v6 = vshrl.u32 %v267_v49, 16  ;;  %v580_v7 = vshll.u32 %v288_v53, 16 }
  0x5c   : > { %v566_v5 = vrot.slane %v564_v59, 5  ;;  %v716_v9 = vpack.c.b16 %v687_v60, %v686_v57  ;;  %v482_v10 = vrot.slane %v481_v61, 4  ;;  %v657_v22 = vshrl.u32 %v274_v8, 16  ;;  %v1092_v61 = vld [vmem:[%s5547_s28] sm:$0xe] }
  0x5d   : > { %v572_v11 = vrot.slane %v570_v3, 5  ;;  %v477_v13 = vsel %vm5559_vm3, %v472_v4, %v476_v48  ;;  %v576_v15 = vrot.slane %v574_v6, 4  ;;  %v582_v16 = vrot.slane %v580_v7, 5  ;;  %v5714_v48 = vld [vmem:[%s5547_s28 + $0x2c] sm:$0x1] }
  0x5e   : > { %v567_v14 = vor.u32 %v566_v5, %v563_v62  ;;  %4507 = vmatmul.msk.bf16.gmra.mxu0 %vm730_vm4, %v716_v9  ;;  %v487_v18 = vsel %vm5559_vm3, %v482_v10, %v486_v52  ;;  %v696_v19 = vunpack.c.l.b16 %v477_v13  ;;  %v660_v23 = vshll.u32 %v274_v8, 16  ;;  %v4747_v6 = vld [vmem:[%s5547_s28 + $0xc] sm:$0xf] }
  0x5f   : > { %v697_v24 = vunpack.c.l.b16 %v487_v18  ;;  %v577_v29 = vor.u32 %v576_v15, %v572_v11  ;;  %v666_v30 = vshll.u32 %v275_v12, 16  ;;  %v659_v31 = vrot.slane %v657_v22, 4 }
  0x60   : > { %v568_v26 = vrot.slane %v567_v14, 4  ;;  %v662_v33 = vrot.slane %v660_v23, 5  ;;  %v670_v34 = vshrl.u32 %v275_v12, 16  ;;  %v676_v35 = vshll.u32 %v292_v17, 16  ;;  %v4748_v12 = vld [vmem:[%s5547_s28 + $0x10] sm:$0xf] }
  0x61   : > { %v721_v38 = vpack.c.b16 %v697_v24, %v696_v19  ;;  %v578_v40 = vrot.slane %v577_v29, 4  ;;  %v668_v41 = vrot.slane %v666_v30, 5  ;;  %v1148_v43 = vrot.slane %v5575_v2, 5 }
  0x62   : > { %v573_v39 = vsel %vm5559_vm3, %v568_v26, %v572_v11  ;;  %v663_v45 = vor.u32 %v662_v33, %v659_v31  ;;  %v672_v46 = vrot.slane %v670_v34, 4  ;;  %v678_v50 = vrot.slane %v676_v35, 5  ;;  %v4893_v11 = vld [vmem:[%s7035_s1 + $0xc] sm:$0x3] }
  0x63   : > { %v704_v44 = vunpack.c.l.b16 %v573_v39  ;;  %4512 = vmatmul.msk.bf16.gmra.mxu1 %vm730_vm4, %v721_v38  ;;  %v583_v49 = vsel %vm5559_vm3, %v578_v40, %v582_v16  ;;  %v369_v51 = vshrl.u32 %v250_v37, 16  ;;  %v372_v52 = vshll.u32 %v250_v37, 16  ;;  %v4749_v38 = vld [vmem:[%s5547_s28 + $0x14] sm:$0x1] }
  0x64   : > { %v705_v53 = vunpack.c.l.b16 %v583_v49  ;;  %v664_v54 = vrot.slane %v663_v45, 4  ;;  %v673_v55 = vor.u32 %v672_v46, %v668_v41  ;;  %v378_v2 = vshll.u32 %v5710_v42, 16  ;;  %v5022_v45 = vld [vmem:[%s7035_s1 + $0xe] sm:$0x3] }
  0x65   : > { %v371_v57 = vrot.slane %v369_v51, 4  ;;  %v374_v58 = vrot.slane %v372_v52, 5  ;;  %v382_v59 = vshrl.u32 %v5710_v42, 16  ;;  %v388_v60 = vshll.u32 %v5714_v48, 16  ;;  %v5093_v51 = vld [vmem:[%s5547_s28] sm:$0xff] }
  0x66   : > { %v725_v62 = vpack.c.b16 %v705_v53, %v704_v44  ;;  %v669_v3 = vsel %vm5559_vm3, %v664_v54, %v668_v41  ;;  %v674_v4 = vrot.slane %v673_v55, 4  ;;  %v380_v5 = vrot.slane %v378_v2, 5  ;;  %v5071_v2 = vld [vmem:[%s7035_s1 + $0x10] sm:$0x3] }
  0x67   : > { %v712_v7 = vunpack.c.l.b16 %v669_v3  ;;  %v375_v8 = vor.u32 %v374_v58, %v371_v57  ;;  %v384_v9 = vrot.slane %v382_v59, 4  ;;  %v390_v10 = vrot.slane %v388_v60, 5 }
  0x68   : > { %4516 = vmatmul.msk.bf16.gmra.mxu2 %vm730_vm4, %v725_v62  ;;  %v679_v13 = vsel %vm5559_vm3, %v674_v4, %v678_v50  ;;  %v4601_v14 = vrot.slane %v1092_v61, 9  ;;  %v1145_v19 = vrot.slane %v5572_v1, 5  ;;  %v2986_v22 = vsel %vm779_vm0, %v4893_v11, 0  ;;  %v4844_v50 = vld [vmem:[%s7035_s1 + $0xa] sm:$0x3] }
  0x69   : > { %v713_v15 = vunpack.c.l.b16 %v679_v13  ;;  %v376_v16 = vrot.slane %v375_v8, 4  ;;  %v385_v17 = vor.u32 %v384_v9, %v380_v5  ;;  %v1816_v23 = vshrl.u32 %v4747_v6, 16  ;;  %2995 = vmatpush.bf16.msra.mxu2 %v2986_v22  ;;  %v1093_v8 = vld [vmem:[%s5547_s28 + $0xc] sm:$0xe] }
  0x6a   : > { %v1819_v24 = vshll.u32 %v4747_v6, 16  ;;  %v1825_v26 = vshll.u32 %v4748_v12, 16  ;;  %v1146_v33 = vsel %vm5733_vm7, %v4601_v14, %v1145_v19  ;;  %v1147_v35 = vrot.slane %v1145_v19, 4  ;;  %v4751_v6 = vld [vmem:[%s5547_s28 + $0x1c] sm:$0xf] }
  0x6b   : > { %v729_v29 = vpack.c.b16 %v713_v15, %v712_v7  ;;  %v381_v30 = vsel %vm5559_vm3, %v376_v16, %v380_v5  ;;  %v386_v31 = vrot.slane %v385_v17, 4  ;;  %v1257_v37 = vunpack.c.l.b16 %v1146_v33  ;;  %v4750_v5 = vld [vmem:[%s5547_s28 + $0x18] sm:$0xf]  ;;  %v5109_v15 = vld [vmem:[%s5547_s28 + $0xc] sm:$0xff] }
  0x6c   : > { %v688_v34 = vunpack.c.l.b16 %v381_v30  ;;  %v1818_v1 = vrot.slane %v1816_v23, 4  ;;  %v1821_v40 = vrot.slane %v1819_v24, 5  ;;  %v1827_v41 = vrot.slane %v1825_v26, 5  ;;  %v4752_v30 = vld [vmem:[%s5547_s28 + $0x20] sm:$0x1] }
  0x6d   : > { %4520 = vmatmul.msk.bf16.gmra.mxu3 %vm730_vm4, %v729_v29  ;;  %v391_v39 = vsel %vm5559_vm3, %v386_v31, %v390_v10  ;;  %v1829_v44 = vshrl.u32 %v4748_v12, 16  ;;  %v1149_v49 = vsel %vm5733_vm7, %v1147_v35, %v1148_v43  ;;  %v1835_v55 = vshll.u32 %v4749_v38, 16  ;;  %v5094_v35 = vld [vmem:[%s5547_s28 + $0xc] sm:$0xff] }
  0x6e   : > { %v689_v46 = vunpack.c.l.b16 %v391_v39  ;;  %v1258_v52 = vunpack.c.l.b16 %v1149_v49  ;;  %v1822_v53 = vor.u32 %v1821_v40, %v1818_v1  ;;  %v3640_v58 = vsel %vm779_vm0, %v5022_v45, 0 }
  0x6f   : > { %v1831_v54 = vrot.slane %v1829_v44, 4  ;;  %3649 = vmatpush.bf16.msra.mxu3 %v3640_v58  ;;  %v2696_v60 = vsel %vm779_vm0, %v4844_v50, 0  ;;  %v4038_v61 = vsel %vm779_vm0, %v5071_v2, 0  ;;  %v1837_v4 = vrot.slane %v1835_v55, 5  ;;  %v1094_v50 = vld [vmem:[%s5547_s28 + $0x18] sm:$0xe] }
  0x70   : > { %v717_v57 = vpack.c.b16 %v689_v46, %v688_v34  ;;  %v1289_v43 = vpack.c.b16 %v1258_v52, %v1257_v37  ;;  %2705 = vmatpush.bf16.msra.mxu1 %v2696_v60  ;;  %v1823_v62 = vrot.slane %v1822_v53, 4  ;;  %4047 = vmatpush.bf16.msra.mxu0 %v4038_v61  ;;  %v1152_v7 = vrot.slane %v5618_v28, 5  ;;  %v4754_v46 = vld [vmem:[%s5547_s28 + $0x28] sm:$0xf] }
  0x71   : > { %v1832_v59 = vor.u32 %v1831_v54, %v1827_v41  ;;  %v1840_v9 = vshrl.u32 %v4750_v5, 16  ;;  %v1843_v10 = vshll.u32 %v4750_v5, 16  ;;  %v1849_v13 = vshll.u32 %v4751_v6, 16 }
  0x72   : > { %4508 = vmatmul.msk.bf16.gmra.mxu0 %vm730_vm4, %v717_v57  ;;  %v1828_v11 = vsel %vm5559_vm3, %v1823_v62, %v1827_v41  ;;  %v1853_v14 = vshrl.u32 %v4751_v6, 16  ;;  %v4602_v16 = vrot.slane %v1093_v8, 9  ;;  %v1154_v17 = vrot.slane %v1152_v7, 4  ;;  %v4753_v41 = vld [vmem:[%s5547_s28 + $0x24] sm:$0xf] }
  0x73   : > { %4585 = vmatmul.msk.bf16.vlgmr.msrb.gmra.mxu1 %vm730_vm4, %v5093_v51  ;;  %v1833_v3 = vrot.slane %v1832_v59, 4  ;;  %v1155_v28 = vrot.slane %v5621_v32, 5  ;;  %v2201_v19 = vunpack.c.l.b16 %v1828_v11  ;;  %v1842_v23 = vrot.slane %v1840_v9, 4  ;;  %v4755_v6 = vld [vmem:[%s5547_s28 + $0x2c] sm:$0x1] }
  0x74   : > { %v1845_v24 = vrot.slane %v1843_v10, 5  ;;  %v1851_v26 = vrot.slane %v1849_v13, 5  ;;  %v1855_v29 = vrot.slane %v1853_v14, 4  ;;  %v1153_v31 = vsel %vm5733_vm7, %v4602_v16, %v1152_v7 }
  0x75   : > { %v1838_v12 = vsel %vm5559_vm3, %v1833_v3, %v1837_v4  ;;  %v1156_v33 = vsel %vm5733_vm7, %v1154_v17, %v1155_v28  ;;  %v1859_v38 = vshll.u32 %v4752_v30, 16  ;;  %v1259_v1 = vunpack.c.l.b16 %v1153_v31 }
  0x76   : > { %v2202_v22 = vunpack.c.l.b16 %v1838_v12  ;;  %v1846_v32 = vor.u32 %v1845_v24, %v1842_v23  ;;  %v1856_v37 = vor.u32 %v1855_v29, %v1851_v26  ;;  %v1260_v39 = vunpack.c.l.b16 %v1156_v33  ;;  %v5095_v12 = vld [vmem:[%s5547_s28 + $0x18] sm:$0xff]  ;;  %v1095_v29 = vld [vmem:[%s5547_s28 + $0x24] sm:$0xe] }
  0x77   : > { %v1861_v45 = vrot.slane %v1859_v38, 5  ;;  %v1159_v51 = vrot.slane %v5664_v63, 5  ;;  %v1864_v52 = vshrl.u32 %v4753_v41, 16  ;;  %v1867_v54 = vshll.u32 %v4753_v41, 16 }
  0x78   : > { %4618 = vmatmul.msk.bf16.vlgmr.msrb.gmra.mxu2 %vm730_vm4, %v1289_v43  ;;  %v2233_v34 = vpack.c.b16 %v2202_v22, %v2201_v19  ;;  %v1847_v40 = vrot.slane %v1846_v32, 4  ;;  %v1857_v44 = vrot.slane %v1856_v37, 4  ;;  %v1290_v49 = vpack.c.b16 %v1260_v39, %v1259_v1  ;;  %v5110_v43 = vld [vmem:[%s5547_s28 + $0x18] sm:$0xff]  ;;  %v4756_v19 = vld [vmem:[%s5547_s28 + $0x30] sm:$0xf]  ;;  %v5111_v32 = vld [vmem:[%s5547_s28 + $0x24] sm:$0xff] }
  0x79   : > { %v1873_v55 = vshll.u32 %v4754_v46, 16  ;;  %v1877_v2 = vshrl.u32 %v4754_v46, 16  ;;  %v4603_v58 = vrot.slane %v1094_v50, 9  ;;  %v1161_v60 = vrot.slane %v1159_v51, 4  ;;  %v4757_v22 = vld [vmem:[%s5547_s28 + $0x34] sm:$0xf] }
  0x7a   : > { %v1852_v53 = vsel %vm5559_vm3, %v1847_v40, %v1851_v26  ;;  %v1862_v57 = vsel %vm5559_vm3, %v1857_v44, %v1861_v45  ;;  %v1162_v63 = vrot.slane %v5667_v0, 5  ;;  %v1866_v61 = vrot.slane %v1864_v52, 4  ;;  %v4758_v45 = vld [vmem:[%s5547_s28 + $0x38] sm:$0x1] }
  0x7b   : > { %v2203_v59 = vunpack.c.l.b16 %v1852_v53  ;;  %v2204_v62 = vunpack.c.l.b16 %v1862_v57  ;;  %v1869_v3 = vrot.slane %v1867_v54, 5  ;;  %v1875_v4 = vrot.slane %v1873_v55, 5  ;;  %v4760_v57 = vld [vmem:[%s5547_s28 + $0x40] sm:$0xf] }
  0x7c   : > { %v1879_v5 = vrot.slane %v1877_v2, 4  ;;  %v1160_v7 = vsel %vm5733_vm7, %v4603_v58, %v1159_v51  ;;  %v1163_v8 = vsel %vm5733_vm7, %v1161_v60, %v1162_v63  ;;  %v1883_v0 = vshll.u32 %v4755_v6, 16  ;;  %v4759_v2 = vld [vmem:[%s5547_s28 + $0x3c] sm:$0xf]  ;;  %v5300_v63 = vld [vmem:[%s5547_s28 + $0x34] sm:$0xf] }
  0x7d   : > { %4731 = vmatmul.msk.bf16.vlgmr.msrb.gmra.mxu3 %vm730_vm4, %v5109_v15  ;;  %v2234_v9 = vpack.c.b16 %v2204_v62, %v2203_v59  ;;  %v1870_v10 = vor.u32 %v1869_v3, %v1866_v61  ;;  %v1261_v13 = vunpack.c.l.b16 %v1160_v7  ;;  %v1262_v14 = vunpack.c.l.b16 %v1163_v8  ;;  %v1096_v62 = vld [vmem:[%s5547_s28 + $0x30] sm:$0xe] }
  0x7e   : > { %v1880_v11 = vor.u32 %v1879_v5, %v1875_v4  ;;  %v1885_v17 = vrot.slane %v1883_v0, 5  ;;  %v1166_v23 = vrot.slane %v5710_v42, 5  ;;  %v1888_v30 = vshrl.u32 %v4756_v19, 16  ;;  %v5301_v0 = vld [vmem:[%s5547_s28 + $0x38] sm:$0x1] }
  0x7f   : > { %v1871_v15 = vrot.slane %v1870_v10, 4  ;;  %v1291_v28 = vpack.c.b16 %v1262_v14, %v1261_v13  ;;  %v1891_v31 = vshll.u32 %v4756_v19, 16  ;;  %v1897_v33 = vshll.u32 %v4757_v22, 16  ;;  %v5112_v13 = vld [vmem:[%s5547_s28 + $0x30] sm:$0xff] }
  0x80   : > { %v1881_v16 = vrot.slane %v1880_v11, 4  ;;  %v1168_v37 = vrot.slane %v1166_v23, 4  ;;  %v1169_v42 = vrot.slane %v5714_v48, 5  ;;  %v1890_v39 = vrot.slane %v1888_v30, 4  ;;  %v5096_v48 = vld [vmem:[%s5547_s28 + $0x24] sm:$0xff] }
  0x81   : > { %v1876_v24 = vsel %vm5559_vm3, %v1871_v15, %v1875_v4  ;;  %v1893_v40 = vrot.slane %v1891_v31, 5  ;;  %v1899_v41 = vrot.slane %v1897_v33, 5  ;;  %v1907_v53 = vshll.u32 %v4758_v45, 16  ;;  %v5097_v33 = vld [vmem:[%s5547_s28 + $0x30] sm:$0xff] }
  0x82   : > { %4796 = vmatmul.msk.bf16.vlgmr.msrb.gmra.mxu0 %vm730_vm4, %v2233_v34  ;;  %v1886_v26 = vsel %vm5559_vm3, %v1881_v16, %v1885_v17  ;;  %v1901_v34 = vshrl.u32 %v4757_v22, 16  ;;  %v2205_v38 = vunpack.c.l.b16 %v1876_v24  ;;  %v1173_v61 = vrot.slane %v5300_v63, 5  ;;  %v4761_v22 = vld [vmem:[%s5547_s28 + $0x44] sm:$0x1] }
  0x83   : > { %4586 = vmatmul.msk.bf16.gmra.mxu1 %vm730_vm4, %v5094_v35  ;;  %v4604_v35 = vrot.slane %v1095_v29, 9  ;;  %v2206_v1 = vunpack.c.l.b16 %v1886_v26  ;;  %v1894_v51 = vor.u32 %v1893_v40, %v1890_v39  ;;  %v1909_v59 = vrot.slane %v1907_v53, 5  ;;  %v4762_v39 = vld [vmem:[%s5547_s28 + $0x48] sm:$0xf]  ;;  %v4763_v40 = vld [vmem:[%s5547_s28 + $0x4c] sm:$0xf] }
  0x84   : > { %v1903_v44 = vrot.slane %v1901_v34, 4  ;;  %v1912_v3 = vshrl.u32 %v4759_v2, 16  ;;  %v1915_v4 = vshll.u32 %v4759_v2, 16  ;;  %v1921_v5 = vshll.u32 %v4760_v57, 16  ;;  %v5113_v2 = vld [vmem:[%s5547_s28 + $0x3c] sm:$0xff] }
  0x85   : > { %v1167_v46 = vsel %vm5733_vm7, %v4604_v35, %v1166_v23  ;;  %v2235_v50 = vpack.c.b16 %v2206_v1, %v2205_v38  ;;  %v1895_v58 = vrot.slane %v1894_v51, 4  ;;  %v1925_v6 = vshrl.u32 %v4760_v57, 16 }
  0x86   : > { %v1904_v52 = vor.u32 %v1903_v44, %v1899_v41  ;;  %v1263_v54 = vunpack.c.l.b16 %v1167_v46  ;;  %v4605_v10 = vrot.slane %v1096_v62, 9  ;;  %v1175_v11 = vrot.slane %v1173_v61, 4 }
  0x87   : > { %v1900_v8 = vsel %vm5559_vm3, %v1895_v58, %v1899_v41  ;;  %v1914_v14 = vrot.slane %v1912_v3, 4  ;;  %v1917_v15 = vrot.slane %v1915_v4, 5  ;;  %v1923_v16 = vrot.slane %v1921_v5, 5  ;;  %v4764_v4 = vld [vmem:[%s5547_s28 + $0x50] sm:$0x1] }
  0x88   : > { %4619 = vmatmul.msk.bf16.gmra.mxu2 %vm730_vm4, %v1290_v49  ;;  %v1170_v49 = vsel %vm5733_vm7, %v1168_v37, %v1169_v42  ;;  %v1927_v17 = vrot.slane %v1925_v6, 4  ;;  %v1174_v23 = vsel %vm5733_vm7, %v4605_v10, %v1173_v61  ;;  %v1931_v30 = vshll.u32 %v4761_v22, 16 }
  0x89   : > { %v1264_v55 = vunpack.c.l.b16 %v1170_v49  ;;  %v1918_v26 = vor.u32 %v1917_v15, %v1914_v14  ;;  %v1936_v51 = vshrl.u32 %v4762_v39, 16  ;;  %v1945_v53 = vshll.u32 %v4763_v40, 16 }
  0x8a   : > { %v1928_v29 = vor.u32 %v1927_v17, %v1923_v16  ;;  %v1933_v1 = vrot.slane %v1931_v30, 5 }
  0x8b   : > { %v1292_v60 = vpack.c.b16 %v1264_v55, %v1263_v54  ;;  %v1919_v42 = vrot.slane %v1918_v26, 4  ;;  %v1949_v54 = vshrl.u32 %v4763_v40, 16  ;;  %v1947_v62 = vrot.slane %v1945_v53, 5 }
  0x8c   : > { %v1929_v38 = vrot.slane %v1928_v29, 4  ;;  %v1187_v26 = vrot.slane %v5631_v47, 5 }
  0x8d   : > { %4732 = vmatmul.msk.bf16.gmra.mxu3 %vm730_vm4, %v5110_v43  ;;  %v1905_v43 = vrot.slane %v1904_v52, 4  ;;  %v1924_v45 = vsel %vm5559_vm3, %v1919_v42, %v1923_v16  ;;  %v1939_v52 = vshll.u32 %v4762_v39, 16  ;;  %v1951_v3 = vrot.slane %v1949_v54, 4  ;;  %v4767_v54 = vld [vmem:[%s5547_s28 + $0x5c] sm:$0x1] }
  0x8e   : > { %v1934_v46 = vsel %vm5559_vm3, %v1929_v38, %v1933_v1  ;;  %v2209_v55 = vunpack.c.l.b16 %v1924_v45  ;;  %v5114_v1 = vld [vmem:[%s5547_s28 + $0x48] sm:$0xff]  ;;  %v1189_v40 = vrot.slane %v1187_v26, 4 }
  0x8f   : > { %v2210_v57 = vunpack.c.l.b16 %v1934_v46  ;;  %v1941_v61 = vrot.slane %v1939_v52, 5  ;;  %v1952_v10 = vor.u32 %v1951_v3, %v1947_v62 }
  0x91   : > { %v1953_v16 = vrot.slane %v1952_v10, 4 }
  0x92   : > { %4797 = vmatmul.msk.bf16.gmra.mxu0 %vm730_vm4, %v2234_v9  ;;  %v1910_v9 = vsel %vm5559_vm3, %v1905_v43, %v1909_v59 }
  0x93   : > { %4587 = vmatmul.msk.bf16.gmra.mxu1 %vm730_vm4, %v5095_v12  ;;  %v1176_v12 = vrot.slane %v5301_v0, 5  ;;  %v2208_v19 = vunpack.c.l.b16 %v1910_v9 }
  0x95   : > { %v1177_v24 = vsel %vm5733_vm7, %v1175_v11, %v1176_v12  ;;  %v1955_v11 = vshll.u32 %v4764_v4, 16  ;;  %v5098_v12 = vld [vmem:[%s5547_s28 + $0x3c] sm:$0xff] }
  0x96   : > { %v1266_v35 = vunpack.c.l.b16 %v1177_v24  ;;  %v4766_v24 = vld [vmem:[%s5547_s28 + $0x58] sm:$0xf]  ;;  %v4768_v4 = vld [vmem:[%s5547_s28 + $0x60] sm:$0xf] }
  0x97   : > { %v1957_v17 = vrot.slane %v1955_v11, 5  ;;  %v1973_v42 = vshrl.u32 %v4766_v24, 16 }
  0x98   : > { %4620 = vmatmul.msk.bf16.gmra.mxu2 %vm730_vm4, %v1291_v28  ;;  %v2207_v28 = vunpack.c.l.b16 %v1900_v8  ;;  %v2237_v8 = vpack.c.b16 %v2210_v57, %v2209_v55 }
  0x99   : > { %v1958_v30 = vsel %vm5559_vm3, %v1953_v16, %v1957_v17  ;;  %v1975_v52 = vrot.slane %v1973_v42, 4 }
  0x9a   : > { %v2236_v31 = vpack.c.b16 %v2208_v19, %v2207_v28  ;;  %v2212_v46 = vunpack.c.l.b16 %v1958_v30 }
  0x9d   : > { %4733 = vmatmul.msk.bf16.gmra.mxu3 %vm730_vm4, %v5111_v32  ;;  %v1265_v32 = vunpack.c.l.b16 %v1174_v23  ;;  %v4765_v23 = vld [vmem:[%s5547_s28 + $0x54] sm:$0xf] }
  0x9f   : > { %v1293_v44 = vpack.c.b16 %v1266_v35, %v1265_v32  ;;  %v1963_v32 = vshll.u32 %v4765_v23, 16  ;;  %v1969_v35 = vshll.u32 %v4766_v24, 16 }
  0xa2   : > { %4798 = vmatmul.msk.bf16.gmra.mxu0 %vm730_vm4, %v2235_v50  ;;  %v1180_v50 = vrot.slane %v5587_v20, 5  ;;  %v1938_v20 = vrot.slane %v1936_v51, 4  ;;  %v1971_v51 = vrot.slane %v1969_v35, 5  ;;  %v1197_v35 = vrot.slane %v5682_v27, 5 }
  0xa3   : > { %4588 = vmatmul.msk.bf16.gmra.mxu1 %vm730_vm4, %v5096_v48  ;;  %v1097_v48 = vld [vmem:[%s5547_s28 + $0x3c] sm:$0xe] }
  0xa4   : > { %v4606_v43 = vrot.slane %v1097_v48, 9  ;;  %v1182_v59 = vrot.slane %v1180_v50, 4  ;;  %v1965_v48 = vrot.slane %v1963_v32, 5 }
  0xa6   : > { %v1181_v5 = vsel %vm5733_vm7, %v4606_v43, %v1180_v50  ;;  %v5099_v43 = vld [vmem:[%s5547_s28 + $0x48] sm:$0xff] }
  0xa8   : > { %v5828_v7 = vpop.f32.mrf.mxu1  ;;  %4621 = vmatmul.msk.bf16.gmra.mxu2 %vm730_vm4, %v1292_v60  ;;  %v1183_v60 = vrot.slane %v5592_v25, 5  ;;  %v1942_v25 = vor.u32 %v1941_v61, %v1938_v20  ;;  %v1979_v20 = vshll.u32 %v4767_v54, 16  ;;  %v5100_v54 = vld [vmem:[%s5547_s28 + $0x54] sm:$0xff] }
  0xaa   : > { %v1184_v6 = vsel %vm5733_vm7, %v1182_v59, %v1183_v60  ;;  %v1943_v15 = vrot.slane %v1942_v25, 4  ;;  %v1976_v60 = vor.u32 %v1975_v52, %v1971_v51  ;;  %v1981_v10 = vrot.slane %v1979_v20, 5 }
  0xab   : > { %v1268_v14 = vunpack.c.l.b16 %v1184_v6 }
  0xac   : > { %v1948_v29 = vsel %vm5559_vm3, %v1943_v15, %v1947_v62  ;;  %v1977_v25 = vrot.slane %v1976_v60, 4  ;;  %v1194_v15 = vrot.slane %v5677_v21, 5 }
  0xad   : > { %4734 = vmatmul.msk.bf16.gmra.mxu3 %vm730_vm4, %v5112_v13  ;;  %v1267_v13 = vunpack.c.l.b16 %v1181_v5  ;;  %v2211_v45 = vunpack.c.l.b16 %v1948_v29  ;;  %v4769_v5 = vld [vmem:[%s5547_s28 + $0x64] sm:$0xf] }
  0xae   : > { %v1997_v16 = vshrl.u32 %v4769_v5, 16  ;;  %v1982_v24 = vsel %vm5559_vm3, %v1977_v25, %v1981_v10  ;;  %v1196_v32 = vrot.slane %v1194_v15, 4  ;;  %v5302_v10 = vld [vmem:[%s5547_s28 + $0x64] sm:$0xf] }
  0xaf   : > { %v1294_v19 = vpack.c.b16 %v1268_v14, %v1267_v13  ;;  %v2238_v57 = vpack.c.b16 %v2212_v46, %v2211_v45  ;;  %v1987_v13 = vshll.u32 %v4768_v4, 16  ;;  %v1993_v14 = vshll.u32 %v4769_v5, 16 }
  0xb0   : > { %v5844_v34 = vpop.f32.mrf.mxu1  ;;  %v1999_v42 = vrot.slane %v1997_v16, 4 }
  0xb1   : > { %v1989_v30 = vrot.slane %v1987_v13, 5  ;;  %v1100_v13 = vld [vmem:[%s5547_s28 + $0x60] sm:$0xe] }
  0xb2   : > { %v5846_v37 = vpop.f32.mrf.mxu2  ;;  %4799 = vmatmul.msk.bf16.gmra.mxu0 %vm730_vm4, %v2236_v31  ;;  %v1098_v31 = vld [vmem:[%s5547_s28 + $0x48] sm:$0xe] }
  0xb3   : > { %4589 = vmatmul.msk.bf16.gmra.mxu1 %vm730_vm4, %v5097_v33  ;;  %v1960_v33 = vshrl.u32 %v4765_v23, 16  ;;  %v4607_v47 = vrot.slane %v1098_v31, 9  ;;  %v1995_v31 = vrot.slane %v1993_v14, 5 }
  0xb5   : > { %v5852_v41 = vpop.f32.mrf.mxu0  ;;  %v1962_v50 = vrot.slane %v1960_v33, 4  ;;  %v5115_v33 = vld [vmem:[%s5547_s28 + $0x54] sm:$0xff]  ;;  %v2000_v27 = vor.u32 %v1999_v42, %v1995_v31 }
  0xb6   : > { %v5858_v49 = vpop.f32.mrf.mxu3 }
  0xb7   : > { %v1966_v59 = vor.u32 %v1965_v48, %v1962_v50  ;;  %v1198_v48 = vsel %vm5733_vm7, %v1196_v32, %v1197_v35  ;;  %v2001_v60 = vrot.slane %v2000_v27, 4 }
  0xb8   : > { %4622 = vmatmul.msk.bf16.gmra.mxu2 %vm730_vm4, %v1293_v44  ;;  %v1190_v44 = vrot.slane %v5636_v56, 5 }
  0xba   : > { %v5864_v58 = vpop.f32.mrf.mxu1  ;;  %v5867_v63 = vpop.f32.mrf.mxu2  ;;  %v1191_v56 = vsel %vm5733_vm7, %v1189_v40, %v1190_v44  ;;  %v4770_v40 = vld [vmem:[%s5547_s28 + $0x68] sm:$0x1] }
  0xbb   : > { %v1270_v62 = vunpack.c.l.b16 %v1191_v56 }
  0xbd   : > { %4735 = vmatmul.msk.bf16.gmra.mxu3 %vm730_vm4, %v5113_v2  ;;  %v5875_v9 = vpop.f32.mrf.mxu0  ;;  %v1188_v2 = vsel %vm5733_vm7, %v4607_v47, %v1187_v26  ;;  %v2214_v47 = vunpack.c.l.b16 %v1982_v24 }
  0xbe   : > { %v5877_v0 = vpop.f32.mrf.mxu3  ;;  %v1269_v61 = vunpack.c.l.b16 %v1188_v2 }
  0xc0   : > { %v1295_v11 = vpack.c.b16 %v1270_v62, %v1269_v61  ;;  %v4771_v61 = vld [vmem:[%s5547_s28 + $0x6c] sm:$0xf]  ;;  %v4772_v62 = vld [vmem:[%s5547_s28 + $0x70] sm:$0xf] }
  0xc1   : > { %v2008_v14 = vshrl.u32 %v4771_v61, 16  ;;  %v2017_v16 = vshll.u32 %v4772_v62, 16 }
  0xc2   : > { %4800 = vmatmul.msk.bf16.gmra.mxu0 %vm730_vm4, %v2237_v8  ;;  %v5881_v28 = vpop.f32.mrf.mxu1  ;;  %v1967_v8 = vrot.slane %v1966_v59, 4 }
  0xc3   : > { %4590 = vmatmul.msk.bf16.gmra.mxu1 %vm730_vm4, %v5098_v12  ;;  %v1984_v12 = vshrl.u32 %v4768_v4, 16  ;;  %v2010_v35 = vrot.slane %v2008_v14, 4  ;;  %v4775_v14 = vld [vmem:[%s5547_s28 + $0x7c] sm:$0xf] }
  0xc4   : > { %v1972_v23 = vsel %vm5559_vm3, %v1967_v8, %v1971_v51  ;;  %v2003_v51 = vshll.u32 %v4770_v40, 16 }
  0xc5   : > { %v5884_v22 = vpop.f32.mrf.mxu2  ;;  %v1986_v29 = vrot.slane %v1984_v12, 4 }
  0xc6   : > { %v2005_v20 = vrot.slane %v2003_v51, 5 }
  0xc7   : > { %v1990_v46 = vor.u32 %v1989_v30, %v1986_v29  ;;  %v5116_v30 = vld [vmem:[%s5547_s28 + $0x60] sm:$0xff] }
  0xc8   : > { %4623 = vmatmul.msk.bf16.gmra.mxu2 %vm730_vm4, %v1294_v19  ;;  %v1099_v19 = vld [vmem:[%s5547_s28 + $0x54] sm:$0xe]  ;;  %v2006_v25 = vsel %vm5559_vm3, %v2001_v60, %v2005_v20 }
  0xc9   : > { %v5894_v38 = vpop.f32.mrf.mxu0  ;;  %v4608_v21 = vrot.slane %v1099_v19, 9  ;;  %v1991_v59 = vrot.slane %v1990_v46, 4  ;;  %v2021_v19 = vshrl.u32 %v4772_v62, 16  ;;  %v4773_v46 = vld [vmem:[%s5547_s28 + $0x74] sm:$0x1] }
  0xca   : > { %v5898_v39 = vpop.f32.mrf.mxu3 }
  0xcb   : > { %v1195_v50 = vsel %vm5733_vm7, %v4608_v21, %v1194_v15  ;;  %v1996_v8 = vsel %vm5559_vm3, %v1991_v59, %v1995_v31  ;;  %v2011_v15 = vshll.u32 %v4771_v61, 16  ;;  %v4609_v21 = vrot.slane %v1100_v13, 9  ;;  %v4774_v13 = vld [vmem:[%s5547_s28 + $0x78] sm:$0xf] }
  0xcc   : > { %v5901_v53 = vpop.f32.mrf.mxu1  ;;  %v1271_v56 = vunpack.c.l.b16 %v1195_v50  ;;  %v2215_v31 = vunpack.c.l.b16 %v1996_v8 }
  0xcd   : > { %4736 = vmatmul.msk.bf16.gmra.mxu3 %vm730_vm4, %v5114_v1  ;;  %v5905_v55 = vpop.f32.mrf.mxu2  ;;  %v2213_v1 = vunpack.c.l.b16 %v1972_v23  ;;  %v5303_v23 = vld [vmem:[%s5547_s28 + $0x68] sm:$0x1]  ;;  %v2013_v42 = vrot.slane %v2011_v15, 5  ;;  %v5304_v15 = vld [vmem:[%s5547_s28 + $0x70] sm:$0xf] }
  0xce   : > { %v1204_v24 = vrot.slane %v5303_v23, 5  ;;  %v1101_v23 = vld [vmem:[%s5547_s28 + $0x6c] sm:$0xe] }
  0xcf   : > { %v2239_v52 = vpack.c.b16 %v2214_v47, %v2213_v1  ;;  %v2019_v1 = vrot.slane %v2017_v16, 5  ;;  %v2023_v47 = vrot.slane %v2021_v19, 4  ;;  %v2014_v51 = vor.u32 %v2013_v42, %v2010_v35  ;;  %v5305_v42 = vld [vmem:[%s5547_s28 + $0x74] sm:$0x1] }
  0xd0   : > { %v1208_v16 = vrot.slane %v5304_v15, 5 }
  0xd1   : > { %v5912_v3 = vpop.f32.mrf.mxu0 }
  0xd2   : > { %4801 = vmatmul.msk.bf16.gmra.mxu0 %vm730_vm4, %v2238_v57  ;;  %v5917_v6 = vpop.f32.mrf.mxu3  ;;  %v1272_v57 = vunpack.c.l.b16 %v1198_v48 }
  0xd3   : > { %4591 = vmatmul.msk.bf16.gmra.mxu1 %vm730_vm4, %v5099_v43 }
  0xd4   : > { %v5921_v17 = vpop.f32.mrf.mxu1  ;;  %v1296_v4 = vpack.c.b16 %v1272_v57, %v1271_v56  ;;  %v5101_v57 = vld [vmem:[%s5547_s28 + $0x60] sm:$0xff] }
  0xd8   : > { %v5928_v26 = vpop.f32.mrf.mxu2  ;;  %4624 = vmatmul.msk.bf16.gmra.mxu2 %vm730_vm4, %v1295_v11  ;;  %v1201_v11 = vrot.slane %v5302_v10, 5 }
  0xda   : > { %v1203_v32 = vrot.slane %v1201_v11, 4  ;;  %v1202_v50 = vsel %vm5733_vm7, %v4609_v21, %v1201_v11  ;;  %v2045_v21 = vshrl.u32 %v4775_v14, 16 }
  0xdb   : > { %v5934_v44 = vpop.f32.mrf.mxu0  ;;  %v1273_v20 = vunpack.c.l.b16 %v1202_v50  ;;  %v4610_v50 = vrot.slane %v1101_v23, 9 }
  0xdc   : > { %v5936_v45 = vpop.f32.mrf.mxu3  ;;  %v1205_v48 = vsel %vm5733_vm7, %v1203_v32, %v1204_v24 }
  0xdd   : > { %4737 = vmatmul.msk.bf16.gmra.mxu3 %vm730_vm4, %v5115_v33  ;;  %v2216_v33 = vunpack.c.l.b16 %v2006_v25  ;;  %v1274_v61 = vunpack.c.l.b16 %v1205_v48  ;;  %v1210_v48 = vrot.slane %v1208_v16, 4 }
  0xdf   : > { %v2240_v27 = vpack.c.b16 %v2216_v33, %v2215_v31  ;;  %v1297_v11 = vpack.c.b16 %v1274_v61, %v1273_v20  ;;  %v2035_v31 = vshll.u32 %v4774_v13, 16  ;;  %v2041_v33 = vshll.u32 %v4775_v14, 16 }
  0xe0   : > { %v5944_v2 = vpop.f32.mrf.mxu1  ;;  %v5946_v43 = vpop.f32.mrf.mxu2  ;;  %v2047_v20 = vrot.slane %v2045_v21, 4 }
  0xe2   : > { %4802 = vmatmul.msk.bf16.gmra.mxu0 %vm730_vm4, %v2239_v52  ;;  %v2024_v52 = vor.u32 %v2023_v47, %v2019_v1  ;;  %v1211_v47 = vrot.slane %v5305_v42, 5 }
  0xe3   : > { %4592 = vmatmul.msk.bf16.gmra.mxu1 %vm730_vm4, %v5100_v54  ;;  %v5952_v5 = vpop.f32.mrf.mxu0  ;;  %v2027_v54 = vshll.u32 %v4773_v46, 16  ;;  %v5117_v46 = vld [vmem:[%s5547_s28 + $0x6c] sm:$0xff] }
  0xe4   : > { %v5959_v12 = vpop.f32.mrf.mxu3  ;;  %v2025_v8 = vrot.slane %v2024_v52, 4 }
  0xe5   : > { %v2029_v25 = vrot.slane %v2027_v54, 5 }
  0xe8   : > { %4625 = vmatmul.msk.bf16.gmra.mxu2 %vm730_vm4, %v1296_v4  ;;  %v5964_v29 = vpop.f32.mrf.mxu1  ;;  %v2015_v4 = vrot.slane %v2014_v51, 4 }
  0xea   : > { %v2020_v19 = vsel %vm5559_vm3, %v2015_v4, %v2019_v1  ;;  %v4776_v4 = vld [vmem:[%s5547_s28 + $0x80] sm:$0x1] }
  0xeb   : > { %v5967_v40 = vpop.f32.mrf.mxu2 }
  0xed   : > { %4738 = vmatmul.msk.bf16.gmra.mxu3 %vm730_vm4, %v5116_v30  ;;  %v2032_v30 = vshrl.u32 %v4774_v13, 16  ;;  %v5102_v13 = vld [vmem:[%s5547_s28 + $0x6c] sm:$0xff] }
  0xef   : > { %v5975_v56 = vpop.f32.mrf.mxu0  ;;  %v2034_v54 = vrot.slane %v2032_v30, 4 }
  0xf0   : > { %v5978_v59 = vpop.f32.mrf.mxu3  ;;  %v1012_v60 = vpop.f32.mrf.mxu1 }
  0xf1   : > { %v1013_v62 = vadd.f32 %v1012_v60, %v5852_v41  ;;  %v2030_v41 = vsel %vm5559_vm3, %v2025_v8, %v2029_v25  ;;  %v2043_v60 = vrot.slane %v2041_v33, 5  ;;  %v1209_v8 = vsel %vm5733_vm7, %v4610_v50, %v1208_v16 }
  0xf2   : > { %4803 = vmatmul.msk.bf16.gmra.mxu0 %vm730_vm4, %v2240_v27  ;;  %v2217_v27 = vunpack.c.l.b16 %v2020_v19  ;;  %v2218_v51 = vunpack.c.l.b16 %v2030_v41  ;;  %v2051_v19 = vshll.u32 %v4776_v4, 16 }
  0xf3   : > { %v5982_v10 = vpop.f32.mrf.mxu2  ;;  %4593 = vmatmul.msk.bf16.gmra.mxu1 %vm730_vm4, %v5101_v57  ;;  %v2037_v57 = vrot.slane %v2035_v31, 5  ;;  %v2048_v15 = vor.u32 %v2047_v20, %v2043_v60 }
  0xf4   : > { %v2241_v25 = vpack.c.b16 %v2218_v51, %v2217_v27  ;;  %v2053_v42 = vrot.slane %v2051_v19, 5  ;;  %v4778_v27 = vld [vmem:[%s5547_s28 + $0x88] sm:$0xf]  ;;  %v5306_v51 = vld [vmem:[%s5547_s28 + $0x7c] sm:$0xf] }
  0xf5   : > { %v2038_v14 = vor.u32 %v2037_v57, %v2034_v54  ;;  %v1102_v54 = vld [vmem:[%s5547_s28 + $0x78] sm:$0xe] }
  0xf7   : > { %v5993_v24 = vpop.f32.mrf.mxu0  ;;  %v2039_v21 = vrot.slane %v2038_v14, 4 }
  0xf8   : > { %v5995_v32 = vpop.f32.mrf.mxu3  ;;  %4626 = vmatmul.msk.bf16.gmra.mxu2 %vm730_vm4, %v1297_v11  ;;  %v1014_v35 = vpop.f32.mrf.mxu1 }
  0xf9   : > { %v1015_v1 = vadd.f32 %v1014_v35, %v5875_v9  ;;  %v1212_v9 = vsel %vm5733_vm7, %v1210_v48, %v1211_v47  ;;  %v2049_v35 = vrot.slane %v2048_v15, 4  ;;  %v4777_v47 = vld [vmem:[%s5547_s28 + $0x84] sm:$0xf]  ;;  %v5118_v15 = vld [vmem:[%s5547_s28 + $0x78] sm:$0xff] }
  0xfa   : > { %v1276_v30 = vunpack.c.l.b16 %v1212_v9  ;;  %v2059_v57 = vshll.u32 %v4777_v47, 16  ;;  %v2069_v9 = vshrl.u32 %v4778_v27, 16 }
  0xfb   : > { %v1365_v52 = vpop.f32.mrf.mxu2  ;;  %v2054_v4 = vsel %vm5559_vm3, %v2049_v35, %v2053_v42 }
  0xfc   : > { %v1445_v61 = vadd.f32 %v1365_v52, %v1013_v62  ;;  %v1275_v62 = vunpack.c.l.b16 %v1209_v8  ;;  %v1215_v52 = vrot.slane %v5306_v51, 5  ;;  %v2065_v8 = vshll.u32 %v4778_v27, 16 }
  0xfd   : > { %4739 = vmatmul.msk.bf16.gmra.mxu3 %vm730_vm4, %v5117_v46  ;;  %v2071_v35 = vrot.slane %v2069_v9, 4 }
  0xfe   : > { %v1298_v48 = vpack.c.b16 %v1276_v30, %v1275_v62 }
  0xff   : > { %v2309_v11 = vpop.f32.mrf.mxu0 }
 0x100   : > { %v1655_v41 = vpop.f32.mrf.mxu3  ;;  %v1017_v23 = vpop.f32.mrf.mxu1 }
 0x101   : > { %v1735_v31 = vadd.f32 %v1655_v41, %v1445_v61  ;;  %v1018_v16 = vadd.f32 %v1017_v23, %v5894_v38  ;;  %v2056_v38 = vshrl.u32 %v4777_v47, 16  ;;  %v2044_v61 = vsel %vm5559_vm3, %v2039_v21, %v2043_v60 }
 0x102   : > { %4804 = vmatmul.msk.bf16.gmra.mxu0 %vm730_vm4, %v2241_v25  ;;  %v5307_v25 = vld [vmem:[%s5547_s28 + $0x80] sm:$0x1]  ;;  %v4611_v41 = vrot.slane %v1102_v54, 9  ;;  %v1217_v23 = vrot.slane %v1215_v52, 4  ;;  %v2219_v62 = vunpack.c.l.b16 %v2044_v61  ;;  %v2220_v60 = vunpack.c.l.b16 %v2054_v4 }
 0x103   : > { %v1367_v33 = vpop.f32.mrf.mxu2  ;;  %4594 = vmatmul.msk.bf16.gmra.mxu1 %vm730_vm4, %v5102_v13  ;;  %v6012_v46 = vadd.f32 %v2309_v11, %v1735_v31  ;;  %v1218_v11 = vrot.slane %v5307_v25, 5  ;;  %v2058_v30 = vrot.slane %v2056_v38, 4  ;;  %v2061_v31 = vrot.slane %v2059_v57, 5  ;;  %v5103_v38 = vld [vmem:[%s5547_s28 + $0x78] sm:$0xff] }
 0x104   : > { %v1446_v50 = vadd.f32 %v1367_v33, %v1015_v1  ;;  %v2067_v21 = vrot.slane %v2065_v8, 5  ;;  %v2242_v27 = vpack.c.b16 %v2220_v60, %v2219_v62  ;;  %v4781_v62 = vld [vmem:[%s5547_s28 + $0x94] sm:$0xf]  ;;  %v5308_v60 = vld [vmem:[%s5547_s28 + $0x88] sm:$0xf] }
 0x105   : > { %v2062_v51 = vor.u32 %v2061_v31, %v2058_v30  ;;  %v1222_v30 = vrot.slane %v5308_v60, 5  ;;  %v1103_v31 = vld [vmem:[%s5547_s28 + $0x84] sm:$0xe] }
 0x106   : > { %v2072_v57 = vor.u32 %v2071_v35, %v2067_v21 }
 0x107   : > { %v2311_v20 = vpop.f32.mrf.mxu0  ;;  %v2063_v25 = vrot.slane %v2062_v51, 4 }
 0x108   : > { %v1657_v1 = vpop.f32.mrf.mxu3  ;;  %4627 = vmatmul.msk.bf16.gmra.mxu2 %vm730_vm4, %v1298_v48  ;;  %v1019_v13 = vpop.f32.mrf.mxu1  ;;  %v4779_v48 = vld [vmem:[%s5547_s28 + $0x8c] sm:$0x1] }
 0x109   : > { %v1736_v14 = vadd.f32 %v1657_v1, %v1446_v50  ;;  %v1020_v19 = vadd.f32 %v1019_v13, %v5912_v3  ;;  %v1216_v50 = vsel %vm5733_vm7, %v4611_v41, %v1215_v52  ;;  %v1219_v3 = vsel %vm5733_vm7, %v1217_v23, %v1218_v11 }
 0x10a   : > { %v2075_v61 = vshll.u32 %v4779_v48, 16  ;;  %v1278_v8 = vunpack.c.l.b16 %v1219_v3  ;;  %v2073_v1 = vrot.slane %v2072_v57, 4  ;;  %v2093_v3 = vshrl.u32 %v4781_v62, 16  ;;  %v5119_v57 = vld [vmem:[%s5547_s28 + $0x84] sm:$0xff] }
 0x10b   : > { %v1370_v33 = vpop.f32.mrf.mxu2  ;;  %v6025_v42 = vadd.f32 %v2311_v20, %v1736_v14  ;;  %v4780_v14 = vld [vmem:[%s5547_s28 + $0x90] sm:$0xf] }
 0x10c   : > { %v1447_v47 = vadd.f32 %v1370_v33, %v1018_v16  ;;  %v1277_v16 = vunpack.c.l.b16 %v1216_v50  ;;  %v2077_v13 = vrot.slane %v2075_v61, 5  ;;  %v2080_v33 = vshrl.u32 %v4780_v14, 16 }
 0x10d   : > { %4740 = vmatmul.msk.bf16.gmra.mxu3 %vm730_vm4, %v5118_v15  ;;  %v2083_v48 = vshll.u32 %v4780_v14, 16  ;;  %v2089_v50 = vshll.u32 %v4781_v62, 16  ;;  %v4612_v61 = vrot.slane %v1103_v31, 9 }
 0x10e   : > { %v1299_v23 = vpack.c.b16 %v1278_v8, %v1277_v16  ;;  %v2082_v8 = vrot.slane %v2080_v33, 4 }
 0x10f   : > { %v2314_v54 = vpop.f32.mrf.mxu0 }
 0x110   : > { %v1660_v4 = vpop.f32.mrf.mxu3  ;;  %v1022_v20 = vpop.f32.mrf.mxu1 }
 0x111   : > { %v1737_v9 = vadd.f32 %v1660_v4, %v1447_v47  ;;  %v1023_v52 = vadd.f32 %v1022_v20, %v5934_v44  ;;  %v2068_v44 = vsel %vm5559_vm3, %v2063_v25, %v2067_v21  ;;  %v2078_v47 = vsel %vm5559_vm3, %v2073_v1, %v2077_v13 }
 0x112   : > { %4805 = vmatmul.msk.bf16.gmra.mxu0 %vm730_vm4, %v2242_v27  ;;  %v5309_v27 = vld [vmem:[%s5547_s28 + $0x8c] sm:$0x1]  ;;  %v1224_v4 = vrot.slane %v1222_v30, 4  ;;  %v2221_v20 = vunpack.c.l.b16 %v2068_v44  ;;  %v2222_v16 = vunpack.c.l.b16 %v2078_v47  ;;  %v2085_v25 = vrot.slane %v2083_v48, 5  ;;  %v5104_v44 = vld [vmem:[%s5547_s28 + $0x84] sm:$0xff] }
 0x113   : > { %v1372_v11 = vpop.f32.mrf.mxu2  ;;  %4595 = vmatmul.msk.bf16.gmra.mxu1 %vm730_vm4, %v5103_v38  ;;  %v6038_v15 = vadd.f32 %v2314_v54, %v1737_v9  ;;  %v1225_v51 = vrot.slane %v5309_v27, 5  ;;  %v2095_v1 = vrot.slane %v2093_v3, 4 }
 0x114   : > { %v1448_v41 = vadd.f32 %v1372_v11, %v1020_v19  ;;  %v2091_v11 = vrot.slane %v2089_v50, 5  ;;  %v2243_v62 = vpack.c.b16 %v2222_v16, %v2221_v20  ;;  %v2086_v31 = vor.u32 %v2085_v25, %v2082_v8  ;;  %v4784_v20 = vld [vmem:[%s5547_s28 + $0xa0] sm:$0xf]  ;;  %v1104_v25 = vld [vmem:[%s5547_s28 + $0x90] sm:$0xe] }
 0x116   : > { %v2096_v33 = vor.u32 %v2095_v1, %v2091_v11 }
 0x117   : > { %v2316_v35 = vpop.f32.mrf.mxu0 }
 0x118   : > { %v1662_v19 = vpop.f32.mrf.mxu3  ;;  %4628 = vmatmul.msk.bf16.gmra.mxu2 %vm730_vm4, %v1299_v23  ;;  %v1024_v54 = vpop.f32.mrf.mxu1  ;;  %v4782_v23 = vld [vmem:[%s5547_s28 + $0x98] sm:$0x1] }
 0x119   : > { %v1738_v38 = vadd.f32 %v1662_v19, %v1448_v41  ;;  %v1025_v21 = vadd.f32 %v1024_v54, %v5952_v5  ;;  %v1223_v5 = vsel %vm5733_vm7, %v4612_v61, %v1222_v30  ;;  %v1226_v41 = vsel %vm5733_vm7, %v1224_v4, %v1225_v51  ;;  %v4783_v30 = vld [vmem:[%s5547_s28 + $0x9c] sm:$0xf] }
 0x11a   : > { %v2099_v47 = vshll.u32 %v4782_v23, 16  ;;  %v1280_v50 = vunpack.c.l.b16 %v1226_v41  ;;  %v2087_v19 = vrot.slane %v2086_v31, 4  ;;  %v2097_v54 = vrot.slane %v2096_v33, 4 }
 0x11b   : > { %v1375_v9 = vpop.f32.mrf.mxu2  ;;  %v6051_v13 = vadd.f32 %v2316_v35, %v1738_v38  ;;  %v2104_v16 = vshrl.u32 %v4783_v30, 16  ;;  %v2107_v8 = vshll.u32 %v4783_v30, 16  ;;  %v2117_v41 = vshrl.u32 %v4784_v20, 16 }
 0x11c   : > { %v1449_v14 = vadd.f32 %v1375_v9, %v1023_v52  ;;  %v1279_v52 = vunpack.c.l.b16 %v1223_v5  ;;  %v2101_v38 = vrot.slane %v2099_v47, 5  ;;  %v5310_v9 = vld [vmem:[%s5547_s28 + $0x94] sm:$0xf]  ;;  %v2113_v5 = vshll.u32 %v4784_v20, 16 }
 0x11d   : > { %4741 = vmatmul.msk.bf16.gmra.mxu3 %vm730_vm4, %v5119_v57  ;;  %v2106_v31 = vrot.slane %v2104_v16, 4  ;;  %v2109_v33 = vrot.slane %v2107_v8, 5 }
 0x11e   : > { %v1300_v4 = vpack.c.b16 %v1280_v50, %v1279_v52  ;;  %v2102_v23 = vsel %vm5559_vm3, %v2097_v54, %v2101_v38  ;;  %v4613_v52 = vrot.slane %v1104_v25, 9 }
 0x11f   : > { %v2319_v60 = vpop.f32.mrf.mxu0  ;;  %v2110_v20 = vor.u32 %v2109_v33, %v2106_v31  ;;  %v4787_v31 = vld [vmem:[%s5547_s28 + $0xac] sm:$0xf] }
 0x120   : > { %v1665_v48 = vpop.f32.mrf.mxu3  ;;  %v1027_v35 = vpop.f32.mrf.mxu1 }
 0x121   : > { %v1739_v3 = vadd.f32 %v1665_v48, %v1449_v14  ;;  %v1028_v27 = vadd.f32 %v1027_v35, %v5975_v56  ;;  %v1229_v56 = vrot.slane %v5310_v9, 5  ;;  %v2092_v14 = vsel %vm5559_vm3, %v2087_v19, %v2091_v11  ;;  %v5120_v48 = vld [vmem:[%s5547_s28 + $0x90] sm:$0xff] }
 0x122   : > { %4806 = vmatmul.msk.bf16.gmra.mxu0 %vm730_vm4, %v2243_v62  ;;  %v5311_v62 = vld [vmem:[%s5547_s28 + $0x98] sm:$0x1]  ;;  %v2223_v50 = vunpack.c.l.b16 %v2092_v14  ;;  %v2119_v19 = vrot.slane %v2117_v41, 4  ;;  %v5105_v9 = vld [vmem:[%s5547_s28 + $0x90] sm:$0xff] }
 0x123   : > { %v1377_v51 = vpop.f32.mrf.mxu2  ;;  %4596 = vmatmul.msk.bf16.gmra.mxu1 %vm730_vm4, %v5104_v44  ;;  %v6064_v57 = vadd.f32 %v2319_v60, %v1739_v3  ;;  %v1232_v60 = vrot.slane %v5311_v62, 5  ;;  %v1231_v11 = vrot.slane %v1229_v56, 4  ;;  %v2224_v3 = vunpack.c.l.b16 %v2102_v23 }
 0x124   : > { %v1450_v61 = vadd.f32 %v1377_v51, %v1025_v21  ;;  %v2115_v51 = vrot.slane %v2113_v5, 5  ;;  %v2111_v62 = vrot.slane %v2110_v20, 4  ;;  %v5313_v20 = vld [vmem:[%s5547_s28 + $0xa4] sm:$0x1] }
 0x125   : > { %v2244_v16 = vpack.c.b16 %v2224_v3, %v2223_v50  ;;  %v5312_v50 = vld [vmem:[%s5547_s28 + $0xa0] sm:$0xf] }
 0x126   : > { %v2120_v25 = vor.u32 %v2119_v19, %v2115_v51  ;;  %v1236_v3 = vrot.slane %v5312_v50, 5  ;;  %v1105_v19 = vld [vmem:[%s5547_s28 + $0x9c] sm:$0xe] }
 0x127   : > { %v2321_v1 = vpop.f32.mrf.mxu0 }
 0x128   : > { %v1667_v21 = vpop.f32.mrf.mxu3  ;;  %4629 = vmatmul.msk.bf16.gmra.mxu2 %vm730_vm4, %v1300_v4  ;;  %v1029_v44 = vpop.f32.mrf.mxu1  ;;  %v4785_v4 = vld [vmem:[%s5547_s28 + $0xa4] sm:$0x1] }
 0x129   : > { %v1740_v47 = vadd.f32 %v1667_v21, %v1450_v61  ;;  %v1030_v35 = vadd.f32 %v1029_v44, %v5993_v24  ;;  %v1230_v61 = vsel %vm5733_vm7, %v4613_v52, %v1229_v56  ;;  %v1233_v24 = vsel %vm5733_vm7, %v1231_v11, %v1232_v60  ;;  %v4786_v21 = vld [vmem:[%s5547_s28 + $0xa8] sm:$0xf] }
 0x12a   : > { %v2123_v14 = vshll.u32 %v4785_v4, 16  ;;  %v1282_v5 = vunpack.c.l.b16 %v1233_v24  ;;  %v2121_v60 = vrot.slane %v2120_v25, 4  ;;  %v2128_v52 = vshrl.u32 %v4786_v21, 16 }
 0x12b   : > { %v1380_v30 = vpop.f32.mrf.mxu2  ;;  %v6077_v54 = vadd.f32 %v2321_v1, %v1740_v47  ;;  %v2116_v11 = vsel %vm5559_vm3, %v2111_v62, %v2115_v51  ;;  %v2141_v4 = vshrl.u32 %v4787_v31, 16 }
 0x12c   : > { %v1451_v38 = vadd.f32 %v1380_v30, %v1028_v27  ;;  %v1281_v27 = vunpack.c.l.b16 %v1230_v61  ;;  %v2125_v44 = vrot.slane %v2123_v14, 5  ;;  %v2131_v30 = vshll.u32 %v4786_v21, 16  ;;  %v5121_v14 = vld [vmem:[%s5547_s28 + $0x9c] sm:$0xff] }
 0x12d   : > { %4742 = vmatmul.msk.bf16.gmra.mxu3 %vm730_vm4, %v5120_v48  ;;  %v2130_v51 = vrot.slane %v2128_v52, 4 }
 0x12e   : > { %v1301_v48 = vpack.c.b16 %v1282_v5, %v1281_v27  ;;  %v2126_v24 = vsel %vm5559_vm3, %v2121_v60, %v2125_v44  ;;  %v1238_v27 = vrot.slane %v1236_v3, 4  ;;  %v2133_v5 = vrot.slane %v2131_v30, 5  ;;  %v4788_v44 = vld [vmem:[%s5547_s28 + $0xb0] sm:$0x1] }
 0x12f   : > { %v2324_v8 = vpop.f32.mrf.mxu0  ;;  %v2226_v62 = vunpack.c.l.b16 %v2126_v24 }
 0x130   : > { %v1670_v1 = vpop.f32.mrf.mxu3  ;;  %v1032_v23 = vpop.f32.mrf.mxu1  ;;  %v2134_v52 = vor.u32 %v2133_v5, %v2130_v51 }
 0x131   : > { %v1741_v41 = vadd.f32 %v1670_v1, %v1451_v38  ;;  %v2137_v38 = vshll.u32 %v4787_v31, 16  ;;  %v4614_v1 = vrot.slane %v1105_v19, 9  ;;  %v5106_v19 = vld [vmem:[%s5547_s28 + $0x9c] sm:$0xff] }
 0x132   : > { %4807 = vmatmul.msk.bf16.gmra.mxu0 %vm730_vm4, %v2244_v16  ;;  %v1239_v16 = vrot.slane %v5313_v20, 5 }
 0x133   : > { %v1382_v56 = vpop.f32.mrf.mxu2  ;;  %4597 = vmatmul.msk.bf16.gmra.mxu1 %vm730_vm4, %v5105_v9  ;;  %v6090_v33 = vadd.f32 %v2324_v8, %v1741_v41  ;;  %v2225_v8 = vunpack.c.l.b16 %v2116_v11  ;;  %v1033_v41 = vadd.f32 %v1032_v23, %v5828_v7  ;;  %v2139_v21 = vrot.slane %v2137_v38, 5 }
 0x134   : > { %v1452_v47 = vadd.f32 %v1382_v56, %v1030_v35  ;;  %v2143_v56 = vrot.slane %v2141_v4, 4  ;;  %v2147_v11 = vshll.u32 %v4788_v44, 16 }
 0x135   : > { %v2245_v7 = vpack.c.b16 %v2226_v62, %v2225_v8  ;;  %v4789_v8 = vld [vmem:[%s5547_s28 + $0xb4] sm:$0xf] }
 0x136   : > { %v2144_v23 = vor.u32 %v2143_v56, %v2139_v21  ;;  %v2149_v51 = vrot.slane %v2147_v11, 5  ;;  %v2155_v44 = vshll.u32 %v4789_v8, 16 }
 0x137   : > { %v2326_v61 = vpop.f32.mrf.mxu0 }
 0x138   : > { %v1672_v35 = vpop.f32.mrf.mxu3  ;;  %4630 = vmatmul.msk.bf16.gmra.mxu2 %vm730_vm4, %v1301_v48  ;;  %v1034_v9 = vpop.f32.mrf.mxu1  ;;  %v1240_v48 = vsel %vm5733_vm7, %v1238_v27, %v1239_v16  ;;  %v2145_v16 = vrot.slane %v2144_v23, 4 }
 0x139   : > { %v1742_v25 = vadd.f32 %v1672_v35, %v1452_v47  ;;  %v1237_v47 = vsel %vm5733_vm7, %v4614_v1, %v1236_v3  ;;  %v1284_v24 = vunpack.c.l.b16 %v1240_v48  ;;  %v2135_v35 = vrot.slane %v2134_v52, 4  ;;  %v5315_v52 = vld [vmem:[%s5547_s28 + $0xb0] sm:$0x1] }
 0x13a   : > { %v1035_v3 = vadd.f32 %v1034_v9, %v5844_v34  ;;  %v2152_v34 = vshrl.u32 %v4789_v8, 16  ;;  %v2150_v9 = vsel %vm5559_vm3, %v2145_v16, %v2149_v51 }
 0x13b   : > { %v1385_v60 = vpop.f32.mrf.mxu2  ;;  %v6103_v31 = vadd.f32 %v2326_v61, %v1742_v25  ;;  %v1283_v61 = vunpack.c.l.b16 %v1237_v47  ;;  %v2140_v56 = vsel %vm5559_vm3, %v2135_v35, %v2139_v21 }
 0x13c   : > { %v1453_v50 = vadd.f32 %v1385_v60, %v1033_v41  ;;  %v5314_v41 = vld [vmem:[%s5547_s28 + $0xac] sm:$0xf]  ;;  %v1106_v60 = vld [vmem:[%s5547_s28 + $0xa8] sm:$0xe] }
 0x13d   : > { %4743 = vmatmul.msk.bf16.gmra.mxu3 %vm730_vm4, %v5121_v14  ;;  %v4790_v14 = vld [vmem:[%s5547_s28 + $0xb8] sm:$0xf]  ;;  %v1302_v5 = vpack.c.b16 %v1284_v24, %v1283_v61  ;;  %v1243_v62 = vrot.slane %v5314_v41, 5  ;;  %v2227_v61 = vunpack.c.l.b16 %v2140_v56  ;;  %v2228_v24 = vunpack.c.l.b16 %v2150_v9  ;;  %v4791_v41 = vld [vmem:[%s5547_s28 + $0xbc] sm:$0x1] }
 0x13e   : > { %v2165_v47 = vshrl.u32 %v4790_v14, 16 }
 0x13f   : > { %v2329_v30 = vpop.f32.mrf.mxu0 }
 0x140   : > { %v1675_v38 = vpop.f32.mrf.mxu3  ;;  %v1037_v4 = vpop.f32.mrf.mxu1  ;;  %v2167_v51 = vrot.slane %v2165_v47, 4 }
 0x141   : > { %v1743_v20 = vadd.f32 %v1675_v38, %v1453_v50  ;;  %v2161_v50 = vshll.u32 %v4790_v14, 16  ;;  %v5122_v38 = vld [vmem:[%s5547_s28 + $0xa8] sm:$0xff]  ;;  %v1038_v35 = vadd.f32 %v1037_v4, %v5864_v58  ;;  %v2246_v58 = vpack.c.b16 %v2228_v24, %v2227_v61 }
 0x142   : > { %4808 = vmatmul.msk.bf16.gmra.mxu0 %vm730_vm4, %v2245_v7  ;;  %v1246_v7 = vrot.slane %v5315_v52, 5 }
 0x143   : > { %v1387_v25 = vpop.f32.mrf.mxu2  ;;  %4598 = vmatmul.msk.bf16.gmra.mxu1 %vm730_vm4, %v5106_v19  ;;  %v6116_v1 = vadd.f32 %v2329_v30, %v1743_v20  ;;  %v4615_v30 = vrot.slane %v1106_v60, 9  ;;  %v1245_v19 = vrot.slane %v1243_v62, 4  ;;  %v2154_v20 = vrot.slane %v2152_v34, 4  ;;  %v5107_v34 = vld [vmem:[%s5547_s28 + $0xa8] sm:$0xff] }
 0x144   : > { %v1454_v27 = vadd.f32 %v1387_v25, %v1035_v3  ;;  %v2157_v3 = vrot.slane %v2155_v44, 5  ;;  %v6128_v16 = vrot.slane %v2161_v50, 5  ;;  %v2171_v50 = vshll.u32 %v4791_v41, 16 }
 0x146   : > { %v2158_v4 = vor.u32 %v2157_v3, %v2154_v20  ;;  %v2168_v56 = vor.u32 %v2167_v51, %v6128_v16  ;;  %v2173_v20 = vrot.slane %v2171_v50, 5 }
 0x147   : > { %v2331_v48 = vpop.f32.mrf.mxu0 }
 0x148   : > { %v1677_v23 = vpop.f32.mrf.mxu3  ;;  %4631 = vmatmul.msk.bf16.gmra.mxu2 %vm730_vm4, %v1302_v5  ;;  %v1039_v11 = vpop.f32.mrf.mxu1  ;;  %v1244_v5 = vsel %vm5733_vm7, %v4615_v30, %v1243_v62  ;;  %v4792_v62 = vld [vmem:[%s5547_s28 + $0xc0] sm:$0xf]  ;;  %v5316_v30 = vld [vmem:[%s5547_s28 + $0x10] sm:$0xf] }
 0x149   : > { %v1744_v21 = vadd.f32 %v1677_v23, %v1454_v27  ;;  %v1247_v27 = vsel %vm5733_vm7, %v1245_v19, %v1246_v7  ;;  %v1285_v9 = vunpack.c.l.b16 %v1244_v5  ;;  %v4793_v23 = vld [vmem:[%s5547_s28 + $0xc4] sm:$0xf]  ;;  %v2487_v7 = vrot.slane %v5316_v30, 5 }
 0x14a   : > { %v1286_v44 = vunpack.c.l.b16 %v1247_v27  ;;  %v1040_v19 = vadd.f32 %v1039_v11, %v5881_v28  ;;  %v2179_v3 = vshll.u32 %v4792_v62, 16  ;;  %v5317_v27 = vld [vmem:[%s5547_s28 + $0xb8] sm:$0xf]  ;;  %v1107_v11 = vld [vmem:[%s5547_s28 + $0xb4] sm:$0xe] }
 0x14b   : > { %v1390_v8 = vpop.f32.mrf.mxu2  ;;  %v6130_v25 = vadd.f32 %v2331_v48, %v1744_v21  ;;  %v2159_v21 = vrot.slane %v2158_v4, 4  ;;  %v1250_v41 = vrot.slane %v5317_v27, 5  ;;  %v2489_v4 = vrot.slane %v2487_v7, 4  ;;  %v5123_v27 = vld [vmem:[%s5547_s28 + $0xb4] sm:$0xff] }
 0x14c   : > { %v1455_v14 = vadd.f32 %v1390_v8, %v1038_v35  ;;  %v1303_v24 = vpack.c.b16 %v1286_v44, %v1285_v9  ;;  %v2176_v35 = vshrl.u32 %v4792_v62, 16  ;;  %v2185_v8 = vshll.u32 %v4793_v23, 16 }
 0x14d   : > { %4744 = vmatmul.msk.bf16.gmra.mxu3 %vm730_vm4, %v5122_v38  ;;  %v2169_v38 = vrot.slane %v2168_v56, 4  ;;  %v5319_v56 = vld [vmem:[%s5547_s28 + $0x14] sm:$0x1]  ;;  %v2164_v9 = vsel %vm5559_vm3, %v2159_v21, %v6128_v16 }
 0x14e   : > { %v2178_v62 = vrot.slane %v2176_v35, 4  ;;  %v2229_v21 = vunpack.c.l.b16 %v2164_v9 }
 0x14f   : > { %v2334_v60 = vpop.f32.mrf.mxu0  ;;  %v2174_v44 = vsel %vm5559_vm3, %v2169_v38, %v2173_v20 }
 0x150   : > { %v1680_v47 = vpop.f32.mrf.mxu3  ;;  %v1042_v48 = vpop.f32.mrf.mxu1  ;;  %v2230_v38 = vunpack.c.l.b16 %v2174_v44 }
 0x151   : > { %v1745_v52 = vadd.f32 %v1680_v47, %v1455_v14  ;;  %v2189_v14 = vshrl.u32 %v4793_v23, 16  ;;  %v2490_v47 = vrot.slane %v5319_v56, 5  ;;  %v6158_v23 = vrot.slane %v2185_v8, 5 }
 0x152   : > { %4809 = vmatmul.msk.bf16.gmra.mxu0 %vm730_vm4, %v2246_v58  ;;  %v5318_v58 = vld [vmem:[%s5547_s28 + $0xbc] sm:$0x1]  ;;  %v1252_v56 = vrot.slane %v1250_v41, 4  ;;  %v1043_v16 = vadd.f32 %v1042_v48, %v5901_v53 }
 0x153   : > { %v1392_v61 = vpop.f32.mrf.mxu2  ;;  %4599 = vmatmul.msk.bf16.gmra.mxu1 %vm730_vm4, %v5107_v34  ;;  %v6146_v5 = vadd.f32 %v2334_v60, %v1745_v52  ;;  %v1253_v28 = vrot.slane %v5318_v58, 5  ;;  %v2181_v52 = vrot.slane %v2179_v3, 5  ;;  %v2191_v30 = vrot.slane %v2189_v14, 4 }
 0x154   : > { %v1456_v51 = vadd.f32 %v1392_v61, %v1040_v19  ;;  %v4812_v19 = vld [vmem:[%s5547_s28 + $0xc] sm:$0xe]  ;;  %v4616_v58 = vrot.slane %v1107_v11, 9  ;;  %v2491_v3 = vsel %vm5733_vm7, %v2489_v4, %v2490_v47  ;;  %v4974_v4 = vld [vmem:[%s5547_s28 + $0x18] sm:$0xf] }
 0x155   : > { %7046 = vst [vmem:[#allocation6_spill] sm:$0xff] %v6146_v5  ;;  %v4828_v5 = vrot.slane %v4812_v19, 9  ;;  %v2182_v8 = vor.u32 %v2181_v52, %v2178_v62  ;;  %v2600_v11 = vunpack.c.l.b16 %v2491_v3  ;;  %v1254_v48 = vsel %vm5733_vm7, %v1252_v56, %v1253_v28  ;;  %v5108_v62 = vld [vmem:[%s5547_s28 + $0xb4] sm:$0xff]  ;;  %v6181_v52 = vld [vmem:[%s5547_s28 + $0x1c] sm:$0xf] }
 0x156   : > { %v1251_v53 = vsel %vm5733_vm7, %v4616_v58, %v1250_v41  ;;  %v2192_v9 = vor.u32 %v2191_v30, %v6158_v23  ;;  %v1288_v41 = vunpack.c.l.b16 %v1254_v48  ;;  %v3158_v56 = vshrl.u32 %v4974_v4, 16 }
 0x157   : > { %v2336_v34 = vpop.f32.mrf.mxu0  ;;  %v2488_v35 = vsel %vm5733_vm7, %v4828_v5, %v2487_v7  ;;  %v2247_v7 = vpack.c.b16 %v2230_v38, %v2229_v21  ;;  %v2183_v58 = vrot.slane %v2182_v8, 4  ;;  %v3161_v30 = vshll.u32 %v4974_v4, 16 }
 0x158   : > { %v1682_v60 = vpop.f32.mrf.mxu3  ;;  %4632 = vmatmul.msk.bf16.gmra.mxu2 %vm730_vm4, %v1303_v24  ;;  %v1044_v50 = vpop.f32.mrf.mxu1  ;;  %v4794_v24 = vld [vmem:[%s5547_s28 + $0xc8] sm:$0x1]  ;;  %v2599_v14 = vunpack.c.l.b16 %v2488_v35  ;;  %v2193_v28 = vrot.slane %v2192_v9, 4  ;;  %v3171_v38 = vshrl.u32 %v6181_v52, 16  ;;  %v3160_v8 = vrot.slane %v3158_v56, 4 }
 0x159   : > { %v1746_v61 = vadd.f32 %v1682_v60, %v1456_v51  ;;  %v2195_v5 = vshll.u32 %v4794_v24, 16  ;;  %v1045_v21 = vadd.f32 %v1044_v50, %v5921_v17  ;;  %v2188_v17 = vsel %vm5559_vm3, %v2183_v58, %v6158_v23  ;;  %v4976_v9 = vld [vmem:[%s5547_s28 + $0x20] sm:$0x1]  ;;  %v4977_v56 = vld [vmem:[%s5547_s28 + $0x24] sm:$0xf] }
 0x15a   : > { %v6174_v44 = vpack.c.b16 %v2600_v11, %v2599_v14  ;;  %v3163_v14 = vrot.slane %v3161_v30, 5  ;;  %v3177_v58 = vshll.u32 %v4976_v9, 16  ;;  %v6201_v30 = vld [vmem:[%s5547_s28 + $0x28] sm:$0xf] }
 0x15b   : > { %v1395_v20 = vpop.f32.mrf.mxu2  ;;  %v6177_v47 = vadd.f32 %v2336_v34, %v1746_v61  ;;  %v2197_v34 = vrot.slane %v2195_v5, 5  ;;  %v3167_v61 = vshll.u32 %v6181_v52, 16 }
 0x15c   : > { %v1457_v51 = vadd.f32 %v1395_v20, %v1043_v16  ;;  %v1287_v16 = vunpack.c.l.b16 %v1251_v53  ;;  %v3173_v53 = vrot.slane %v3171_v38, 4  ;;  %v3179_v38 = vrot.slane %v3177_v58, 5 }
 0x15d   : > { %4745 = vmatmul.msk.bf16.gmra.mxu3 %vm730_vm4, %v5123_v27  ;;  %v2198_v50 = vsel %vm5559_vm3, %v2193_v28, %v2197_v34  ;;  %v3169_v11 = vrot.slane %v3167_v61, 5 }
 0x15e   : > { %v1304_v3 = vpack.c.b16 %v1288_v41, %v1287_v16  ;;  %v3164_v16 = vor.u32 %v3163_v14, %v3160_v8  ;;  %v3185_v8 = vshll.u32 %v4977_v56, 16  ;;  %v3191_v14 = vshll.u32 %v6201_v30, 16 }
 0x15f   : > { %v2339_v60 = vpop.f32.mrf.mxu0  ;;  %v3174_v41 = vor.u32 %v3173_v53, %v3169_v11 }
 0x160   : > { %v1685_v19 = vpop.f32.mrf.mxu3  ;;  %v1047_v27 = vpop.f32.mrf.mxu1  ;;  %v3165_v34 = vrot.slane %v3164_v16, 4 }
 0x161   : > { %v1747_v20 = vadd.f32 %v1685_v19, %v1457_v51  ;;  %v2232_v19 = vunpack.c.l.b16 %v2198_v50  ;;  %v1048_v23 = vadd.f32 %v1047_v27, %v5944_v2  ;;  %v3175_v61 = vrot.slane %v3174_v41, 4 }
 0x162   : > { %4810 = vmatmul.msk.bf16.gmra.mxu0 %vm730_vm4, %v2247_v7 }
 0x163   : > { %v1397_v24 = vpop.f32.mrf.mxu2  ;;  %4600 = vmatmul.msk.bf16.gmra.mxu1 %vm730_vm4, %v5108_v62  ;;  %v6188_v51 = vadd.f32 %v2339_v60, %v1747_v20  ;;  %v5124_v60 = vld [vmem:[%s5547_s28 + $0xc0] sm:$0xff]  ;;  %v2231_v62 = vunpack.c.l.b16 %v2188_v17  ;;  %v3195_v17 = vshrl.u32 %v6201_v30, 16  ;;  %v3180_v41 = vsel %vm5559_vm3, %v3175_v61, %v3179_v38  ;;  %v6227_v38 = vld [vmem:[%s5547_s28 + $0x2c] sm:$0x1] }
 0x164   : > { %v1458_v35 = vadd.f32 %v1397_v24, %v1045_v21  ;;  %v5039_v24 = vld [vmem:[%s5547_s28 + $0x18] sm:$0xe]  ;;  %v3544_v61 = vunpack.c.l.b16 %v3180_v41 }
 0x165   : > { %v2248_v21 = vpack.c.b16 %v2232_v19, %v2231_v62  ;;  %v5321_v62 = vld [vmem:[%s5547_s28 + $0x20] sm:$0x1] }
 0x166   : > { %v2497_v19 = vrot.slane %v5321_v62, 5 }
 0x167   : > { %v2341_v48 = vpop.f32.mrf.mxu0 }
 0x168   : > { %v1687_v7 = vpop.f32.mrf.mxu3  ;;  %4633 = vmatmul.msk.bf16.gmra.mxu2 %vm730_vm4, %v1304_v3  ;;  %v1049_v5 = vpop.f32.mrf.mxu1  ;;  %v3182_v3 = vshrl.u32 %v4977_v56, 16 }
 0x169   : > { %v1748_v4 = vadd.f32 %v1687_v7, %v1458_v35  ;;  %v3829_v35 = vrot.slane %v6181_v52, 5  ;;  %v5320_v7 = vld [vmem:[%s5547_s28 + $0x1c] sm:$0xf]  ;;  %v3170_v52 = vsel %vm5559_vm3, %v3165_v34, %v3169_v11  ;;  %v3197_v11 = vrot.slane %v3195_v17, 4 }
 0x16b   : > { %v1400_v20 = vpop.f32.mrf.mxu2  ;;  %v6206_v2 = vadd.f32 %v2341_v48, %v1748_v4  ;;  %v5055_v48 = vrot.slane %v5039_v24, 9  ;;  %v4813_v4 = vld [vmem:[%s5547_s28 + $0x18] sm:$0xe]  ;;  %v3831_v58 = vrot.slane %v3829_v35, 4 }
 0x16c   : > { %v1459_v28 = vadd.f32 %v1400_v20, %v1048_v23  ;;  %v1050_v23 = vadd.f32 %v1049_v5, %v5964_v29  ;;  %v3832_v20 = vrot.slane %v4976_v9, 5  ;;  %v5125_v24 = vld [vmem:[%s5547_s28 + $0x18] sm:$0xff]  ;;  %v3543_v5 = vunpack.c.l.b16 %v3170_v52 }
 0x16d   : > { %4746 = vmatmul.msk.bf16.gmra.mxu3 %vm730_vm4, %v5124_v60  ;;  %7047 = vst [vmem:[#allocation7_spill] sm:$0xff] %v6206_v2  ;;  %v2494_v60 = vrot.slane %v5320_v7, 5  ;;  %v6221_v7 = vrot.slane %v3191_v14, 5  ;;  %v3830_v2 = vsel %vm5733_vm7, %v5055_v48, %v3829_v35  ;;  %v3201_v35 = vshll.u32 %v6227_v38, 16 }
 0x16e   : > { %v3575_v48 = vpack.c.b16 %v3544_v61, %v3543_v5  ;;  %v5322_v5 = vld [vmem:[%s5547_s28 + $0x28] sm:$0xf] }
 0x16f   : > { %v2344_v27 = vpop.f32.mrf.mxu0  ;;  %v2496_v62 = vrot.slane %v2494_v60, 4  ;;  %v2501_v61 = vrot.slane %v5322_v5, 5 }
 0x170   : > { %v1690_v50 = vpop.f32.mrf.mxu3  ;;  %v1052_v53 = vpop.f32.mrf.mxu1 }
 0x171   : > { %v1749_v16 = vadd.f32 %v1690_v50, %v1459_v28  ;;  %v3184_v28 = vrot.slane %v3182_v3, 4  ;;  %v3187_v50 = vrot.slane %v3185_v8, 5  ;;  %v2498_v17 = vsel %vm5733_vm7, %v2496_v62, %v2497_v19  ;;  %v6246_v62 = vld [vmem:[%s5547_s28 + $0x34] sm:$0xf] }
 0x172   : > { %4811 = vmatmul.msk.bf16.gmra.mxu0 %vm730_vm4, %v2248_v21  ;;  %v4829_v21 = vrot.slane %v4813_v4, 9  ;;  %v1053_v4 = vadd.f32 %v1052_v53, %v5846_v37 }
 0x173   : > { %v1402_v56 = vpop.f32.mrf.mxu2  ;;  %4845 = vmatmul.msk.bf16.vlgmr.msra.gmra.mxu1 %vm730_vm4, %v6174_v44  ;;  %v6224_v29 = vadd.f32 %v2344_v27, %v1749_v16  ;;  %v3833_v44 = vsel %vm5733_vm7, %v3831_v58, %v3832_v20  ;;  %v3188_v3 = vor.u32 %v3187_v50, %v3184_v28  ;;  %v3198_v16 = vor.u32 %v3197_v11, %v6221_v7  ;;  %v5040_v11 = vld [vmem:[%s5547_s28 + $0x24] sm:$0xe] }
 0x174   : > { %v1460_v34 = vadd.f32 %v1402_v56, %v1050_v23  ;;  %v2495_v27 = vsel %vm5733_vm7, %v4829_v21, %v2494_v60  ;;  %v3941_v23 = vunpack.c.l.b16 %v3830_v2  ;;  %v3942_v41 = vunpack.c.l.b16 %v3833_v44 }
 0x175   : > { %v2601_v20 = vunpack.c.l.b16 %v2495_v27  ;;  %v2602_v60 = vunpack.c.l.b16 %v2498_v17  ;;  %v3189_v28 = vrot.slane %v3188_v3, 4  ;;  %v3199_v19 = vrot.slane %v3198_v16, 4 }
 0x176   : > { %v3203_v50 = vrot.slane %v3201_v35, 5  ;;  %v3836_v21 = vrot.slane %v6201_v30, 5  ;;  %v5056_v17 = vrot.slane %v5040_v11, 9  ;;  %v4814_v30 = vld [vmem:[%s5547_s28 + $0x24] sm:$0xe] }
 0x177   : > { %v2346_v9 = vpop.f32.mrf.mxu0  ;;  %v2632_v53 = vpack.c.b16 %v2602_v60, %v2601_v20 }
 0x178   : > { %v1692_v8 = vpop.f32.mrf.mxu3  ;;  %4958 = vmatmul.msk.bf16.vlgmr.msra.gmra.mxu2 %vm730_vm4, %v5125_v24  ;;  %v1054_v14 = vpop.f32.mrf.mxu1  ;;  %v4980_v24 = vld [vmem:[%s5547_s28 + $0x30] sm:$0xf]  ;;  %v3204_v27 = vsel %vm5559_vm3, %v3199_v19, %v3203_v50  ;;  %v5126_v50 = vld [vmem:[%s5547_s28 + $0x24] sm:$0xff] }
 0x179   : > { %v1750_v52 = vadd.f32 %v1692_v8, %v1460_v34  ;;  %v3973_v34 = vpack.c.b16 %v3942_v41, %v3941_v23  ;;  %v3194_v8 = vsel %vm5559_vm3, %v3189_v28, %v6221_v7  ;;  %v3206_v16 = vshrl.u32 %v4980_v24, 16  ;;  %v5323_v41 = vld [vmem:[%s5547_s28 + $0x2c] sm:$0x1] }
 0x17a   : > { %v3838_v23 = vrot.slane %v3836_v21, 4  ;;  %v3839_v7 = vrot.slane %v6227_v38, 5  ;;  %v3545_v60 = vunpack.c.l.b16 %v3194_v8  ;;  %v2503_v28 = vrot.slane %v2501_v61, 4 }
 0x17b   : > { %v1405_v58 = vpop.f32.mrf.mxu2  ;;  %v6248_v37 = vadd.f32 %v2346_v9, %v1750_v52  ;;  %v3209_v9 = vshll.u32 %v4980_v24, 16  ;;  %v3215_v52 = vshll.u32 %v6246_v62, 16  ;;  %v3546_v11 = vunpack.c.l.b16 %v3204_v27 }
 0x17c   : > { %v1461_v56 = vadd.f32 %v1405_v58, %v1053_v4  ;;  %v1055_v4 = vadd.f32 %v1054_v14, %v5867_v63  ;;  %v2504_v58 = vrot.slane %v5323_v41, 5  ;;  %v3837_v24 = vsel %vm5733_vm7, %v5056_v17, %v3836_v21 }
 0x17d   : > { %5023 = vmatmul.msk.bf16.vlgmr.msra.gmra.mxu3 %vm730_vm4, %v3575_v48  ;;  %v3219_v48 = vshrl.u32 %v6246_v62, 16  ;;  %v3208_v63 = vrot.slane %v3206_v16, 4  ;;  %v3211_v14 = vrot.slane %v3209_v9, 5  ;;  %v6269_v38 = vrot.slane %v3215_v52, 5 }
 0x17e   : > { %v2505_v27 = vsel %vm5733_vm7, %v2503_v28, %v2504_v58  ;;  %v3943_v17 = vunpack.c.l.b16 %v3837_v24  ;;  %v5041_v24 = vld [vmem:[%s5547_s28 + $0x30] sm:$0xe] }
 0x17f   : > { %v2349_v2 = vpop.f32.mrf.mxu0  ;;  %v3221_v5 = vrot.slane %v3219_v48, 4  ;;  %v3212_v52 = vor.u32 %v3211_v14, %v3208_v63 }
 0x180   : > { %v1695_v44 = vpop.f32.mrf.mxu3  ;;  %v1057_v3 = vpop.f32.mrf.mxu1 }
 0x181   : > { %v1751_v35 = vadd.f32 %v1695_v44, %v1461_v56  ;;  %v4830_v56 = vrot.slane %v4814_v30, 9  ;;  %v6278_v30 = vld [vmem:[%s5547_s28 + $0x38] sm:$0x1]  ;;  %v3222_v48 = vor.u32 %v3221_v5, %v6269_v38  ;;  %v3213_v28 = vrot.slane %v3212_v52, 4 }
 0x182   : > { %5072 = vmatmul.msk.bf16.vlgmr.msra.gmra.mxu0 %vm730_vm4, %v3973_v34 }
 0x183   : > { %v1407_v20 = vpop.f32.mrf.mxu2  ;;  %4846 = vmatmul.msk.bf16.gmra.mxu1 %vm730_vm4, %v2632_v53  ;;  %v6267_v34 = vadd.f32 %v2349_v2, %v1751_v35  ;;  %v3840_v53 = vsel %vm5733_vm7, %v3838_v23, %v3839_v7  ;;  %v2502_v8 = vsel %vm5733_vm7, %v4830_v56, %v2501_v61  ;;  %v3576_v2 = vpack.c.b16 %v3546_v11, %v3545_v60  ;;  %v6286_v56 = vld [vmem:[%s5547_s28 + $0x40] sm:$0xf] }
 0x184   : > { %v1462_v19 = vadd.f32 %v1407_v20, %v1055_v4  ;;  %v3944_v9 = vunpack.c.l.b16 %v3840_v53  ;;  %v1058_v61 = vadd.f32 %v1057_v3, %v5884_v22  ;;  %v2603_v4 = vunpack.c.l.b16 %v2502_v8  ;;  %v4983_v20 = vld [vmem:[%s5547_s28 + $0x3c] sm:$0xf] }
 0x185   : > { %v2604_v23 = vunpack.c.l.b16 %v2505_v27  ;;  %v3225_v7 = vshll.u32 %v6278_v30, 16  ;;  %v3843_v22 = vrot.slane %v6246_v62, 5  ;;  %v3230_v14 = vshrl.u32 %v4983_v20, 16 }
 0x186   : > { %v3974_v60 = vpack.c.b16 %v3944_v9, %v3943_v17  ;;  %v3233_v5 = vshll.u32 %v4983_v20, 16  ;;  %v3239_v53 = vshll.u32 %v6286_v56, 16  ;;  %v3243_v8 = vshrl.u32 %v6286_v56, 16  ;;  %v5325_v9 = vld [vmem:[%s5547_s28 + $0x38] sm:$0x1] }
 0x187   : > { %v2351_v44 = vpop.f32.mrf.mxu0  ;;  %v3227_v11 = vrot.slane %v3225_v7, 5  ;;  %v2511_v52 = vrot.slane %v5325_v9, 5  ;;  %v3846_v62 = vrot.slane %v6278_v30, 5  ;;  %v3845_v7 = vrot.slane %v3843_v22, 4  ;;  %v6313_v9 = vld [vmem:[%s5547_s28 + $0x44] sm:$0x1] }
 0x188   : > { %v1697_v21 = vpop.f32.mrf.mxu3  ;;  %4959 = vmatmul.msk.bf16.gmra.mxu2 %vm730_vm4, %v5126_v50  ;;  %v1059_v16 = vpop.f32.mrf.mxu1  ;;  %v2633_v50 = vpack.c.b16 %v2604_v23, %v2603_v4  ;;  %v3218_v4 = vsel %vm5559_vm3, %v3213_v28, %v6269_v38  ;;  %v3235_v20 = vrot.slane %v3233_v5, 5  ;;  %v6307_v30 = vrot.slane %v3239_v53, 5 }
 0x189   : > { %v1752_v35 = vadd.f32 %v1697_v21, %v1462_v19  ;;  %v3223_v19 = vrot.slane %v3222_v48, 4  ;;  %v3547_v38 = vunpack.c.l.b16 %v3218_v4 }
 0x18b   : > { %v1410_v41 = vpop.f32.mrf.mxu2  ;;  %v6291_v3 = vadd.f32 %v2351_v44, %v1752_v35  ;;  %v4815_v44 = vld [vmem:[%s5547_s28 + $0x30] sm:$0xe]  ;;  %v1060_v35 = vadd.f32 %v1059_v16, %v5905_v55  ;;  %v3228_v23 = vsel %vm5559_vm3, %v3223_v19, %v3227_v11 }
 0x18c   : > { %v1463_v58 = vadd.f32 %v1410_v41, %v1058_v61  ;;  %v5057_v61 = vrot.slane %v5041_v24, 9  ;;  %v3245_v24 = vrot.slane %v3243_v8, 4  ;;  %v4831_v55 = vrot.slane %v4815_v44, 9 }
 0x18d   : > { %5024 = vmatmul.msk.bf16.gmra.mxu3 %vm730_vm4, %v3576_v2  ;;  %v5324_v2 = vld [vmem:[%s5547_s28 + $0x34] sm:$0xf]  ;;  %v3548_v28 = vunpack.c.l.b16 %v3228_v23 }
 0x18e   : > { %v2508_v17 = vrot.slane %v5324_v2, 5  ;;  %v3844_v11 = vsel %vm5733_vm7, %v5057_v61, %v3843_v22  ;;  %v3249_v22 = vshll.u32 %v6313_v9, 16 }
 0x18f   : > { %v2354_v63 = vpop.f32.mrf.mxu0  ;;  %v3577_v44 = vpack.c.b16 %v3548_v28, %v3547_v38  ;;  %v5326_v28 = vld [vmem:[%s5547_s28 + $0x40] sm:$0xf] }
 0x190   : > { %v1700_v27 = vpop.f32.mrf.mxu3  ;;  %v1062_v21 = vpop.f32.mrf.mxu1  ;;  %v2510_v16 = vrot.slane %v2508_v17, 4 }
 0x191   : > { %v1753_v48 = vadd.f32 %v1700_v27, %v1463_v58  ;;  %v3232_v58 = vrot.slane %v3230_v14, 4  ;;  %v5127_v27 = vld [vmem:[%s5547_s28 + $0x30] sm:$0xff] }
 0x192   : > { %5073 = vmatmul.msk.bf16.gmra.mxu0 %vm730_vm4, %v3974_v60  ;;  %v2512_v8 = vsel %vm5733_vm7, %v2510_v16, %v2511_v52  ;;  %v6332_v16 = vld [vmem:[%s5547_s28 + $0x4c] sm:$0xf] }
 0x193   : > { %v1412_v41 = vpop.f32.mrf.mxu2  ;;  %4847 = vmatmul.msk.bf16.gmra.mxu1 %vm730_vm4, %v2633_v50  ;;  %v6310_v2 = vadd.f32 %v2354_v63, %v1753_v48  ;;  %v3847_v50 = vsel %vm5733_vm7, %v3845_v7, %v3846_v62  ;;  %v3236_v14 = vor.u32 %v3235_v20, %v3232_v58  ;;  %v2509_v63 = vsel %vm5733_vm7, %v4831_v55, %v2508_v17 }
 0x194   : > { %v1464_v60 = vadd.f32 %v1412_v41, %v1060_v35  ;;  %v3246_v48 = vor.u32 %v3245_v24, %v6307_v30  ;;  %v1063_v62 = vadd.f32 %v1062_v21, %v5928_v26  ;;  %v3945_v35 = vunpack.c.l.b16 %v3844_v11  ;;  %v5042_v24 = vld [vmem:[%s5547_s28 + $0x3c] sm:$0xe] }
 0x195   : > { %v3946_v4 = vunpack.c.l.b16 %v3847_v50  ;;  %v2605_v7 = vunpack.c.l.b16 %v2509_v63  ;;  %v2606_v17 = vunpack.c.l.b16 %v2512_v8  ;;  %v3237_v58 = vrot.slane %v3236_v14, 4 }
 0x196   : > { %v3247_v52 = vrot.slane %v3246_v48, 4  ;;  %v3251_v20 = vrot.slane %v3249_v22, 5  ;;  %v3850_v55 = vrot.slane %v6286_v56, 5  ;;  %v2515_v11 = vrot.slane %v5326_v28, 5  ;;  %v4816_v56 = vld [vmem:[%s5547_s28 + $0x3c] sm:$0xe] }
 0x197   : > { %v2356_v19 = vpop.f32.mrf.mxu0  ;;  %v2634_v38 = vpack.c.b16 %v2606_v17, %v2605_v7  ;;  %v5058_v8 = vrot.slane %v5042_v24, 9 }
 0x198   : > { %v1702_v5 = vpop.f32.mrf.mxu3  ;;  %4960 = vmatmul.msk.bf16.gmra.mxu2 %vm730_vm4, %v5127_v27  ;;  %v1064_v53 = vpop.f32.mrf.mxu1  ;;  %v4986_v27 = vld [vmem:[%s5547_s28 + $0x48] sm:$0xf]  ;;  %v3252_v63 = vsel %vm5559_vm3, %v3247_v52, %v3251_v20  ;;  %v5128_v20 = vld [vmem:[%s5547_s28 + $0x3c] sm:$0xff] }
 0x199   : > { %v1754_v61 = vadd.f32 %v1702_v5, %v1464_v60  ;;  %v3975_v60 = vpack.c.b16 %v3946_v4, %v3945_v35  ;;  %v3242_v5 = vsel %vm5559_vm3, %v3237_v58, %v6307_v30  ;;  %v3254_v48 = vshrl.u32 %v4986_v27, 16  ;;  %v5327_v4 = vld [vmem:[%s5547_s28 + $0x44] sm:$0x1] }
 0x19a   : > { %v3852_v35 = vrot.slane %v3850_v55, 4  ;;  %v3853_v30 = vrot.slane %v6313_v9, 5  ;;  %v3549_v17 = vunpack.c.l.b16 %v3242_v5  ;;  %v2517_v58 = vrot.slane %v2515_v11, 4 }
 0x19b   : > { %v1415_v23 = vpop.f32.mrf.mxu2  ;;  %v6334_v26 = vadd.f32 %v2356_v19, %v1754_v61  ;;  %v3257_v19 = vshll.u32 %v4986_v27, 16  ;;  %v3263_v61 = vshll.u32 %v6332_v16, 16  ;;  %v3550_v24 = vunpack.c.l.b16 %v3252_v63 }
 0x19c   : > { %v1465_v41 = vadd.f32 %v1415_v23, %v1063_v62  ;;  %v1065_v62 = vadd.f32 %v1064_v53, %v5946_v43  ;;  %v2518_v23 = vrot.slane %v5327_v4, 5  ;;  %v3851_v27 = vsel %vm5733_vm7, %v5058_v8, %v3850_v55 }
 0x19d   : > { %5025 = vmatmul.msk.bf16.gmra.mxu3 %vm730_vm4, %v3577_v44  ;;  %v3267_v44 = vshrl.u32 %v6332_v16, 16  ;;  %v3256_v43 = vrot.slane %v3254_v48, 4  ;;  %v3259_v53 = vrot.slane %v3257_v19, 5  ;;  %v6355_v9 = vrot.slane %v3263_v61, 5 }
 0x19e   : > { %v2519_v63 = vsel %vm5733_vm7, %v2517_v58, %v2518_v23  ;;  %v3947_v8 = vunpack.c.l.b16 %v3851_v27  ;;  %v5043_v27 = vld [vmem:[%s5547_s28 + $0x48] sm:$0xe] }
 0x19f   : > { %v2359_v21 = vpop.f32.mrf.mxu0  ;;  %v3269_v28 = vrot.slane %v3267_v44, 4  ;;  %v3260_v61 = vor.u32 %v3259_v53, %v3256_v43 }
 0x1a0   : > { %v1705_v50 = vpop.f32.mrf.mxu3  ;;  %v1067_v14 = vpop.f32.mrf.mxu1 }
 0x1a1   : > { %v1755_v22 = vadd.f32 %v1705_v50, %v1465_v41  ;;  %v4832_v41 = vrot.slane %v4816_v56, 9  ;;  %v6364_v56 = vld [vmem:[%s5547_s28 + $0x50] sm:$0x1]  ;;  %v3270_v44 = vor.u32 %v3269_v28, %v6355_v9  ;;  %v3261_v58 = vrot.slane %v3260_v61, 4 }
 0x1a2   : > { %5074 = vmatmul.msk.bf16.gmra.mxu0 %vm730_vm4, %v3975_v60 }
 0x1a3   : > { %v1417_v7 = vpop.f32.mrf.mxu2  ;;  %4848 = vmatmul.msk.bf16.gmra.mxu1 %vm730_vm4, %v2634_v38  ;;  %v6353_v60 = vadd.f32 %v2359_v21, %v1755_v22  ;;  %v3854_v38 = vsel %vm5733_vm7, %v3852_v35, %v3853_v30  ;;  %v2516_v5 = vsel %vm5733_vm7, %v4832_v41, %v2515_v11  ;;  %v3578_v21 = vpack.c.b16 %v3550_v24, %v3549_v17  ;;  %v6372_v41 = vld [vmem:[%s5547_s28 + $0x58] sm:$0xf] }
 0x1a4   : > { %v1466_v52 = vadd.f32 %v1417_v7, %v1065_v62  ;;  %v3948_v19 = vunpack.c.l.b16 %v3854_v38  ;;  %v1068_v11 = vadd.f32 %v1067_v14, %v5967_v40  ;;  %v2607_v62 = vunpack.c.l.b16 %v2516_v5  ;;  %v4989_v7 = vld [vmem:[%s5547_s28 + $0x54] sm:$0xf] }
 0x1a5   : > { %v2608_v35 = vunpack.c.l.b16 %v2519_v63  ;;  %v3273_v30 = vshll.u32 %v6364_v56, 16  ;;  %v3857_v40 = vrot.slane %v6332_v16, 5  ;;  %v3278_v53 = vshrl.u32 %v4989_v7, 16 }
 0x1a6   : > { %v3976_v17 = vpack.c.b16 %v3948_v19, %v3947_v8  ;;  %v3281_v28 = vshll.u32 %v4989_v7, 16  ;;  %v3287_v38 = vshll.u32 %v6372_v41, 16  ;;  %v3291_v5 = vshrl.u32 %v6372_v41, 16  ;;  %v5329_v19 = vld [vmem:[%s5547_s28 + $0x50] sm:$0x1] }
 0x1a7   : > { %v2361_v50 = vpop.f32.mrf.mxu0  ;;  %v3275_v24 = vrot.slane %v3273_v30, 5  ;;  %v2525_v61 = vrot.slane %v5329_v19, 5  ;;  %v3860_v16 = vrot.slane %v6364_v56, 5  ;;  %v3859_v30 = vrot.slane %v3857_v40, 4  ;;  %v6399_v19 = vld [vmem:[%s5547_s28 + $0x5c] sm:$0x1] }
 0x1a8   : > { %v1707_v55 = vpop.f32.mrf.mxu3  ;;  %4961 = vmatmul.msk.bf16.gmra.mxu2 %vm730_vm4, %v5128_v20  ;;  %v1069_v48 = vpop.f32.mrf.mxu1  ;;  %v2635_v20 = vpack.c.b16 %v2608_v35, %v2607_v62  ;;  %v3266_v62 = vsel %vm5559_vm3, %v3261_v58, %v6355_v9  ;;  %v3283_v7 = vrot.slane %v3281_v28, 5  ;;  %v6393_v56 = vrot.slane %v3287_v38, 5 }
 0x1a9   : > { %v1756_v22 = vadd.f32 %v1707_v55, %v1466_v52  ;;  %v3271_v52 = vrot.slane %v3270_v44, 4  ;;  %v3551_v9 = vunpack.c.l.b16 %v3266_v62 }
 0x1ab   : > { %v1420_v4 = vpop.f32.mrf.mxu2  ;;  %v6377_v14 = vadd.f32 %v2361_v50, %v1756_v22  ;;  %v4817_v50 = vld [vmem:[%s5547_s28 + $0x48] sm:$0xe]  ;;  %v1070_v22 = vadd.f32 %v1069_v48, %v5982_v10  ;;  %v3276_v35 = vsel %vm5559_vm3, %v3271_v52, %v3275_v24 }
 0x1ac   : > { %v1467_v23 = vadd.f32 %v1420_v4, %v1068_v11  ;;  %v5059_v11 = vrot.slane %v5043_v27, 9  ;;  %v3293_v27 = vrot.slane %v3291_v5, 4  ;;  %v4833_v10 = vrot.slane %v4817_v50, 9 }
 0x1ad   : > { %5026 = vmatmul.msk.bf16.gmra.mxu3 %vm730_vm4, %v3578_v21  ;;  %v5328_v21 = vld [vmem:[%s5547_s28 + $0x4c] sm:$0xf]  ;;  %v3552_v58 = vunpack.c.l.b16 %v3276_v35 }
 0x1ae   : > { %v2522_v8 = vrot.slane %v5328_v21, 5  ;;  %v3858_v24 = vsel %vm5733_vm7, %v5059_v11, %v3857_v40  ;;  %v3297_v40 = vshll.u32 %v6399_v19, 16 }
 0x1af   : > { %v2364_v43 = vpop.f32.mrf.mxu0  ;;  %v3579_v50 = vpack.c.b16 %v3552_v58, %v3551_v9  ;;  %v5330_v58 = vld [vmem:[%s5547_s28 + $0x58] sm:$0xf] }
 0x1b0   : > { %v1710_v63 = vpop.f32.mrf.mxu3  ;;  %v1072_v55 = vpop.f32.mrf.mxu1  ;;  %v2524_v48 = vrot.slane %v2522_v8, 4 }
 0x1b1   : > { %v1757_v44 = vadd.f32 %v1710_v63, %v1467_v23  ;;  %v3280_v23 = vrot.slane %v3278_v53, 4  ;;  %v5129_v63 = vld [vmem:[%s5547_s28 + $0x48] sm:$0xff] }
 0x1b2   : > { %5075 = vmatmul.msk.bf16.gmra.mxu0 %vm730_vm4, %v3976_v17  ;;  %v2526_v5 = vsel %vm5733_vm7, %v2524_v48, %v2525_v61  ;;  %v6418_v48 = vld [vmem:[%s5547_s28 + $0x64] sm:$0xf] }
 0x1b3   : > { %v1422_v4 = vpop.f32.mrf.mxu2  ;;  %4849 = vmatmul.msk.bf16.gmra.mxu1 %vm730_vm4, %v2635_v20  ;;  %v6396_v21 = vadd.f32 %v2364_v43, %v1757_v44  ;;  %v3861_v20 = vsel %vm5733_vm7, %v3859_v30, %v3860_v16  ;;  %v3284_v53 = vor.u32 %v3283_v7, %v3280_v23  ;;  %v2523_v43 = vsel %vm5733_vm7, %v4833_v10, %v2522_v8 }
 0x1b4   : > { %v1468_v17 = vadd.f32 %v1422_v4, %v1070_v22  ;;  %v3294_v44 = vor.u32 %v3293_v27, %v6393_v56  ;;  %v1073_v16 = vadd.f32 %v1072_v55, %v5858_v49  ;;  %v3949_v22 = vunpack.c.l.b16 %v3858_v24  ;;  %v5044_v27 = vld [vmem:[%s5547_s28 + $0x54] sm:$0xe] }
 0x1b5   : > { %v3950_v62 = vunpack.c.l.b16 %v3861_v20  ;;  %v2609_v30 = vunpack.c.l.b16 %v2523_v43  ;;  %v2610_v8 = vunpack.c.l.b16 %v2526_v5  ;;  %v3285_v23 = vrot.slane %v3284_v53, 4 }
 0x1b6   : > { %v3295_v61 = vrot.slane %v3294_v44, 4  ;;  %v3299_v7 = vrot.slane %v3297_v40, 5  ;;  %v3864_v10 = vrot.slane %v6372_v41, 5  ;;  %v2529_v24 = vrot.slane %v5330_v58, 5  ;;  %v4818_v41 = vld [vmem:[%s5547_s28 + $0x54] sm:$0xe] }
 0x1b7   : > { %v2366_v52 = vpop.f32.mrf.mxu0  ;;  %v2636_v9 = vpack.c.b16 %v2610_v8, %v2609_v30  ;;  %v5060_v5 = vrot.slane %v5044_v27, 9 }
 0x1b8   : > { %v1712_v28 = vpop.f32.mrf.mxu3  ;;  %4962 = vmatmul.msk.bf16.gmra.mxu2 %vm730_vm4, %v5129_v63  ;;  %v1074_v38 = vpop.f32.mrf.mxu1  ;;  %v4992_v63 = vld [vmem:[%s5547_s28 + $0x60] sm:$0xf]  ;;  %v3300_v43 = vsel %vm5559_vm3, %v3295_v61, %v3299_v7  ;;  %v5130_v7 = vld [vmem:[%s5547_s28 + $0x54] sm:$0xff] }
 0x1b9   : > { %v1758_v11 = vadd.f32 %v1712_v28, %v1468_v17  ;;  %v3977_v17 = vpack.c.b16 %v3950_v62, %v3949_v22  ;;  %v3290_v28 = vsel %vm5559_vm3, %v3285_v23, %v6393_v56  ;;  %v3302_v44 = vshrl.u32 %v4992_v63, 16  ;;  %v5331_v62 = vld [vmem:[%s5547_s28 + $0x5c] sm:$0x1] }
 0x1ba   : > { %v3866_v22 = vrot.slane %v3864_v10, 4  ;;  %v3867_v56 = vrot.slane %v6399_v19, 5  ;;  %v3553_v8 = vunpack.c.l.b16 %v3290_v28  ;;  %v2531_v23 = vrot.slane %v2529_v24, 4 }
 0x1bb   : > { %v1425_v35 = vpop.f32.mrf.mxu2  ;;  %v6420_v49 = vadd.f32 %v2366_v52, %v1758_v11  ;;  %v3305_v52 = vshll.u32 %v4992_v63, 16  ;;  %v3311_v11 = vshll.u32 %v6418_v48, 16  ;;  %v3554_v27 = vunpack.c.l.b16 %v3300_v43 }
 0x1bc   : > { %v1469_v4 = vadd.f32 %v1425_v35, %v1073_v16  ;;  %v1075_v16 = vadd.f32 %v1074_v38, %v5877_v0  ;;  %v2532_v35 = vrot.slane %v5331_v62, 5  ;;  %v3865_v63 = vsel %vm5733_vm7, %v5060_v5, %v3864_v10 }
 0x1bd   : > { %5027 = vmatmul.msk.bf16.gmra.mxu3 %vm730_vm4, %v3579_v50  ;;  %v3315_v50 = vshrl.u32 %v6418_v48, 16  ;;  %v3304_v0 = vrot.slane %v3302_v44, 4  ;;  %v3307_v38 = vrot.slane %v3305_v52, 5  ;;  %v6441_v19 = vrot.slane %v3311_v11, 5 }
 0x1be   : > { %v2533_v43 = vsel %vm5733_vm7, %v2531_v23, %v2532_v35  ;;  %v3951_v5 = vunpack.c.l.b16 %v3865_v63  ;;  %v5045_v63 = vld [vmem:[%s5547_s28 + $0x60] sm:$0xe] }
 0x1bf   : > { %v2369_v55 = vpop.f32.mrf.mxu0  ;;  %v3317_v58 = vrot.slane %v3315_v50, 4  ;;  %v3308_v11 = vor.u32 %v3307_v38, %v3304_v0 }
 0x1c0   : > { %v1715_v20 = vpop.f32.mrf.mxu3  ;;  %v1077_v53 = vpop.f32.mrf.mxu1 }
 0x1c1   : > { %v1759_v40 = vadd.f32 %v1715_v20, %v1469_v4  ;;  %v4834_v4 = vrot.slane %v4818_v41, 9  ;;  %v6450_v41 = vld [vmem:[%s5547_s28 + $0x68] sm:$0x1]  ;;  %v3318_v50 = vor.u32 %v3317_v58, %v6441_v19  ;;  %v3309_v23 = vrot.slane %v3308_v11, 4 }
 0x1c2   : > { %5076 = vmatmul.msk.bf16.gmra.mxu0 %vm730_vm4, %v3977_v17 }
 0x1c3   : > { %v1427_v30 = vpop.f32.mrf.mxu2  ;;  %4850 = vmatmul.msk.bf16.gmra.mxu1 %vm730_vm4, %v2636_v9  ;;  %v6439_v17 = vadd.f32 %v2369_v55, %v1759_v40  ;;  %v3868_v9 = vsel %vm5733_vm7, %v3866_v22, %v3867_v56  ;;  %v2530_v28 = vsel %vm5733_vm7, %v4834_v4, %v2529_v24  ;;  %v3580_v55 = vpack.c.b16 %v3554_v27, %v3553_v8  ;;  %v6458_v4 = vld [vmem:[%s5547_s28 + $0x70] sm:$0xf] }
 0x1c4   : > { %v1470_v61 = vadd.f32 %v1427_v30, %v1075_v16  ;;  %v3952_v52 = vunpack.c.l.b16 %v3868_v9  ;;  %v1078_v24 = vadd.f32 %v1077_v53, %v5898_v39  ;;  %v2611_v16 = vunpack.c.l.b16 %v2530_v28  ;;  %v4995_v30 = vld [vmem:[%s5547_s28 + $0x6c] sm:$0xf] }
 0x1c5   : > { %v2612_v22 = vunpack.c.l.b16 %v2533_v43  ;;  %v3321_v56 = vshll.u32 %v6450_v41, 16  ;;  %v3871_v39 = vrot.slane %v6418_v48, 5  ;;  %v3326_v38 = vshrl.u32 %v4995_v30, 16 }
 0x1c6   : > { %v3978_v8 = vpack.c.b16 %v3952_v52, %v3951_v5  ;;  %v3329_v58 = vshll.u32 %v4995_v30, 16  ;;  %v3335_v9 = vshll.u32 %v6458_v4, 16  ;;  %v3339_v28 = vshrl.u32 %v6458_v4, 16  ;;  %v5333_v52 = vld [vmem:[%s5547_s28 + $0x68] sm:$0x1] }
 0x1c7   : > { %v2371_v20 = vpop.f32.mrf.mxu0  ;;  %v3323_v27 = vrot.slane %v3321_v56, 5  ;;  %v2539_v11 = vrot.slane %v5333_v52, 5  ;;  %v3874_v48 = vrot.slane %v6450_v41, 5  ;;  %v3873_v56 = vrot.slane %v3871_v39, 4 }
 0x1c8   : > { %v1717_v10 = vpop.f32.mrf.mxu3  ;;  %4963 = vmatmul.msk.bf16.gmra.mxu2 %vm730_vm4, %v5130_v7  ;;  %v1079_v44 = vpop.f32.mrf.mxu1  ;;  %v2637_v7 = vpack.c.b16 %v2612_v22, %v2611_v16  ;;  %v3314_v16 = vsel %vm5559_vm3, %v3309_v23, %v6441_v19  ;;  %v3331_v30 = vrot.slane %v3329_v58, 5  ;;  %v3337_v41 = vrot.slane %v3335_v9, 5  ;;  %v6483_v23 = vld [vmem:[%s5547_s28 + $0x74] sm:$0x1] }
 0x1c9   : > { %v1760_v40 = vadd.f32 %v1717_v10, %v1470_v61  ;;  %v3319_v61 = vrot.slane %v3318_v50, 4  ;;  %v3555_v52 = vunpack.c.l.b16 %v3314_v16 }
 0x1cb   : > { %v1430_v62 = vpop.f32.mrf.mxu2  ;;  %v6463_v53 = vadd.f32 %v2371_v20, %v1760_v40  ;;  %v4819_v20 = vld [vmem:[%s5547_s28 + $0x60] sm:$0xe]  ;;  %v1080_v40 = vadd.f32 %v1079_v44, %v5917_v6  ;;  %v3324_v22 = vsel %vm5559_vm3, %v3319_v61, %v3323_v27 }
 0x1cc   : > { %v1471_v35 = vadd.f32 %v1430_v62, %v1078_v24  ;;  %v5061_v24 = vrot.slane %v5045_v63, 9  ;;  %v3341_v63 = vrot.slane %v3339_v28, 4  ;;  %v3556_v19 = vunpack.c.l.b16 %v3324_v22 }
 0x1cd   : > { %5028 = vmatmul.msk.bf16.gmra.mxu3 %vm730_vm4, %v3580_v55  ;;  %7048 = vst [vmem:[#allocation8_spill] sm:$0xff] %v6463_v53  ;;  %v5332_v55 = vld [vmem:[%s5547_s28 + $0x64] sm:$0xf] }
 0x1ce   : > { %v2536_v5 = vrot.slane %v5332_v55, 5  ;;  %v4835_v55 = vrot.slane %v4819_v20, 9  ;;  %v3872_v61 = vsel %vm5733_vm7, %v5061_v24, %v3871_v39  ;;  %v3342_v28 = vor.u32 %v3341_v63, %v3337_v41  ;;  %v4998_v63 = vld [vmem:[%s5547_s28 + $0x78] sm:$0xf] }
 0x1cf   : > { %v2374_v0 = vpop.f32.mrf.mxu0  ;;  %v3581_v24 = vpack.c.b16 %v3556_v19, %v3555_v52  ;;  %v3953_v20 = vunpack.c.l.b16 %v3872_v61  ;;  %v5334_v52 = vld [vmem:[%s5547_s28 + $0x70] sm:$0xf] }
 0x1d0   : > { %v1720_v43 = vpop.f32.mrf.mxu3  ;;  %v1082_v10 = vpop.f32.mrf.mxu1  ;;  %v2538_v6 = vrot.slane %v2536_v5, 4  ;;  %v2543_v19 = vrot.slane %v5334_v52, 5 }
 0x1d1   : > { %v1761_v50 = vadd.f32 %v1720_v43, %v1471_v35  ;;  %v3328_v35 = vrot.slane %v3326_v38, 4 }
 0x1d2   : > { %5077 = vmatmul.msk.bf16.gmra.mxu0 %vm730_vm4, %v3978_v8  ;;  %v5131_v8 = vld [vmem:[%s5547_s28 + $0x60] sm:$0xff]  ;;  %v2540_v9 = vsel %vm5733_vm7, %v2538_v6, %v2539_v11 }
 0x1d3   : > { %v1432_v62 = vpop.f32.mrf.mxu2  ;;  %4851 = vmatmul.msk.bf16.gmra.mxu1 %vm730_vm4, %v2637_v7  ;;  %v6480_v44 = vadd.f32 %v2374_v0, %v1761_v50  ;;  %v3875_v7 = vsel %vm5733_vm7, %v3873_v56, %v3874_v48  ;;  %v3332_v27 = vor.u32 %v3331_v30, %v3328_v35  ;;  %v2537_v0 = vsel %vm5733_vm7, %v4835_v55, %v2536_v5  ;;  %v5046_v30 = vld [vmem:[%s5547_s28 + $0x6c] sm:$0xe]  ;;  %v6501_v55 = vld [vmem:[%s5547_s28 + $0x7c] sm:$0xf] }
 0x1d4   : > { %v1472_v43 = vadd.f32 %v1432_v62, %v1080_v40  ;;  %v3345_v50 = vshll.u32 %v6483_v23, 16  ;;  %v1083_v48 = vadd.f32 %v1082_v10, %v5936_v45  ;;  %v3954_v40 = vunpack.c.l.b16 %v3875_v7 }
 0x1d5   : > { %v2613_v22 = vunpack.c.l.b16 %v2537_v0  ;;  %v2614_v56 = vunpack.c.l.b16 %v2540_v9  ;;  %v3333_v62 = vrot.slane %v3332_v27, 4  ;;  %v3343_v35 = vrot.slane %v3342_v28, 4  ;;  %v4820_v9 = vld [vmem:[%s5547_s28 + $0x6c] sm:$0xe] }
 0x1d6   : > { %v3347_v11 = vrot.slane %v3345_v50, 5  ;;  %v5062_v0 = vrot.slane %v5046_v30, 9  ;;  %v3359_v50 = vshll.u32 %v6501_v55, 16 }
 0x1d7   : > { %v2376_v53 = vpop.f32.mrf.mxu0  ;;  %v2638_v6 = vpack.c.b16 %v2614_v56, %v2613_v22  ;;  %v3338_v27 = vsel %vm5559_vm3, %v3333_v62, %v3337_v41  ;;  %v3881_v41 = vrot.slane %v6483_v23, 5  ;;  %v2545_v22 = vrot.slane %v2543_v19, 4  ;;  %v5335_v56 = vld [vmem:[%s5547_s28 + $0x74] sm:$0x1] }
 0x1d8   : > { %v1722_v38 = vpop.f32.mrf.mxu3  ;;  %4964 = vmatmul.msk.bf16.gmra.mxu2 %vm730_vm4, %v5131_v8  ;;  %v1084_v58 = vpop.f32.mrf.mxu1  ;;  %v3878_v8 = vrot.slane %v6458_v4, 5  ;;  %v3350_v4 = vshrl.u32 %v4998_v63, 16  ;;  %v6523_v23 = vrot.slane %v3359_v50, 5 }
 0x1d9   : > { %v1762_v39 = vadd.f32 %v1722_v38, %v1472_v43  ;;  %v3979_v43 = vpack.c.b16 %v3954_v40, %v3953_v20  ;;  %v3348_v38 = vsel %vm5559_vm3, %v3343_v35, %v3347_v11  ;;  %v3557_v40 = vunpack.c.l.b16 %v3338_v27  ;;  %v5132_v35 = vld [vmem:[%s5547_s28 + $0x6c] sm:$0xff] }
 0x1da   : > { %v3558_v11 = vunpack.c.l.b16 %v3348_v38  ;;  %v3879_v30 = vsel %vm5733_vm7, %v5062_v0, %v3878_v8  ;;  %v6532_v38 = vld [vmem:[%s5547_s28 + $0x80] sm:$0x1] }
 0x1db   : > { %v1435_v16 = vpop.f32.mrf.mxu2  ;;  %v6503_v45 = vadd.f32 %v2376_v53, %v1762_v39  ;;  %v3353_v53 = vshll.u32 %v4998_v63, 16  ;;  %v3363_v39 = vshrl.u32 %v6501_v55, 16  ;;  %v3955_v0 = vunpack.c.l.b16 %v3879_v30 }
 0x1dc   : > { %v1473_v5 = vadd.f32 %v1435_v16, %v1083_v48  ;;  %v3880_v48 = vrot.slane %v3878_v8, 4  ;;  %v4836_v16 = vrot.slane %v4820_v9, 9 }
 0x1dd   : > { %5029 = vmatmul.msk.bf16.gmra.mxu3 %vm730_vm4, %v3581_v24  ;;  %v1085_v24 = vadd.f32 %v1084_v58, %v5959_v12  ;;  %v3352_v12 = vrot.slane %v3350_v4, 4  ;;  %v3355_v58 = vrot.slane %v3353_v53, 5 }
 0x1df   : > { %v2379_v10 = vpop.f32.mrf.mxu0  ;;  %v3356_v53 = vor.u32 %v3355_v58, %v3352_v12 }
 0x1e0   : > { %v1725_v61 = vpop.f32.mrf.mxu3  ;;  %v1087_v7 = vpop.f32.mrf.mxu1 }
 0x1e1   : > { %v1763_v28 = vadd.f32 %v1725_v61, %v1473_v5  ;;  %v2546_v5 = vrot.slane %v5335_v56, 5  ;;  %v2544_v61 = vsel %vm5733_vm7, %v4836_v16, %v2543_v19  ;;  %v1088_v19 = vadd.f32 %v1087_v7, %v5978_v59 }
 0x1e2   : > { %5078 = vmatmul.msk.bf16.gmra.mxu0 %vm730_vm4, %v3979_v43  ;;  %v3365_v43 = vrot.slane %v3363_v39, 4  ;;  %v2615_v39 = vunpack.c.l.b16 %v2544_v61  ;;  %v3357_v56 = vrot.slane %v3356_v53, 4  ;;  %v3885_v59 = vrot.slane %v6501_v55, 5 }
 0x1e3   : > { %v1437_v20 = vpop.f32.mrf.mxu2  ;;  %4852 = vmatmul.msk.bf16.gmra.mxu1 %vm730_vm4, %v2638_v6  ;;  %v6521_v63 = vadd.f32 %v2379_v10, %v1763_v28  ;;  %v3882_v6 = vsel %vm5733_vm7, %v3880_v48, %v3881_v41  ;;  %v2547_v27 = vsel %vm5733_vm7, %v2545_v22, %v2546_v5  ;;  %v3582_v10 = vpack.c.b16 %v3558_v11, %v3557_v40  ;;  %v6540_v22 = vld [vmem:[%s5547_s28 + $0x88] sm:$0xf]  ;;  %v5047_v11 = vld [vmem:[%s5547_s28 + $0x78] sm:$0xe] }
 0x1e4   : > { %v1474_v62 = vadd.f32 %v1437_v20, %v1085_v24  ;;  %v3956_v28 = vunpack.c.l.b16 %v3882_v6  ;;  %v3366_v50 = vor.u32 %v3365_v43, %v6523_v23  ;;  %v2616_v24 = vunpack.c.l.b16 %v2547_v27  ;;  %v5001_v20 = vld [vmem:[%s5547_s28 + $0x84] sm:$0xf] }
 0x1e5   : > { %v3369_v48 = vshll.u32 %v6532_v38, 16  ;;  %v3374_v7 = vshrl.u32 %v5001_v20, 16  ;;  %v3377_v12 = vshll.u32 %v5001_v20, 16  ;;  %v3383_v58 = vshll.u32 %v6540_v22, 16 }
 0x1e6   : > { %v3980_v40 = vpack.c.b16 %v3956_v28, %v3955_v0  ;;  %v3367_v5 = vrot.slane %v3366_v50, 4  ;;  %v3387_v43 = vshrl.u32 %v6540_v22, 16  ;;  %v3362_v55 = vsel %vm5559_vm3, %v3357_v56, %v6523_v23 }
 0x1e7   : > { %v2381_v52 = vpop.f32.mrf.mxu0  ;;  %v5063_v53 = vrot.slane %v5047_v11, 9  ;;  %v3888_v50 = vrot.slane %v6532_v38, 5  ;;  %v6560_v23 = vrot.slane %v3383_v58, 5  ;;  %v5133_v38 = vld [vmem:[%s5547_s28 + $0x78] sm:$0xff] }
 0x1e8   : > { %v1727_v8 = vpop.f32.mrf.mxu3  ;;  %4965 = vmatmul.msk.bf16.gmra.mxu2 %vm730_vm4, %v5132_v35  ;;  %v1089_v9 = vpop.f32.mrf.mxu1  ;;  %v3371_v35 = vrot.slane %v3369_v48, 5  ;;  %v3389_v20 = vrot.slane %v3387_v43, 4 }
 0x1e9   : > { %v1764_v4 = vadd.f32 %v1727_v8, %v1474_v62  ;;  %v2639_v62 = vpack.c.b16 %v2616_v24, %v2615_v39  ;;  %v4821_v8 = vld [vmem:[%s5547_s28 + $0x78] sm:$0xe]  ;;  %v3376_v39 = vrot.slane %v3374_v7, 4 }
 0x1ea   : > { %v4837_v48 = vrot.slane %v4821_v8, 9 }
 0x1eb   : > { %v1440_v41 = vpop.f32.mrf.mxu2  ;;  %v6547_v6 = vadd.f32 %v2381_v52, %v1764_v4  ;;  %v1090_v52 = vadd.f32 %v1089_v9, %v5995_v32  ;;  %v3372_v4 = vsel %vm5559_vm3, %v3367_v5, %v3371_v35  ;;  %v3559_v9 = vunpack.c.l.b16 %v3362_v55  ;;  %v6567_v35 = vld [vmem:[%s5547_s28 + $0x8c] sm:$0x1] }
 0x1ec   : > { %v1475_v16 = vadd.f32 %v1440_v41, %v1088_v19  ;;  %v3887_v19 = vrot.slane %v3885_v59, 4  ;;  %v3379_v41 = vrot.slane %v3377_v12, 5  ;;  %v3560_v5 = vunpack.c.l.b16 %v3372_v4 }
 0x1ed   : > { %5030 = vmatmul.msk.bf16.gmra.mxu3 %vm730_vm4, %v3582_v10  ;;  %v5336_v10 = vld [vmem:[%s5547_s28 + $0x7c] sm:$0xf] }
 0x1ee   : > { %v2550_v0 = vrot.slane %v5336_v10, 5  ;;  %v3889_v12 = vsel %vm5733_vm7, %v3887_v19, %v3888_v50  ;;  %v3380_v58 = vor.u32 %v3379_v41, %v3376_v39  ;;  %v3390_v10 = vor.u32 %v3389_v20, %v6560_v23  ;;  %v6583_v41 = vld [vmem:[%s5547_s28 + $0x94] sm:$0xf] }
 0x1ef   : > { %v2384_v30 = vpop.f32.mrf.mxu0  ;;  %v3583_v55 = vpack.c.b16 %v3560_v5, %v3559_v9  ;;  %v3958_v50 = vunpack.c.l.b16 %v3889_v12 }
 0x1f0   : > { %v1730_v61 = vpop.f32.mrf.mxu3  ;;  %v2707_v27 = vpop.f32.mrf.mxu1  ;;  %v2552_v56 = vrot.slane %v2550_v0, 4 }
 0x1f1   : > { %v1765_v28 = vadd.f32 %v1730_v61, %v1475_v16  ;;  %v2787_v4 = vadd.f32 %v2707_v27, %v6012_v46  ;;  %v3407_v46 = vshll.u32 %v6583_v41, 16  ;;  %v3411_v27 = vshrl.u32 %v6583_v41, 16 }
 0x1f2   : > { %5079 = vmatmul.msk.bf16.gmra.mxu0 %vm730_vm4, %v3980_v40  ;;  %v5337_v40 = vld [vmem:[%s5547_s28 + $0x80] sm:$0x1] }
 0x1f3   : > { %v1442_v24 = vpop.f32.mrf.mxu2  ;;  %4853 = vmatmul.msk.bf16.gmra.mxu1 %vm730_vm4, %v2639_v62  ;;  %v2553_v11 = vrot.slane %v5337_v40, 5  ;;  %v6564_v32 = vadd.f32 %v2384_v30, %v1765_v28  ;;  %v3886_v62 = vsel %vm5733_vm7, %v5063_v53, %v3885_v59  ;;  %v2551_v30 = vsel %vm5733_vm7, %v4837_v48, %v2550_v0 }
 0x1f4   : > { %v1476_v16 = vadd.f32 %v1442_v24, %v1090_v52  ;;  %v3393_v28 = vshll.u32 %v6567_v35, 16  ;;  %v3957_v53 = vunpack.c.l.b16 %v3886_v62  ;;  %v5004_v52 = vld [vmem:[%s5547_s28 + $0x90] sm:$0xf]  ;;  %v2617_v39 = vunpack.c.l.b16 %v2551_v30 }
 0x1f5   : > { %7049 = vst [vmem:[#allocation9_spill] sm:$0xff] %v6564_v32  ;;  %v2554_v8 = vsel %vm5733_vm7, %v2552_v56, %v2553_v11  ;;  %v3381_v0 = vrot.slane %v3380_v58, 4  ;;  %v3391_v48 = vrot.slane %v3390_v10, 4  ;;  %v5048_v56 = vld [vmem:[%s5547_s28 + $0x84] sm:$0xe]  ;;  %v3398_v40 = vshrl.u32 %v5004_v52, 16 }
 0x1f6   : > { %v2618_v24 = vunpack.c.l.b16 %v2554_v8  ;;  %v3401_v11 = vshll.u32 %v5004_v52, 16  ;;  %v3981_v9 = vpack.c.b16 %v3958_v50, %v3957_v53  ;;  %v5338_v58 = vld [vmem:[%s5547_s28 + $0x88] sm:$0xf]  ;;  %v6603_v52 = vld [vmem:[%s7036_s2] ss:$0 sm:$0xff] }
 0x1f7   : > { %v2386_v7 = vpop.f32.mrf.mxu0 }
 0x1f8   : > { %v1732_v43 = vpop.f32.mrf.mxu3  ;;  %4966 = vmatmul.msk.bf16.gmra.mxu2 %vm730_vm4, %v5133_v38  ;;  %v2709_v61 = vpop.f32.mrf.mxu1  ;;  %v3395_v38 = vrot.slane %v3393_v28, 5  ;;  %v2640_v12 = vpack.c.b16 %v2618_v24, %v2617_v39  ;;  %v5064_v28 = vrot.slane %v5048_v56, 9  ;;  %v3413_v39 = vrot.slane %v3411_v27, 4 }
 0x1f9   : > { %v1766_v59 = vadd.f32 %v1732_v43, %v1476_v16  ;;  %v3892_v16 = vrot.slane %v6540_v22, 5  ;;  %v2557_v43 = vrot.slane %v5338_v58, 5  ;;  %v3386_v22 = vsel %vm5559_vm3, %v3381_v0, %v6560_v23 }
 0x1fa   : > { %v3396_v10 = vsel %vm5559_vm3, %v3391_v48, %v3395_v38  ;;  %v2788_v23 = vadd.f32 %v2709_v61, %v6025_v42 }
 0x1fb   : > { %v2997_v19 = vpop.f32.mrf.mxu2  ;;  %v6590_v5 = vadd.f32 %v2386_v7, %v1766_v59  ;;  %v3894_v50 = vrot.slane %v3892_v16, 4  ;;  %v3400_v7 = vrot.slane %v3398_v40, 4  ;;  %v3403_v59 = vrot.slane %v3401_v11, 5  ;;  %v6612_v40 = vld [vmem:[%s5547_s28 + $0x98] sm:$0x1]  ;;  %v5134_v11 = vld [vmem:[%s5547_s28 + $0x84] sm:$0xff] }
 0x1fc   : > { %v3077_v20 = vadd.f32 %v2997_v19, %v2787_v4  ;;  %v3895_v4 = vrot.slane %v6567_v35, 5  ;;  %v6607_v19 = vrot.slane %v3407_v46, 5  ;;  %v2559_v38 = vrot.slane %v2557_v43, 4 }
 0x1fd   : > { %5031 = vmatmul.msk.bf16.gmra.mxu3 %vm730_vm4, %v3583_v55  ;;  %7050 = vst [vmem:[#allocation10_spill] sm:$0xff] %v6590_v5  ;;  %v4822_v55 = vld [vmem:[%s5547_s28 + $0x84] sm:$0xe]  ;;  %v3562_v35 = vunpack.c.l.b16 %v3396_v10  ;;  %v3893_v61 = vsel %vm5733_vm7, %v5064_v28, %v3892_v16  ;;  %v3404_v46 = vor.u32 %v3403_v59, %v3400_v7 }
 0x1fe   : > { %v4838_v48 = vrot.slane %v4822_v55, 9  ;;  %v3896_v27 = vsel %vm5733_vm7, %v3894_v50, %v3895_v4  ;;  %v3959_v55 = vunpack.c.l.b16 %v3893_v61  ;;  %v5007_v50 = vld [vmem:[%s5547_s28 + $0x9c] sm:$0xf]  ;;  %v5049_v61 = vld [vmem:[%s5547_s28 + $0x90] sm:$0xe] }
 0x1ff   : > { %v4049_v62 = vpop.f32.mrf.mxu0  ;;  %v3405_v4 = vrot.slane %v3404_v46, 4  ;;  %v3422_v5 = vshrl.u32 %v5007_v50, 16 }
 0x200   : > { %v3651_v30 = vpop.f32.mrf.mxu3  ;;  %v2712_v8 = vpop.f32.mrf.mxu1  ;;  %v2558_v16 = vsel %vm5733_vm7, %v4838_v48, %v2557_v43 }
 0x201   : > { %v3731_v53 = vadd.f32 %v3651_v30, %v3077_v20  ;;  %v5339_v20 = vld [vmem:[%s5547_s28 + $0x8c] sm:$0x1]  ;;  %v6627_v30 = vld [vmem:[%s7037_s3] ss:$0 sm:$0xff] }
 0x202   : > { %5080 = vmatmul.msk.bf16.gmra.mxu0 %vm730_vm4, %v3981_v9  ;;  %v2560_v56 = vrot.slane %v5339_v20, 5  ;;  %v3561_v9 = vunpack.c.l.b16 %v3386_v22 }
 0x203   : > { %v4129_v24 = vadd.f32 %v4049_v62, %v3731_v53  ;;  %v2999_v0 = vpop.f32.mrf.mxu2  ;;  %4854 = vmatmul.msk.bf16.gmra.mxu1 %vm730_vm4, %v2640_v12  ;;  %v3414_v62 = vor.u32 %v3413_v39, %v6607_v19  ;;  %v3417_v12 = vshll.u32 %v6612_v40, 16  ;;  %v6636_v39 = vld [vmem:[%s5547_s28 + $0xa0] sm:$0xf] }
 0x204   : > { %v3078_v42 = vadd.f32 %v2999_v0, %v2788_v23  ;;  %v2561_v10 = vsel %vm5733_vm7, %v2559_v38, %v2560_v56  ;;  %v3584_v59 = vpack.c.b16 %v3562_v35, %v3561_v9  ;;  %v3960_v23 = vunpack.c.l.b16 %v3896_v27 }
 0x205   : > { %v4165_v58 = vmul.f32 %v6603_v52, %v4129_v24  ;;  %v2619_v24 = vunpack.c.l.b16 %v2558_v16  ;;  %v2620_v43 = vunpack.c.l.b16 %v2561_v10  ;;  %v3415_v0 = vrot.slane %v3414_v62, 4 }
 0x206   : > { %v3419_v48 = vrot.slane %v3417_v12, 5  ;;  %v2789_v56 = vadd.f32 %v2712_v8, %v6038_v15  ;;  %v3425_v9 = vshll.u32 %v5007_v50, 16  ;;  %v3431_v35 = vshll.u32 %v6636_v39, 16 }
 0x207   : > { %v4051_v22 = vpop.f32.mrf.mxu0  ;;  %v4201_v38 = vadd.f32 %v6627_v30, %v4165_v58  ;;  %v3982_v27 = vpack.c.b16 %v3960_v23, %v3959_v55  ;;  %v3435_v15 = vshrl.u32 %v6636_v39, 16  ;;  %v3410_v8 = vsel %vm5559_vm3, %v3405_v4, %v6607_v19  ;;  %v4823_v19 = vld [vmem:[%s5547_s28 + $0x90] sm:$0xe]  ;;  %v5340_v23 = vld [vmem:[%s5547_s28 + $0x94] sm:$0xf] }
 0x208   : > { %v3653_v28 = vpop.f32.mrf.mxu3  ;;  %4967 = vmatmul.msk.bf16.gmra.mxu2 %vm730_vm4, %v5134_v11  ;;  %v2714_v53 = vpop.f32.mrf.mxu1  ;;  %v3420_v12 = vsel %vm5559_vm3, %v3415_v0, %v3419_v48  ;;  %v5065_v58 = vrot.slane %v5049_v61, 9  ;;  %v2641_v55 = vpack.c.b16 %v2620_v43, %v2619_v24  ;;  %v3424_v50 = vrot.slane %v3422_v5, 4 }
 0x209   : > { %v3732_v7 = vadd.f32 %v3653_v28, %v3078_v42  ;;  %v6642_v42 = vstv %s6614_s17  ;;  %vm4233_vm8 = vcmp.ge.f32.partialorder %v4201_v38, 0.0  ;;  %v2564_v4 = vrot.slane %v5340_v23, 5  ;;  %s5366_s17 = sshra.s32 %s4414_s16, 4  ;;  %s5367_s17 = int_to_ptr.hbm [resolvable:$true] %s5366_s17 }
 0x20a   : > { %v4267_v16 = vmul.f32 %v6642_v42, %v4201_v38  ;;  %v3427_v0 = vrot.slane %v3425_v9, 5  ;;  %v6663_v48 = vrot.slane %v3431_v35, 5  ;;  %v2790_v5 = vadd.f32 %v2714_v53, %v6051_v13  ;;  %v5341_v53 = vld [vmem:[%s5547_s28 + $0x98] sm:$0x1]  ;;  %s5368_s18 = scalar_lea.hbm %s5367_s17, 128  ;;  %p5373_p1 = scmp.lt.s32.totalorder %s5367_s17, %s7039_s5 }
 0x20b   : > { %v4130_v20 = vadd.f32 %v4051_v22, %v3732_v7  ;;  %v3002_v11 = vpop.f32.mrf.mxu2  ;;  %v3899_v22 = vrot.slane %v6583_v41, 5  ;;  %v3563_v24 = vunpack.c.l.b16 %v3410_v8  ;;  %v4839_v23 = vrot.slane %v4823_v19, 9  ;;  %p5369_p12 = scmp.ne.s32.totalorder %s5367_s17, %s5368_s18 }
 0x20c   : > { %v3079_v62 = vadd.f32 %v3002_v11, %v2789_v56  ;;  %v3437_v56 = vrot.slane %v3435_v15, 4  ;;  %v3902_v11 = vrot.slane %v6612_v40, 5  ;;  %v4299_v61 = vsel %vm4233_vm8, %v4201_v38, %v4267_v16 }
 0x20d   : > { %v4166_v46 = vmul.f32 %v6603_v52, %v4130_v20  ;;  %5032 = vmatmul.msk.bf16.gmra.mxu3 %vm730_vm4, %v3584_v59  ;;  %v3901_v43 = vrot.slane %v3899_v22, 4  ;;  %v2566_v13 = vrot.slane %v2564_v4, 4  ;;  %v2567_v8 = vrot.slane %v5341_v53, 5  ;;  %p5370_p13 = pnand %p5369_p12, %p5507_p4 }
 0x20e   : > { %v3900_v40 = vsel %vm5733_vm7, %v5065_v58, %v3899_v22  ;;  %v3428_v38 = vor.u32 %v3427_v0, %v3424_v50  ;;  %v3438_v16 = vor.u32 %v3437_v56, %v6663_v48  ;;  %v2565_v19 = vsel %vm5733_vm7, %v4839_v23, %v2564_v4 }
 0x20f   : > { %v4202_v10 = vadd.f32 %v6627_v30, %v4166_v46  ;;  %v4054_v28 = vpop.f32.mrf.mxu0  ;;  %v3961_v50 = vunpack.c.l.b16 %v3900_v40  ;;  %p5371_p0 = pneg %p5370_p13 }
 0x210   : > { %v3656_v7 = vpop.f32.mrf.mxu3  ;;  %v2717_v59 = vpop.f32.mrf.mxu1 }
 0x211   : > { %vm4234_vm9 = vcmp.ge.f32.partialorder %v4202_v10, 0.0  ;;  %v4268_v41 = vmul.f32 %v6642_v42, %v4202_v10  ;;  %v3733_v20 = vadd.f32 %v3656_v7, %v3079_v62  ;;  %v6672_v62 = vld [vmem:[%s5547_s28 + $0xa4] sm:$0x1]  ;;  %v3564_v7 = vunpack.c.l.b16 %v3420_v12 }
 0x212   : > { %5081 = vmatmul.msk.bf16.gmra.mxu0 %vm730_vm4, %v3982_v27  ;;  %v5135_v27 = vld [vmem:[%s5547_s28 + $0x90] sm:$0xff] }
 0x213   : > { %v4300_v9 = vsel %vm4234_vm9, %v4202_v10, %v4268_v41  ;;  %v4131_v35 = vadd.f32 %v4054_v28, %v3733_v20  ;;  %v3004_v46 = vpop.f32.mrf.mxu2  ;;  %4855 = vmatmul.msk.bf16.gmra.mxu1 %vm730_vm4, %v2641_v55  ;;  %v3903_v10 = vsel %vm5733_vm7, %v3901_v43, %v3902_v11  ;;  %v3441_v28 = vshll.u32 %v6672_v62, 16  ;;  %v5010_v41 = vld [vmem:[%s5547_s28 + $0xa8] sm:$0xf] }
 0x214   : > { %v5145_v15 = vpack.c.bf16 %v4300_v9, %v4299_v61  ;;  %v3080_v32 = vadd.f32 %v3004_v46, %v2790_v5  ;;  %v3585_v22 = vpack.c.b16 %v3564_v7, %v3563_v24  ;;  %v2568_v20 = vsel %vm5733_vm7, %v2566_v13, %v2567_v8  ;;  %v5050_v7 = vld [vmem:[%s5547_s28 + $0x9c] sm:$0xe] }
 0x215   : > { %v4167_v12 = vmul.f32 %v6603_v52, %v4131_v35  ;;  %v3962_v5 = vunpack.c.l.b16 %v3903_v10  ;;  %v3429_v43 = vrot.slane %v3428_v38, 4  ;;  %v3439_v11 = vrot.slane %v3438_v16, 4  ;;  %v6703_v38 = vld [vmem:[%s5547_s28 + $0xac] sm:$0xf] }
 0x216   : > { %5146 = vst [vmem:[%s6680_s30] sm:$0xff] %v5145_v15   ;;  %v2621_v61 = vunpack.c.l.b16 %v2565_v19  ;;  %v3443_v9 = vrot.slane %v3441_v28, 5  ;;  %v3446_v35 = vshrl.u32 %v5010_v41, 16  ;;  %v3449_v4 = vshll.u32 %v5010_v41, 16 }
 0x217   : > { %v4056_v55 = vpop.f32.mrf.mxu0  ;;  %v4203_v46 = vadd.f32 %v6627_v30, %v4167_v12  ;;  %v2791_v24 = vadd.f32 %v2717_v59, %v6064_v57  ;;  %v3906_v13 = vrot.slane %v6636_v39, 5  ;;  %v3983_v53 = vpack.c.b16 %v3962_v5, %v3961_v50  ;;  %v5342_v59 = vld [vmem:[%s5547_s28 + $0xa0] sm:$0xf] }
 0x218   : > { %v3658_v58 = vpop.f32.mrf.mxu3  ;;  %4968 = vmatmul.msk.bf16.gmra.mxu2 %vm730_vm4, %v5135_v27  ;;  %v2719_v0 = vpop.f32.mrf.mxu1  ;;  %v2622_v27 = vunpack.c.l.b16 %v2568_v20  ;;  %v3434_v40 = vsel %vm5559_vm3, %v3429_v43, %v6663_v48  ;;  %v3444_v57 = vsel %vm5559_vm3, %v3439_v11, %v3443_v9  ;;  %v2571_v16 = vrot.slane %v5342_v59, 5 }
 0x219   : > { %v3734_v56 = vadd.f32 %v3658_v58, %v3080_v32  ;;  %v3448_v10 = vrot.slane %v3446_v35, 4  ;;  %v3451_v39 = vrot.slane %v3449_v4, 5  ;;  %v4269_v28 = vmul.f32 %v6642_v42, %v4203_v46  ;;  %v4824_v58 = vld [vmem:[%s5547_s28 + $0x9c] sm:$0xe] }
 0x21a   : > { %v2642_v19 = vpack.c.b16 %v2622_v27, %v2621_v61  ;;  %v5066_v41 = vrot.slane %v5050_v7, 9  ;;  %vm4235_vm10 = vcmp.ge.f32.partialorder %v4203_v46, 0.0  ;;  %v3908_v50 = vrot.slane %v3906_v13, 4  ;;  %v5343_v27 = vld [vmem:[%s5547_s28 + $0xa4] sm:$0x1] }
 0x21b   : > { %v4132_v23 = vadd.f32 %v4056_v55, %v3734_v56  ;;  %v3007_v15 = vpop.f32.mrf.mxu2  ;;  %v3909_v20 = vrot.slane %v6672_v62, 5  ;;  %v3455_v56 = vshll.u32 %v6703_v38, 16  ;;  %v3459_v11 = vshrl.u32 %v6703_v38, 16 }
 0x21c   : > { %v3081_v8 = vadd.f32 %v3007_v15, %v2791_v24  ;;  %v2792_v61 = vadd.f32 %v2719_v0, %v6077_v54  ;;  %v4840_v9 = vrot.slane %v4824_v58, 9  ;;  %v2573_v35 = vrot.slane %v2571_v16, 4 }
 0x21d   : > { %v4168_v32 = vmul.f32 %v6603_v52, %v4132_v23  ;;  %5033 = vmatmul.msk.bf16.gmra.mxu3 %vm730_vm4, %v3585_v22  ;;  %v3452_v4 = vor.u32 %v3451_v39, %v3448_v10  ;;  %v4301_v23 = vsel %vm4235_vm10, %v4203_v46, %v4269_v28  ;;  %v2574_v7 = vrot.slane %v5343_v27, 5  ;;  %v6725_v46 = vld [vmem:[%s5547_s28 + $0xb0] sm:$0x1] }
 0x21e   : > { %v3565_v59 = vunpack.c.l.b16 %v3434_v40  ;;  %v3907_v54 = vsel %vm5733_vm7, %v5066_v41, %v3906_v13  ;;  %v3457_v10 = vrot.slane %v3455_v56, 5  ;;  %v3461_v39 = vrot.slane %v3459_v11, 4 }
 0x21f   : > { %v4204_v12 = vadd.f32 %v6627_v30, %v4168_v32  ;;  %v4059_v55 = vpop.f32.mrf.mxu0  ;;  %v3453_v28 = vrot.slane %v3452_v4, 4  ;;  %v2572_v40 = vsel %vm5733_vm7, %v4840_v9, %v2571_v16  ;;  %v2575_v13 = vsel %vm5733_vm7, %v2573_v35, %v2574_v7 }
 0x220   : > { %v3661_v22 = vpop.f32.mrf.mxu3  ;;  %v2722_v48 = vpop.f32.mrf.mxu1  ;;  %v2623_v11 = vunpack.c.l.b16 %v2572_v40 }
 0x221   : > { %vm4236_vm11 = vcmp.ge.f32.partialorder %v4204_v12, 0.0  ;;  %v4270_v5 = vmul.f32 %v6642_v42, %v4204_v12  ;;  %v3735_v43 = vadd.f32 %v3661_v22, %v3081_v8  ;;  %v5136_v8 = vld [vmem:[%s5547_s28 + $0x9c] sm:$0xff]  ;;  %v3566_v22 = vunpack.c.l.b16 %v3444_v57 }
 0x222   : > { %5082 = vmatmul.msk.bf16.gmra.mxu0 %vm730_vm4, %v3983_v53  ;;  %v3910_v53 = vsel %vm5733_vm7, %v3908_v50, %v3909_v20  ;;  %v3465_v50 = vshll.u32 %v6725_v46, 16  ;;  %v3458_v16 = vsel %vm5559_vm3, %v3453_v28, %v3457_v10  ;;  %v2793_v4 = vadd.f32 %v2722_v48, %v6090_v33 }
 0x223   : > { %v4302_v62 = vsel %vm4236_vm11, %v4204_v12, %v4270_v5  ;;  %v4133_v24 = vadd.f32 %v4059_v55, %v3735_v43  ;;  %v3009_v15 = vpop.f32.mrf.mxu2  ;;  %4856 = vmatmul.msk.bf16.gmra.mxu1 %vm730_vm4, %v2642_v19  ;;  %v3963_v19 = vunpack.c.l.b16 %v3907_v54  ;;  %v3964_v41 = vunpack.c.l.b16 %v3910_v53  ;;  %v5013_v43 = vld [vmem:[%s5547_s28 + $0xb4] sm:$0xf] }
 0x224   : > { %v5150_v32 = vpack.c.bf16 %v4302_v62, %v4301_v23  ;;  %v3082_v0 = vadd.f32 %v3009_v15, %v2792_v61  ;;  %v3586_v56 = vpack.c.b16 %v3566_v22, %v3565_v59  ;;  %v3462_v5 = vor.u32 %v3461_v39, %v3457_v10  ;;  %v5051_v62 = vld [vmem:[%s5547_s28 + $0xa8] sm:$0xe]  ;;  %v6743_v15 = vld [vmem:[%s5547_s28 + $0xb8] sm:$0xf] }
 0x225   : > { %v4169_v12 = vmul.f32 %v6603_v52, %v4133_v24  ;;  %v2624_v61 = vunpack.c.l.b16 %v2575_v13  ;;  %v3913_v24 = vrot.slane %v6703_v38, 5  ;;  %v3984_v27 = vpack.c.b16 %v3964_v41, %v3963_v19  ;;  %v4825_v13 = vld [vmem:[%s5547_s28 + $0xa8] sm:$0xe] }
 0x226   : > { %5222 = vst [vmem:[%s6680_s30 + $0x8] sm:$0xff] %v5150_v32   ;;  %v3467_v7 = vrot.slane %v3465_v50, 5  ;;  %v3470_v32 = vshrl.u32 %v5013_v43, 16  ;;  %v3463_v22 = vrot.slane %v3462_v5, 4  ;;  %v3473_v54 = vshll.u32 %v5013_v43, 16 }
 0x227   : > { %v4061_v55 = vpop.f32.mrf.mxu0  ;;  %v4205_v9 = vadd.f32 %v6627_v30, %v4169_v12  ;;  %v5067_v33 = vrot.slane %v5051_v62, 9  ;;  %v3916_v48 = vrot.slane %v6725_v46, 5  ;;  %v3479_v38 = vshll.u32 %v6743_v15, 16 }
 0x228   : > { %v3663_v57 = vpop.f32.mrf.mxu3  ;;  %4969 = vmatmul.msk.bf16.gmra.mxu2 %vm730_vm4, %v5136_v8  ;;  %v2724_v58 = vpop.f32.mrf.mxu1  ;;  %v2643_v28 = vpack.c.b16 %v2624_v61, %v2623_v11  ;;  %v3915_v12 = vrot.slane %v3913_v24, 4  ;;  %v3472_v41 = vrot.slane %v3470_v32, 4  ;;  %v3483_v50 = vshrl.u32 %v6743_v15, 16  ;;  %v5345_v32 = vld [vmem:[%s5547_s28 + $0xb0] sm:$0x1] }
 0x229   : > { %v3736_v20 = vadd.f32 %v3663_v57, %v3082_v0  ;;  %v6747_v0 = vunpack.c.l.b16 %v3458_v16  ;;  %v4271_v53 = vmul.f32 %v6642_v42, %v4205_v9  ;;  %vm4237_vm12 = vcmp.ge.f32.partialorder %v4205_v9, 0.0  ;;  %v5344_v57 = vld [vmem:[%s5547_s28 + $0xac] sm:$0xf] }
 0x22a   : > { %v2578_v19 = vrot.slane %v5344_v57, 5  ;;  %v2794_v5 = vadd.f32 %v2724_v58, %v6103_v31  ;;  %v3468_v43 = vsel %vm5559_vm3, %v3463_v22, %v3467_v7  ;;  %v3914_v11 = vsel %vm5733_vm7, %v5067_v33, %v3913_v24  ;;  %v5137_v31 = vld [vmem:[%s5547_s28 + $0xa8] sm:$0xff] }
 0x22b   : > { %v4134_v35 = vadd.f32 %v4061_v55, %v3736_v20  ;;  %v3012_v23 = vpop.f32.mrf.mxu2  ;;  %v6763_v61 = vrot.slane %v3479_v38, 5  ;;  %v4303_v16 = vsel %vm4237_vm12, %v4205_v9, %v4271_v53  ;;  %v4841_v62 = vrot.slane %v4825_v13, 9 }
 0x22c   : > { %v3083_v59 = vadd.f32 %v3012_v23, %v2793_v4  ;;  %v2580_v58 = vrot.slane %v2578_v19, 4  ;;  %v2581_v7 = vrot.slane %v5345_v32, 5  ;;  %v3568_v24 = vunpack.c.l.b16 %v3468_v43 }
 0x22d   : > { %v4170_v8 = vmul.f32 %v6603_v52, %v4134_v35  ;;  %5034 = vmatmul.msk.bf16.gmra.mxu3 %vm730_vm4, %v3586_v56  ;;  %v3475_v56 = vrot.slane %v3473_v54, 5  ;;  %v3917_v22 = vsel %vm5733_vm7, %v3915_v12, %v3916_v48  ;;  %v6772_v54 = vld [vmem:[%s5547_s28 + $0xbc] sm:$0x1]  ;;  %v3965_v53 = vunpack.c.l.b16 %v3914_v11  ;;  %v5052_v11 = vld [vmem:[%s5547_s28 + $0xb4] sm:$0xe] }
 0x22e   : > { %v2582_v48 = vsel %vm5733_vm7, %v2580_v58, %v2581_v7  ;;  %v3489_v13 = vshll.u32 %v6772_v54, 16 }
 0x22f   : > { %v4206_v10 = vadd.f32 %v6627_v30, %v4170_v8  ;;  %v4064_v39 = vpop.f32.mrf.mxu0  ;;  %v3485_v8 = vrot.slane %v3483_v50, 4  ;;  %v3476_v9 = vor.u32 %v3475_v56, %v3472_v41  ;;  %v3587_v41 = vpack.c.b16 %v3568_v24, %v6747_v0 }
 0x230   : > { %v3666_v55 = vpop.f32.mrf.mxu3  ;;  %v2727_v40 = vpop.f32.mrf.mxu1  ;;  %v2626_v43 = vunpack.c.l.b16 %v2582_v48 }
 0x231   : > { %vm4238_vm13 = vcmp.ge.f32.partialorder %v4206_v10, 0.0  ;;  %v4272_v46 = vmul.f32 %v6642_v42, %v4206_v10  ;;  %v3737_v20 = vadd.f32 %v3666_v55, %v3083_v59  ;;  %v3486_v12 = vor.u32 %v3485_v8, %v6763_v61 }
 0x232   : > { %5083 = vmatmul.msk.bf16.gmra.mxu0 %vm730_vm4, %v3984_v27  ;;  %v3477_v50 = vrot.slane %v3476_v9, 4  ;;  %v2795_v56 = vadd.f32 %v2727_v40, %v6116_v1  ;;  %v3920_v1 = vrot.slane %v6743_v15, 5  ;;  %v5068_v40 = vrot.slane %v5052_v11, 9  ;;  %v4826_v15 = vld [vmem:[%s5547_s28 + $0xb4] sm:$0xe] }
 0x233   : > { %v4304_v35 = vsel %vm4238_vm13, %v4206_v10, %v4272_v46  ;;  %v4135_v4 = vadd.f32 %v4064_v39, %v3737_v20  ;;  %v3014_v23 = vpop.f32.mrf.mxu2  ;;  %4857 = vmatmul.msk.bf16.gmra.mxu1 %vm730_vm4, %v2643_v28  ;;  %v2579_v10 = vsel %vm5733_vm7, %v4841_v62, %v2578_v19  ;;  %v3966_v28 = vunpack.c.l.b16 %v3917_v22  ;;  %v5138_v11 = vld [vmem:[%s5547_s28 + $0xb4] sm:$0xff] }
 0x234   : > { %v5155_v27 = vpack.c.bf16 %v4304_v35, %v4303_v16  ;;  %v3084_v59 = vadd.f32 %v3014_v23, %v2794_v5  ;;  %v2625_v19 = vunpack.c.l.b16 %v2579_v10  ;;  %v5016_v16 = vld [vmem:[%s5547_s28 + $0xc0] sm:$0xf]  ;;  %v6789_v35 = vld [vmem:[%s5547_s28 + $0xc4] sm:$0xf]  ;;  %v3487_v23 = vrot.slane %v3486_v12, 4 }
 0x235   : > { %v4171_v33 = vmul.f32 %v6603_v52, %v4135_v4  ;;  %v3985_v4 = vpack.c.b16 %v3966_v28, %v3965_v53  ;;  %v3491_v62 = vrot.slane %v3489_v13, 5  ;;  %v3494_v58 = vshrl.u32 %v5016_v16, 16  ;;  %v5346_v53 = vld [vmem:[%s5547_s28 + $0xb8] sm:$0xf] }
 0x236   : > { %5223 = vst [vmem:[%s6680_s30 + $0x10] sm:$0xff] %v5155_v27   ;;  %v3497_v32 = vshll.u32 %v5016_v16, 16  ;;  %v3503_v7 = vshll.u32 %v6789_v35, 16  ;;  %v2644_v22 = vpack.c.b16 %v2626_v43, %v2625_v19  ;;  %v3923_v9 = vrot.slane %v6772_v54, 5 }
 0x237   : > { %v4066_v38 = vpop.f32.mrf.mxu0  ;;  %v4207_v46 = vadd.f32 %v6627_v30, %v4171_v33  ;;  %v2585_v10 = vrot.slane %v5346_v53, 5  ;;  %v3922_v12 = vrot.slane %v3920_v1, 4  ;;  %v3496_v13 = vrot.slane %v3494_v58, 4 }
 0x238   : > { %v3668_v39 = vpop.f32.mrf.mxu3  ;;  %4970 = vmatmul.msk.bf16.gmra.mxu2 %vm730_vm4, %v5137_v31  ;;  %v2729_v55 = vpop.f32.mrf.mxu1  ;;  %v3482_v31 = vsel %vm5559_vm3, %v3477_v50, %v6763_v61  ;;  %v3492_v61 = vsel %vm5559_vm3, %v3487_v23, %v3491_v62 }
 0x239   : > { %v3738_v57 = vadd.f32 %v3668_v39, %v3084_v59  ;;  %v4273_v8 = vmul.f32 %v6642_v42, %v4207_v46  ;;  %vm4239_vm14 = vcmp.ge.f32.partialorder %v4207_v46, 0.0  ;;  %v3507_v39 = vshrl.u32 %v6789_v35, 16 }
 0x23a   : > { %v2796_v54 = vadd.f32 %v2729_v55, %v6130_v25  ;;  %v2587_v16 = vrot.slane %v2585_v10, 4  ;;  %v3569_v62 = vunpack.c.l.b16 %v3482_v31 }
 0x23b   : > { %v4136_v20 = vadd.f32 %v4066_v38, %v3738_v57  ;;  %v3017_v5 = vpop.f32.mrf.mxu2  ;;  %v3499_v57 = vrot.slane %v3497_v32, 5  ;;  %v4305_v50 = vsel %vm4239_vm14, %v4207_v46, %v4273_v8  ;;  %v3509_v25 = vrot.slane %v3507_v39, 4 }
 0x23c   : > { %v3085_v0 = vadd.f32 %v3017_v5, %v2795_v56  ;;  %v4842_v5 = vrot.slane %v4826_v15, 9  ;;  %v3924_v8 = vsel %vm5733_vm7, %v3922_v12, %v3923_v9 }
 0x23d   : > { %v4172_v27 = vmul.f32 %v6603_v52, %v4136_v20  ;;  %5035 = vmatmul.msk.bf16.gmra.mxu3 %vm730_vm4, %v3587_v41  ;;  %v6809_v41 = vrot.slane %v3503_v7, 5  ;;  %v3500_v46 = vor.u32 %v3499_v57, %v3496_v13  ;;  %v3921_v7 = vsel %vm5733_vm7, %v5068_v40, %v3920_v1  ;;  %v5053_v57 = vld [vmem:[%s5547_s28 + $0xc0] sm:$0xe] }
 0x23e   : > { %v3967_v40 = vunpack.c.l.b16 %v3921_v7  ;;  %v3968_v9 = vunpack.c.l.b16 %v3924_v8  ;;  %v5348_v7 = vld [vmem:[%s5547_s28 + $0xc4] sm:$0xf] }
 0x23f   : > { %v4208_v59 = vadd.f32 %v6627_v30, %v4172_v27  ;;  %v4069_v24 = vpop.f32.mrf.mxu0  ;;  %v3570_v27 = vunpack.c.l.b16 %v3492_v61  ;;  %v3501_v39 = vrot.slane %v3500_v46, 4  ;;  %v2592_v8 = vrot.slane %v5348_v7, 5 }
 0x240   : > { %v3671_v33 = vpop.f32.mrf.mxu3  ;;  %v2732_v38 = vpop.f32.mrf.mxu1 }
 0x241   : > { %vm4240_vm15 = vcmp.ge.f32.partialorder %v4208_v59, 0.0  ;;  %v4274_v28 = vmul.f32 %v6642_v42, %v4208_v59  ;;  %v3739_v48 = vadd.f32 %v3671_v33, %v3085_v0  ;;  %v6816_v0 = vld [vmem:[%s5547_s28 + $0xc8] sm:$0x1]  ;;  %v3510_v33 = vor.u32 %v3509_v25, %v6809_v41 }
 0x242   : > { %5084 = vmatmul.msk.bf16.gmra.mxu0 %vm730_vm4, %v3985_v4  ;;  %v5347_v4 = vld [vmem:[%s5547_s28 + $0xbc] sm:$0x1]  ;;  %v3513_v61 = vshll.u32 %v6816_v0, 16  ;;  %v3588_v1 = vpack.c.b16 %v3570_v27, %v3569_v62  ;;  %v3930_v62 = vrot.slane %v6816_v0, 5  ;;  %v6845_v27 = vld [vmem:[%s5547_s28 + $0xd0] sm:$0xf] }
 0x243   : > { %v4306_v19 = vsel %vm4240_vm15, %v4208_v59, %v4274_v28  ;;  %v4137_v20 = vadd.f32 %v4069_v24, %v3739_v48  ;;  %v3019_v56 = vpop.f32.mrf.mxu2  ;;  %4858 = vmatmul.msk.bf16.gmra.mxu1 %vm730_vm4, %v2644_v22  ;;  %v2588_v23 = vrot.slane %v5347_v4, 5  ;;  %v2586_v59 = vsel %vm5733_vm7, %v4842_v5, %v2585_v10  ;;  %v7051_v48 = vld [vmem:[#allocation6_spill] sm:$0xff]  ;;  %v5019_v5 = vld [vmem:[%s5547_s28 + $0xcc] sm:$0xf] }
 0x244   : > { %v5160_v43 = vpack.c.bf16 %v4306_v19, %v4305_v50  ;;  %v3086_v55 = vadd.f32 %v3019_v56, %v2796_v54  ;;  %v2627_v53 = vunpack.c.l.b16 %v2586_v59  ;;  %v2797_v12 = vadd.f32 %v2732_v38, %v7051_v48  ;;  %v5139_v48 = vld [vmem:[%s5547_s28 + $0xc0] sm:$0xff] }
 0x245   : > { %v4173_v58 = vmul.f32 %v6603_v52, %v4137_v20  ;;  %v2589_v22 = vsel %vm5733_vm7, %v2587_v16, %v2588_v23  ;;  %v3511_v50 = vrot.slane %v3510_v33, 4  ;;  %v3515_v19 = vrot.slane %v3513_v61, 5 }
 0x246   : > { %5224 = vst [vmem:[%s6680_s30 + $0x18] sm:$0xff] %v5160_v43   ;;  %v2628_v13 = vunpack.c.l.b16 %v2589_v22  ;;  %v3986_v43 = vpack.c.b16 %v3968_v9, %v3967_v40  ;;  %v5069_v38 = vrot.slane %v5053_v57, 9  ;;  %v3927_v16 = vrot.slane %v6789_v35, 5 }
 0x247   : > { %v4071_v32 = vpop.f32.mrf.mxu0  ;;  %v4209_v10 = vadd.f32 %v6627_v30, %v4173_v58  ;;  %v3518_v35 = vshrl.u32 %v5019_v5, 16  ;;  %v3521_v22 = vshll.u32 %v5019_v5, 16  ;;  %v3527_v61 = vshll.u32 %v6845_v27, 16 }
 0x248   : > { %v3673_v24 = vpop.f32.mrf.mxu3  ;;  %4971 = vmatmul.msk.bf16.gmra.mxu2 %vm730_vm4, %v5138_v11  ;;  %v2734_v31 = vpop.f32.mrf.mxu1  ;;  %v3506_v11 = vsel %vm5559_vm3, %v3501_v39, %v6809_v41  ;;  %v4827_v41 = vld [vmem:[%s5547_s28 + $0xc0] sm:$0xe]  ;;  %v3929_v33 = vrot.slane %v3927_v16, 4 }
 0x249   : > { %v3740_v15 = vadd.f32 %v3673_v24, %v3086_v55  ;;  %v4275_v4 = vmul.f32 %v6642_v42, %v4209_v10  ;;  %v2645_v55 = vpack.c.b16 %v2628_v13, %v2627_v53  ;;  %vm4241_vm0 = vcmp.ge.f32.partialorder %v4209_v10, 0.0 }
 0x24a   : > { %v2798_v0 = vadd.f32 %v2734_v31, %v6177_v47  ;;  %v4843_v39 = vrot.slane %v4827_v41, 9  ;;  %v5349_v47 = vld [vmem:[%s5547_s28 + $0xc8] sm:$0x1] }
 0x24b   : > { %v4138_v28 = vadd.f32 %v4071_v32, %v3740_v15  ;;  %v3022_v54 = vpop.f32.mrf.mxu2  ;;  %v3516_v32 = vsel %vm5559_vm3, %v3511_v50, %v3515_v19  ;;  %v3531_v15 = vshrl.u32 %v6845_v27, 16  ;;  %v2595_v31 = vrot.slane %v5349_v47, 5 }
 0x24c   : > { %v3087_v56 = vadd.f32 %v3022_v54, %v2797_v12  ;;  %v3571_v12 = vunpack.c.l.b16 %v3506_v11  ;;  %v2594_v54 = vrot.slane %v2592_v8, 4  ;;  %v3572_v57 = vunpack.c.l.b16 %v3516_v32 }
 0x24d   : > { %v4174_v20 = vmul.f32 %v6603_v52, %v4138_v28  ;;  %5036 = vmatmul.msk.bf16.gmra.mxu3 %vm730_vm4, %v3588_v1  ;;  %v4307_v1 = vsel %vm4241_vm0, %v4209_v10, %v4275_v4  ;;  %v3520_v50 = vrot.slane %v3518_v35, 4  ;;  %v3523_v19 = vrot.slane %v3521_v22, 5 }
 0x24e   : > { %v3928_v10 = vsel %vm5733_vm7, %v5069_v38, %v3927_v16  ;;  %v3931_v11 = vsel %vm5733_vm7, %v3929_v33, %v3930_v62  ;;  %v2593_v4 = vsel %vm5733_vm7, %v4843_v39, %v2592_v8  ;;  %v3589_v16 = vpack.c.b16 %v3572_v57, %v3571_v12 }
 0x24f   : > { %v4210_v23 = vadd.f32 %v6627_v30, %v4174_v20  ;;  %v4074_v25 = vpop.f32.mrf.mxu0  ;;  %v3529_v20 = vrot.slane %v3527_v61, 5  ;;  %v3969_v32 = vunpack.c.l.b16 %v3928_v10  ;;  %v3524_v41 = vor.u32 %v3523_v19, %v3520_v50 }
 0x250   : > { %v3676_v46 = vpop.f32.mrf.mxu3  ;;  %v2737_v58 = vpop.f32.mrf.mxu1  ;;  %v3970_v7 = vunpack.c.l.b16 %v3931_v11  ;;  %v2629_v35 = vunpack.c.l.b16 %v2593_v4  ;;  %v3934_v39 = vrot.slane %v6845_v27, 5  ;;  %v7052_v11 = vld [vmem:[#allocation7_spill] sm:$0xff] }
 0x251   : > { %vm4242_vm1 = vcmp.ge.f32.partialorder %v4210_v23, 0.0  ;;  %v4276_v59 = vmul.f32 %v6642_v42, %v4210_v23  ;;  %v3741_v24 = vadd.f32 %v3676_v46, %v3087_v56  ;;  %v3533_v56 = vrot.slane %v3531_v15, 4 }
 0x252   : > { %5085 = vmatmul.msk.bf16.gmra.mxu0 %vm730_vm4, %v3986_v43  ;;  %v2596_v46 = vsel %vm5733_vm7, %v2594_v54, %v2595_v31  ;;  %v2799_v8 = vadd.f32 %v2737_v58, %v6188_v51  ;;  %v5054_v51 = vld [vmem:[%s5547_s28 + $0xcc] sm:$0xe]  ;;  %v3936_v19 = vrot.slane %v3934_v39, 4 }
 0x253   : > { %v4308_v40 = vsel %vm4242_vm1, %v4210_v23, %v4276_v59  ;;  %v4139_v9 = vadd.f32 %v4074_v25, %v3741_v24  ;;  %v3024_v53 = vpop.f32.mrf.mxu2  ;;  %4859 = vmatmul.msk.bf16.gmra.mxu1 %vm730_vm4, %v2645_v55  ;;  %v5021_v23 = vld [vmem:[%s5547_s28 + $0xd4] sm:$0x1]  ;;  %v3534_v59 = vor.u32 %v3533_v56, %v3529_v20  ;;  %v2630_v33 = vunpack.c.l.b16 %v2596_v46 }
 0x254   : > { %v5165_v28 = vpack.c.bf16 %v4308_v40, %v4307_v1  ;;  %v3088_v13 = vadd.f32 %v3024_v53, %v2798_v0  ;;  %v3537_v24 = vshll.u32 %v5021_v23, 16  ;;  %v3525_v1 = vrot.slane %v3524_v41, 4 }
 0x255   : > { %v4175_v5 = vmul.f32 %v6603_v52, %v4139_v9  ;;  %v3987_v40 = vpack.c.b16 %v3970_v7, %v3969_v32  ;;  %v3535_v9 = vrot.slane %v3534_v59, 4  ;;  %v2646_v54 = vpack.c.b16 %v2630_v33, %v2629_v35 }
 0x256   : > { %5225 = vst [vmem:[%s6680_s30 + $0x20] sm:$0xff] %v5165_v28   ;;  %v3539_v53 = vrot.slane %v3537_v24, 5  ;;  %v3530_v57 = vsel %vm5559_vm3, %v3525_v1, %v3529_v20  ;;  %v5070_v50 = vrot.slane %v5054_v51, 9  ;;  %v3937_v10 = vrot.slane %v5021_v23, 5 }
 0x257   : > { %v4076_v43 = vpop.f32.mrf.mxu0  ;;  %v4211_v62 = vadd.f32 %v6627_v30, %v4175_v5 }
 0x258   : > { %v3678_v25 = vpop.f32.mrf.mxu3  ;;  %4972 = vmatmul.msk.bf16.gmra.mxu2 %vm730_vm4, %v5139_v48  ;;  %v2739_v55 = vpop.f32.mrf.mxu1  ;;  %v3540_v27 = vsel %vm5559_vm3, %v3535_v9, %v3539_v53  ;;  %v3935_v23 = vsel %vm5733_vm7, %v5070_v50, %v3934_v39  ;;  %v3938_v7 = vsel %vm5733_vm7, %v3936_v19, %v3937_v10 }
 0x259   : > { %v3742_v38 = vadd.f32 %v3678_v25, %v3088_v13  ;;  %v4277_v28 = vmul.f32 %v6642_v42, %v4211_v62  ;;  %vm4243_vm2 = vcmp.ge.f32.partialorder %v4211_v62, 0.0  ;;  %v2800_v4 = vadd.f32 %v2739_v55, %v7052_v11 }
 0x25a   : > { %v3574_v32 = vunpack.c.l.b16 %v3540_v27 }
 0x25b   : > { %v4140_v22 = vadd.f32 %v4076_v43, %v3742_v38  ;;  %v3027_v0 = vpop.f32.mrf.mxu2  ;;  %v4309_v56 = vsel %vm4243_vm2, %v4211_v62, %v4277_v28  ;;  %v5140_v38 = vld [vmem:[%s5547_s28 + $0xcc] sm:$0xff]  ;;  %v3971_v62 = vunpack.c.l.b16 %v3935_v23  ;;  %s5372_s28 = scalar_lea.hbm %s7039_s5, 256 }
 0x25c   : > { %v3089_v15 = vadd.f32 %v3027_v0, %v2799_v8  ;;  %p5374_p2 = scmp.lt.s32.totalorder %s5372_s28, %s5368_s18 }
 0x25d   : > { %v4176_v61 = vmul.f32 %v6603_v52, %v4140_v22  ;;  %5037 = vmatmul.msk.bf16.gmra.mxu3 %vm730_vm4, %v3589_v16  ;;  %v3573_v16 = vunpack.c.l.b16 %v3530_v57  ;;  %v3972_v22 = vunpack.c.l.b16 %v3938_v7 }
 0x25e   : > { %p5375_p3 = por %p5374_p2, %p5373_p1 }
 0x25f   : > { %v4212_v48 = vadd.f32 %v6627_v30, %v4176_v61  ;;  %v4079_v12 = vpop.f32.mrf.mxu0  ;;  %v3590_v24 = vpack.c.b16 %v3574_v32, %v3573_v16  ;;  %v3988_v1 = vpack.c.b16 %v3972_v22, %v3971_v62 }
 0x260   : > { %v3681_v58 = vpop.f32.mrf.mxu3  ;;  %v2742_v47 = vpop.f32.mrf.mxu1  ;;  %p5376_p5 = pnand %p5375_p3, %p5371_p0 }
 0x261   : > { %vm4244_vm5 = vcmp.ge.f32.partialorder %v4212_v48, 0.0  ;;  %v4278_v31 = vmul.f32 %v6642_v42, %v4212_v48  ;;  %v3743_v13 = vadd.f32 %v3681_v58, %v3089_v15  ;;  %v2801_v33 = vadd.f32 %v2742_v47, %v6224_v29 }
 0x262   : > { %5086 = vmatmul.msk.bf16.gmra.mxu0 %vm730_vm4, %v3987_v40 }
 0x263   : > { %v4310_v5 = vsel %vm4244_vm5, %v4212_v48, %v4278_v31  ;;  %v4141_v43 = vadd.f32 %v4079_v12, %v3743_v13  ;;  %v3029_v25 = vpop.f32.mrf.mxu2  ;;  %4860 = vmatmul.msk.bf16.gmra.mxu1 %vm730_vm4, %v2646_v54 }
 0x264   : > { %v5170_v46 = vpack.c.bf16 %v4310_v5, %v4309_v56  ;;  %v3090_v20 = vadd.f32 %v3029_v25, %v2800_v4 }
 0x265   : > { %v4177_v36 = vmul.f32 %v6603_v52, %v4141_v43 }
 0x266   : > { %5226 = vst [vmem:[%s6680_s30 + $0x28] sm:$0xff] %v5170_v46  }
 0x267   : > { %v4081_v41 = vpop.f32.mrf.mxu0  ;;  %v4213_v8 = vadd.f32 %v6627_v30, %v4177_v36 }
 0x268   : > { %v3683_v35 = vpop.f32.mrf.mxu3  ;;  %4973 = vmatmul.msk.bf16.gmra.mxu2 %vm730_vm4, %v5140_v38  ;;  %v2744_v55 = vpop.f32.mrf.mxu1 }
 0x269   : > { %v3744_v59 = vadd.f32 %v3683_v35, %v3090_v20  ;;  %v4279_v40 = vmul.f32 %v6642_v42, %v4213_v8  ;;  %vm4245_vm3 = vcmp.ge.f32.partialorder %v4213_v8, 0.0  ;;  %v2802_v58 = vadd.f32 %v2744_v55, %v6248_v37 }
 0x26b   : > { %v4142_v0 = vadd.f32 %v4081_v41, %v3744_v59  ;;  %v3032_v61 = vpop.f32.mrf.mxu2  ;;  %v4311_v12 = vsel %vm4245_vm3, %v4213_v8, %v4279_v40  ;;  %v6918_v59 = vld [vmem:[%s7036_s2] ss:$0 sm:$0xff] }
 0x26c   : > { %v3091_v18 = vadd.f32 %v3032_v61, %v2801_v33 }
 0x26d   : > { %v4178_v15 = vmul.f32 %v6603_v52, %v4142_v0  ;;  %5038 = vmatmul.msk.bf16.gmra.mxu3 %vm730_vm4, %v3590_v24 }
 0x26f   : > { %v4214_v9 = vadd.f32 %v6627_v30, %v4178_v15  ;;  %v4084_v53 = vpop.f32.mrf.mxu0 }
 0x270   : > { %v3686_v39 = vpop.f32.mrf.mxu3  ;;  %v2747_v28 = vpop.f32.mrf.mxu1 }
 0x271   : > { %vm4246_vm6 = vcmp.ge.f32.partialorder %v4214_v9, 0.0  ;;  %v4280_v48 = vmul.f32 %v6642_v42, %v4214_v9  ;;  %v3745_v29 = vadd.f32 %v3686_v39, %v3091_v18  ;;  %v2803_v43 = vadd.f32 %v2747_v28, %v6267_v34 }
 0x272   : > { %5087 = vmatmul.msk.bf16.gmra.mxu0 %vm730_vm4, %v3988_v1 }
 0x273   : > { %v4312_v54 = vsel %vm4246_vm6, %v4214_v9, %v4280_v48  ;;  %v4143_v51 = vadd.f32 %v4084_v53, %v3745_v29  ;;  %v3034_v47 = vpop.f32.mrf.mxu2 }
 0x274   : > { %v5175_v31 = vpack.c.bf16 %v4312_v54, %v4311_v12  ;;  %v3092_v13 = vadd.f32 %v3034_v47, %v2802_v58 }
 0x275   : > { %v4179_v57 = vmul.f32 %v6603_v52, %v4143_v51 }
 0x276   : > { %5227 = vst [vmem:[%s6680_s30 + $0x30] sm:$0xff] %v5175_v31  }
 0x277   : > { %v4086_v27 = vpop.f32.mrf.mxu0  ;;  %v4215_v56 = vadd.f32 %v6627_v30, %v4179_v57 }
 0x278   : > { %v3688_v50 = vpop.f32.mrf.mxu3  ;;  %v2749_v19 = vpop.f32.mrf.mxu1 }
 0x279   : > { %v3746_v10 = vadd.f32 %v3688_v50, %v3092_v13  ;;  %v4281_v37 = vmul.f32 %v6642_v42, %v4215_v56  ;;  %vm4247_vm4 = vcmp.ge.f32.partialorder %v4215_v56, 0.0  ;;  %v2804_v7 = vadd.f32 %v2749_v19, %v6291_v3  ;;  %v6933_v19 = vld [vmem:[%s7037_s3] ss:$0 sm:$0xff] }
 0x27b   : > { %v4144_v5 = vadd.f32 %v4086_v27, %v3746_v10  ;;  %v3037_v11 = vpop.f32.mrf.mxu2  ;;  %v4313_v41 = vsel %vm4247_vm4, %v4215_v56, %v4281_v37 }
 0x27c   : > { %v3093_v25 = vadd.f32 %v3037_v11, %v2803_v43 }
 0x27d   : > { %v4180_v4 = vmul.f32 %v6603_v52, %v4144_v5 }
 0x27f   : > { %v4216_v46 = vadd.f32 %v6627_v30, %v4180_v4  ;;  %v4089_v38 = vpop.f32.mrf.mxu0 }
 0x280   : > { %v3691_v20 = vpop.f32.mrf.mxu3  ;;  %v2752_v16 = vpop.f32.mrf.mxu1 }
 0x281   : > { %vm4248_vm7 = vcmp.ge.f32.partialorder %v4216_v46, 0.0  ;;  %v4282_v32 = vmul.f32 %v6642_v42, %v4216_v46  ;;  %v3747_v36 = vadd.f32 %v3691_v20, %v3093_v25  ;;  %v2805_v3 = vadd.f32 %v2752_v16, %v6310_v2 }
 0x283   : > { %v4314_v23 = vsel %vm4248_vm7, %v4216_v46, %v4282_v32  ;;  %v4145_v34 = vadd.f32 %v4089_v38, %v3747_v36  ;;  %v3039_v52 = vpop.f32.mrf.mxu2 }
 0x284   : > { %v5180_v35 = vpack.c.bf16 %v4314_v23, %v4313_v41  ;;  %v3094_v55 = vadd.f32 %v3039_v52, %v2804_v7 }
 0x285   : > { %v4181_v24 = vmul.f32 %v6918_v59, %v4145_v34 }
 0x286   : > { %5228 = vst [vmem:[%s6680_s30 + $0x38] sm:$0xff] %v5180_v35  }
 0x287   : > { %v4091_v62 = vpop.f32.mrf.mxu0  ;;  %v4217_v33 = vadd.f32 %v6627_v30, %v4181_v24 }
 0x288   : > { %v3693_v22 = vpop.f32.mrf.mxu3  ;;  %v2754_v8 = vpop.f32.mrf.mxu1 }
 0x289   : > { %v3748_v0 = vadd.f32 %v3693_v22, %v3094_v55  ;;  %v4283_v40 = vmul.f32 %v6642_v42, %v4217_v33  ;;  %vm4249_vm8 = vcmp.ge.f32.partialorder %v4217_v33, 0.0  ;;  %v2806_v51 = vadd.f32 %v2754_v8, %v6334_v26 }
 0x28b   : > { %v4146_v61 = vadd.f32 %v4091_v62, %v3748_v0  ;;  %v3042_v15 = vpop.f32.mrf.mxu2  ;;  %v4315_v12 = vsel %vm4249_vm8, %v4217_v33, %v4283_v40 }
 0x28c   : > { %v3095_v1 = vadd.f32 %v3042_v15, %v2805_v3 }
 0x28d   : > { %v4182_v18 = vmul.f32 %v6918_v59, %v4146_v61 }
 0x28f   : > { %v4218_v9 = vadd.f32 %v6627_v30, %v4182_v18  ;;  %v4094_v53 = vpop.f32.mrf.mxu0 }
 0x290   : > { %v3696_v39 = vpop.f32.mrf.mxu3  ;;  %v2757_v28 = vpop.f32.mrf.mxu1 }
 0x291   : > { %vm4250_vm9 = vcmp.ge.f32.partialorder %v4218_v9, 0.0  ;;  %v4284_v48 = vmul.f32 %v6642_v42, %v4218_v9  ;;  %v3749_v29 = vadd.f32 %v3696_v39, %v3095_v1  ;;  %v2807_v26 = vadd.f32 %v2757_v28, %v6353_v60 }
 0x293   : > { %v4316_v54 = vsel %vm4250_vm9, %v4218_v9, %v4284_v48  ;;  %v4147_v2 = vadd.f32 %v4094_v53, %v3749_v29  ;;  %v3044_v58 = vpop.f32.mrf.mxu2 }
 0x294   : > { %v5185_v47 = vpack.c.bf16 %v4316_v54, %v4315_v12  ;;  %v3096_v31 = vadd.f32 %v3044_v58, %v2806_v51 }
 0x295   : > { %v4183_v13 = vmul.f32 %v6918_v59, %v4147_v2 }
 0x296   : > { %5229 = vst [vmem:[%s6680_s30 + $0x40] sm:$0xff] %v5185_v47  }
 0x297   : > { %v4096_v30 = vpop.f32.mrf.mxu0  ;;  %v4219_v10 = vadd.f32 %v6933_v19, %v4183_v13 }
 0x298   : > { %v3698_v57 = vpop.f32.mrf.mxu3  ;;  %v2759_v27 = vpop.f32.mrf.mxu1 }
 0x299   : > { %v3750_v50 = vadd.f32 %v3698_v57, %v3096_v31  ;;  %v4285_v4 = vmul.f32 %v6642_v42, %v4219_v10  ;;  %vm4251_vm10 = vcmp.ge.f32.partialorder %v4219_v10, 0.0  ;;  %v2808_v41 = vadd.f32 %v2759_v27, %v6377_v14 }
 0x29b   : > { %v4148_v56 = vadd.f32 %v4096_v30, %v3750_v50  ;;  %v3047_v5 = vpop.f32.mrf.mxu2  ;;  %v4317_v32 = vsel %vm4251_vm10, %v4219_v10, %v4285_v4 }
 0x29c   : > { %v3097_v11 = vadd.f32 %v3047_v5, %v2807_v26 }
 0x29d   : > { %v4184_v43 = vmul.f32 %v6918_v59, %v4148_v56 }
 0x29f   : > { %v4220_v25 = vadd.f32 %v6933_v19, %v4184_v43  ;;  %v4099_v37 = vpop.f32.mrf.mxu0 }
 0x2a0   : > { %v3701_v46 = vpop.f32.mrf.mxu3  ;;  %v2762_v38 = vpop.f32.mrf.mxu1 }
 0x2a1   : > { %vm4252_vm11 = vcmp.ge.f32.partialorder %v4220_v25, 0.0  ;;  %v4286_v20 = vmul.f32 %v6642_v42, %v4220_v25  ;;  %v3751_v16 = vadd.f32 %v3701_v46, %v3097_v11  ;;  %v2809_v0 = vadd.f32 %v2762_v38, %v6396_v21  ;;  %v7053_v46 = vld [vmem:[#allocation8_spill] sm:$0xff] }
 0x2a3   : > { %v4318_v36 = vsel %vm4252_vm11, %v4220_v25, %v4286_v20  ;;  %v4149_v60 = vadd.f32 %v4099_v37, %v3751_v16  ;;  %v3049_v23 = vpop.f32.mrf.mxu2 }
 0x2a4   : > { %v5190_v34 = vpack.c.bf16 %v4318_v36, %v4317_v32  ;;  %v3098_v7 = vadd.f32 %v3049_v23, %v2808_v41 }
 0x2a5   : > { %v4185_v52 = vmul.f32 %v6918_v59, %v4149_v60 }
 0x2a6   : > { %5230 = vst [vmem:[%s6680_s30 + $0x48] sm:$0xff] %v5190_v34  }
 0x2a7   : > { %v4101_v35 = vpop.f32.mrf.mxu0  ;;  %v4221_v22 = vadd.f32 %v6933_v19, %v4185_v52 }
 0x2a8   : > { %v3703_v55 = vpop.f32.mrf.mxu3  ;;  %v2764_v24 = vpop.f32.mrf.mxu1 }
 0x2a9   : > { %v3752_v62 = vadd.f32 %v3703_v55, %v3098_v7  ;;  %v4287_v14 = vmul.f32 %v6642_v42, %v4221_v22  ;;  %vm4253_vm12 = vcmp.ge.f32.partialorder %v4221_v22, 0.0  ;;  %v2810_v48 = vadd.f32 %v2764_v24, %v6420_v49 }
 0x2ab   : > { %v4150_v8 = vadd.f32 %v4101_v35, %v3752_v62  ;;  %v3052_v33 = vpop.f32.mrf.mxu2  ;;  %v4319_v39 = vsel %vm4253_vm12, %v4221_v22, %v4287_v14 }
 0x2ac   : > { %v3099_v3 = vadd.f32 %v3052_v33, %v2809_v0 }
 0x2ad   : > { %v4186_v61 = vmul.f32 %v6918_v59, %v4150_v8 }
 0x2af   : > { %v4222_v15 = vadd.f32 %v6933_v19, %v4186_v61  ;;  %v4104_v18 = vpop.f32.mrf.mxu0 }
 0x2b0   : > { %v3706_v1 = vpop.f32.mrf.mxu3  ;;  %v2767_v40 = vpop.f32.mrf.mxu1 }
 0x2b1   : > { %vm4254_vm13 = vcmp.ge.f32.partialorder %v4222_v15, 0.0  ;;  %v4288_v9 = vmul.f32 %v6642_v42, %v4222_v15  ;;  %v3753_v53 = vadd.f32 %v3706_v1, %v3099_v3  ;;  %v2811_v57 = vadd.f32 %v2767_v40, %v6439_v17 }
 0x2b3   : > { %v4320_v28 = vsel %vm4254_vm13, %v4222_v15, %v4288_v9  ;;  %v4151_v21 = vadd.f32 %v4104_v18, %v3753_v53  ;;  %v3054_v29 = vpop.f32.mrf.mxu2 }
 0x2b4   : > { %v5195_v12 = vpack.c.bf16 %v4320_v28, %v4319_v39  ;;  %v3100_v54 = vadd.f32 %v3054_v29, %v2810_v48 }
 0x2b5   : > { %v4187_v2 = vmul.f32 %v6918_v59, %v4151_v21 }
 0x2b6   : > { %5231 = vst [vmem:[%s6680_s30 + $0x50] sm:$0xff] %v5195_v12  }
 0x2b7   : > { %v4106_v51 = vpop.f32.mrf.mxu0  ;;  %v4223_v13 = vadd.f32 %v6933_v19, %v4187_v2 }
 0x2b8   : > { %v3708_v58 = vpop.f32.mrf.mxu3  ;;  %v2769_v47 = vpop.f32.mrf.mxu1 }
 0x2b9   : > { %v3754_v31 = vadd.f32 %v3708_v58, %v3100_v54  ;;  %v4289_v49 = vmul.f32 %v6642_v42, %v4223_v13  ;;  %vm4255_vm14 = vcmp.ge.f32.partialorder %v4223_v13, 0.0  ;;  %v2812_v38 = vadd.f32 %v2769_v47, %v7053_v46 }
 0x2bb   : > { %v4152_v30 = vadd.f32 %v4106_v51, %v3754_v31  ;;  %v3057_v27 = vpop.f32.mrf.mxu2  ;;  %v4321_v25 = vsel %vm4255_vm14, %v4223_v13, %v4289_v49 }
 0x2bc   : > { %v3101_v10 = vadd.f32 %v3057_v27, %v2811_v57 }
 0x2bd   : > { %v4188_v50 = vmul.f32 %v6918_v59, %v4152_v30 }
 0x2bf   : > { %v4224_v56 = vadd.f32 %v6933_v19, %v4188_v50  ;;  %v4109_v26 = vpop.f32.mrf.mxu0 }
 0x2c0   : > { %v3711_v5 = vpop.f32.mrf.mxu3  ;;  %v2772_v43 = vpop.f32.mrf.mxu1 }
 0x2c1   : > { %vm4256_vm15 = vcmp.ge.f32.partialorder %v4224_v56, 0.0  ;;  %v4290_v11 = vmul.f32 %v6642_v42, %v4224_v56  ;;  %v3755_v4 = vadd.f32 %v3711_v5, %v3101_v10  ;;  %v2813_v35 = vadd.f32 %v2772_v43, %v6480_v44 }
 0x2c3   : > { %v4322_v37 = vsel %vm4256_vm15, %v4224_v56, %v4290_v11  ;;  %v4153_v17 = vadd.f32 %v4109_v26, %v3755_v4  ;;  %v3059_v20 = vpop.f32.mrf.mxu2 }
 0x2c4   : > { %v5200_v16 = vpack.c.bf16 %v4322_v37, %v4321_v25  ;;  %v3102_v32 = vadd.f32 %v3059_v20, %v2812_v38  ;;  %v7054_v38 = vld [vmem:[#allocation9_spill] sm:$0xff] }
 0x2c5   : > { %v4189_v36 = vmul.f32 %v6918_v59, %v4153_v17 }
 0x2c6   : > { %5232 = vst [vmem:[%s6680_s30 + $0x58] sm:$0xff] %v5200_v16  }
 0x2c7   : > { %v4111_v60 = vpop.f32.mrf.mxu0  ;;  %v4225_v7 = vadd.f32 %v6933_v19, %v4189_v36 }
 0x2c8   : > { %v3713_v41 = vpop.f32.mrf.mxu3  ;;  %v2774_v23 = vpop.f32.mrf.mxu1 }
 0x2c9   : > { %v3756_v34 = vadd.f32 %v3713_v41, %v3102_v32  ;;  %v4291_v22 = vmul.f32 %v6642_v42, %v4225_v7  ;;  %vm4257_vm0 = vcmp.ge.f32.partialorder %v4225_v7, 0.0  ;;  %v2814_v1 = vadd.f32 %v2774_v23, %v6503_v45 }
 0x2cb   : > { %v4154_v52 = vadd.f32 %v4111_v60, %v3756_v34  ;;  %v3062_v55 = vpop.f32.mrf.mxu2  ;;  %v4323_v15 = vsel %vm4257_vm0, %v4225_v7, %v4291_v22 }
 0x2cc   : > { %v3103_v62 = vadd.f32 %v3062_v55, %v2813_v35 }
 0x2cd   : > { %v4190_v24 = vmul.f32 %v6918_v59, %v4154_v52 }
 0x2cf   : > { %v4226_v8 = vadd.f32 %v6933_v19, %v4190_v24  ;;  %v4114_v0 = vpop.f32.mrf.mxu0 }
 0x2d0   : > { %v3716_v33 = vpop.f32.mrf.mxu3  ;;  %v2777_v14 = vpop.f32.mrf.mxu1 }
 0x2d1   : > { %vm4258_vm1 = vcmp.ge.f32.partialorder %v4226_v8, 0.0  ;;  %v4292_v61 = vmul.f32 %v6642_v42, %v4226_v8  ;;  %v3757_v3 = vadd.f32 %v3716_v33, %v3103_v62  ;;  %v2815_v54 = vadd.f32 %v2777_v14, %v6521_v63  ;;  %v7055_v62 = vld [vmem:[#allocation10_spill] sm:$0xff] }
 0x2d3   : > { %v4324_v18 = vsel %vm4258_vm1, %v4226_v8, %v4292_v61  ;;  %v4155_v44 = vadd.f32 %v4114_v0, %v3757_v3  ;;  %v3064_v40 = vpop.f32.mrf.mxu2 }
 0x2d4   : > { %v5205_v9 = vpack.c.bf16 %v4324_v18, %v4323_v15  ;;  %v3104_v53 = vadd.f32 %v3064_v40, %v2814_v1 }
 0x2d5   : > { %v4191_v39 = vmul.f32 %v6918_v59, %v4155_v44 }
 0x2d6   : > { %5233 = vst [vmem:[%s6680_s30 + $0x60] sm:$0xff] %v5205_v9  }
 0x2d7   : > { %v4116_v28 = vpop.f32.mrf.mxu0  ;;  %v4227_v29 = vadd.f32 %v6933_v19, %v4191_v39 }
 0x2d8   : > { %v3718_v21 = vpop.f32.mrf.mxu3  ;;  %v2779_v51 = vpop.f32.mrf.mxu1 }
 0x2d9   : > { %v3758_v48 = vadd.f32 %v3718_v21, %v3104_v53  ;;  %v4293_v45 = vmul.f32 %v6642_v42, %v4227_v29  ;;  %vm4259_vm2 = vcmp.ge.f32.partialorder %v4227_v29, 0.0  ;;  %v2816_v49 = vadd.f32 %v2779_v51, %v6547_v6 }
 0x2db   : > { %v4156_v12 = vadd.f32 %v4116_v28, %v3758_v48  ;;  %v3067_v2 = vpop.f32.mrf.mxu2  ;;  %v4325_v50 = vsel %vm4259_vm2, %v4227_v29, %v4293_v45 }
 0x2dc   : > { %v3105_v47 = vadd.f32 %v3067_v2, %v2815_v54 }
 0x2dd   : > { %v4192_v58 = vmul.f32 %v6918_v59, %v4156_v12 }
 0x2df   : > { %v4228_v31 = vadd.f32 %v6933_v19, %v4192_v58  ;;  %v4119_v13 = vpop.f32.mrf.mxu0 }
 0x2e0   : > { %v3721_v30 = vpop.f32.mrf.mxu3  ;;  %v2782_v43 = vpop.f32.mrf.mxu1 }
 0x2e1   : > { %vm4260_vm5 = vcmp.ge.f32.partialorder %v4228_v31, 0.0  ;;  %v4294_v57 = vmul.f32 %v6642_v42, %v4228_v31  ;;  %v3759_v27 = vadd.f32 %v3721_v30, %v3105_v47  ;;  %v2817_v20 = vadd.f32 %v2782_v43, %v7054_v38 }
 0x2e3   : > { %v4326_v10 = vsel %vm4260_vm5, %v4228_v31, %v4294_v57  ;;  %v4157_v63 = vadd.f32 %v4119_v13, %v3759_v27  ;;  %v3069_v56 = vpop.f32.mrf.mxu2 }
 0x2e4   : > { %v5210_v26 = vpack.c.bf16 %v4326_v10, %v4325_v50  ;;  %v3106_v5 = vadd.f32 %v3069_v56, %v2816_v49 }
 0x2e5   : > { %v4193_v11 = vmul.f32 %v6918_v59, %v4157_v63 }
 0x2e6   : > { %5234 = vst [vmem:[%s6680_s30 + $0x68] sm:$0xff] %v5210_v26  }
 0x2e7   : > { %v4121_v4 = vpop.f32.mrf.mxu0  ;;  %v4229_v17 = vadd.f32 %v6933_v19, %v4193_v11 }
 0x2e8   : > { %v3723_v25 = vpop.f32.mrf.mxu3  ;;  %v2784_v41 = vpop.f32.mrf.mxu1 }
 0x2e9   : > { %v3760_v37 = vadd.f32 %v3723_v25, %v3106_v5  ;;  %v4295_v6 = vmul.f32 %v6642_v42, %v4229_v17  ;;  %vm4261_vm3 = vcmp.ge.f32.partialorder %v4229_v17, 0.0  ;;  %v2818_v22 = vadd.f32 %v2784_v41, %v7055_v62 }
 0x2eb   : > { %v4158_v46 = vadd.f32 %v4121_v4, %v3760_v37  ;;  %v3072_v16 = vpop.f32.mrf.mxu2  ;;  %v4327_v35 = vsel %vm4261_vm3, %v4229_v17, %v4295_v6 }
 0x2ec   : > { %v3107_v36 = vadd.f32 %v3072_v16, %v2817_v20 }
 0x2ed   : > { %v4194_v32 = vmul.f32 %v6918_v59, %v4158_v46 }
 0x2ef   : > { %v4230_v60 = vadd.f32 %v6933_v19, %v4194_v32  ;;  %v4124_v23 = vpop.f32.mrf.mxu0 }
 0x2f0   : > { %v3726_v34 = vpop.f32.mrf.mxu3 }
 0x2f1   : > { %vm4262_vm6 = vcmp.ge.f32.partialorder %v4230_v60, 0.0  ;;  %v4296_v7 = vmul.f32 %v6642_v42, %v4230_v60  ;;  %v3761_v52 = vadd.f32 %v3726_v34, %v3107_v36 }
 0x2f3   : > { %v4328_v55 = vsel %vm4262_vm6, %v4230_v60, %v4296_v7  ;;  %v4159_v24 = vadd.f32 %v4124_v23, %v3761_v52  ;;  %v3074_v8 = vpop.f32.mrf.mxu2 }
 0x2f4   : > { %v5215_v0 = vpack.c.bf16 %v4328_v55, %v4327_v35  ;;  %v3108_v33 = vadd.f32 %v3074_v8, %v2818_v22 }
 0x2f5   : > { %v4195_v61 = vmul.f32 %v6918_v59, %v4159_v24 }
 0x2f6   : > { %5235 = vst [vmem:[%s6680_s30 + $0x70] sm:$0xff] %v5215_v0  }
 0x2f7   : > { %v4126_v15 = vpop.f32.mrf.mxu0  ;;  %v4231_v18 = vadd.f32 %v6933_v19, %v4195_v61 }
 0x2f8   : > { %v3728_v3 = vpop.f32.mrf.mxu3 }
 0x2f9   : > { %v3762_v14 = vadd.f32 %v3728_v3, %v3108_v33  ;;  %v4297_v40 = vmul.f32 %v6642_v42, %v4231_v18  ;;  %vm4263_vm4 = vcmp.ge.f32.partialorder %v4231_v18, 0.0 }
 0x2fb   : > { %v4160_v44 = vadd.f32 %v4126_v15, %v3762_v14  ;;  %v4329_v39 = vsel %vm4263_vm4, %v4231_v18, %v4297_v40 }
 0x2fd   : > { %v4196_v1 = vmul.f32 %v6918_v59, %v4160_v44 }
 0x2ff   : > { %v4232_v9 = vadd.f32 %v6933_v19, %v4196_v1 }
 0x301   : > { %vm4264_vm7 = vcmp.ge.f32.partialorder %v4232_v9, 0.0  ;;  %v4298_v53 = vmul.f32 %v6642_v42, %v4232_v9 }
 0x303   : > { %v4330_v28 = vsel %vm4264_vm7, %v4232_v9, %v4298_v53 }
 0x304   : > { %v5220_v21 = vpack.c.bf16 %v4330_v28, %v4329_v39 }
 0x306   : > { %5236 = vst [vmem:[%s6680_s30 + $0x78] sm:$0xff] %v5220_v21  }
 0x307   : > { %5379 = shalt.err (!%p5376_p5)
}
 0x308   : > { %s5432_s4 = smov 64   ;;  %s5433_s30 = smov 4  }
 0x309   : > { %5241 = dma.vmem_to_hbm [thread:$0]  (%p5507_p4), %s4412_s15, 2048, %s4414_s16, %s4396_s23, %s5432_s4, %s5432_s4, %s5433_s30  }
 0x30a PF: > { %p5247_p6 = scmp.ge.s32.totalorder %s5430_s25, 2  ;;  %s4428_s10 = sand.u32 1, %s5410_s20  }
 0x30b   : > { %s4429_s11 = scalar_lea.sflag [#allocation4], %s4428_s10 }
 0x30c   : > { %p5244_p7 = pnand %p5247_p6, %p5514_p8 }
 0x30e   : > { %p5245_p9 = pneg %p5244_p7 }
 0x310   : > { %5405 = dma.done.wait (%p5245_p9), %s4429_s11, 2048  }
 0x311   : > { %5407 = vsyncadd (%p5245_p9), %s4429_s11, 4294965248  ;;  %s19_s25 = sadd.s32 1, %s5430_s25   ;;  %s7056_s20 = smov %s5414_s21 }
 0x312   : > { %p16_p10 = scmp.ge.s32.totalorder %s19_s25, 4   ;;  %s7057_s21 = smov %s5418_s22 }
 0x313   : > { %s7058_s22 = smov %s5520_s7  ;;  %s7059_s23 = smov %s5426_s24 }
 0x314   : > { %s7060_s24 = smov %s7062_s27  ;;  %18 = sbr.rel (!%p16_p10) target bundleno = 6 (0x6), region = 86 }
 0x319   :  { %4435 = vsyncpa [#allocation4], 1 }
 0x31a   :  { %4437 = vsyncpa [#allocation4 + $0x1], 1 }

</bundles_post_ra>
